<compile_context>
chip_gen: v7x
topology: tpu7x:2x2x1
jax: 0.10.0
libtpu: 0.0.40
codegen_flags: <defaults>
</compile_context>

<pallas_src>
import functools

import numpy as np

import jax
import jax.numpy as jnp
from jax.experimental import pallas as pl
from jax.experimental.pallas import tpu as pltpu


# -----------------------------------------------------------------------------
# Fused forward kernel (single grid step; everything stays VMEM resident)
# -----------------------------------------------------------------------------
def _mltnet_kernel(x_ref, w1b_ref, b1f_ref, w2b_ref, b2f_ref,
                   fc1w_ref, fc1b_ref, fc2w_ref, fc2b_ref,
                   w34_ref, b34_ref, out_ref):
    f32 = jnp.float32
    dot = functools.partial(jnp.dot, preferred_element_type=f32,
                            precision=jax.lax.Precision.HIGHEST)

    B, Cin, H, _ = x_ref.shape
    P1 = ((H - 2) - 3) // 3 + 1          # pool1 spatial size (8)
    H1 = 3 * P1                          # conv1 rows/cols consumed by pool1 (24)
    C1 = w1b_ref.shape[-1] // H1         # conv1 out channels (8)
    H2 = P1 - 2                          # conv2 spatial size (6)
    P2 = (H2 - 3) // 3 + 1               # pool2 spatial size (2)
    C2 = w2b_ref.shape[-1] // H2         # conv2 out channels (16)

    # ---- conv1 + ReLU: 3*Cin banded MXU matmuls ------------------------------
    # a1 rows = (b, y), lanes = x*C1 + out_channel  (lane-dense: 24*8 = 192)
    acc1 = jnp.zeros((B * H1, H1 * C1), f32)
    for ky in range(3):
        for ci in range(Cin):
            xs = jnp.concatenate(
                [x_ref[b, ci, ky:ky + H1, :] for b in range(B)], axis=0)
            acc1 = acc1 + dot(xs, w1b_ref[ci, ky])
    a1 = jnp.maximum(acc1 + b1f_ref[...], 0.0)               # (B*H1, H1*C1)

    # ---- pool1 (3x3 / stride 3): row-group max then lane-group max ----------
    # p1 rows = (b, y1), lanes = x1*C1 + channel    (64 lanes)
    rows = [jnp.max(a1[3 * g:3 * g + 3, :], axis=0, keepdims=True)
            for g in range(B * P1)]
    y1 = jnp.concatenate(rows, axis=0)                       # (B*P1, H1*C1)
    cols = []
    for j in range(P1):
        s = 3 * C1 * j
        cols.append(jnp.maximum(
            jnp.maximum(y1[:, s:s + C1], y1[:, s + C1:s + 2 * C1]),
            y1[:, s + 2 * C1:s + 3 * C1]))
    p1 = jnp.concatenate(cols, axis=1)                       # (B*P1, P1*C1)

    # ---- conv2 + ReLU: 3 banded MXU matmuls ----------------------------------
    # a2 rows = (b, y2), lanes = x2*C2 + out_channel (96 lanes)
    acc2 = jnp.zeros((B * H2, H2 * C2), f32)
    for ky in range(3):
        ps = jnp.concatenate(
            [p1[b * P1 + ky:b * P1 + ky + H2, :] for b in range(B)], axis=0)
        acc2 = acc2 + dot(ps, w2b_ref[ky])
    a2 = jnp.maximum(acc2 + b2f_ref[...], 0.0)               # (B*H2, H2*C2)

    # ---- pool2 (3x3 / stride 3) + flatten to (B, P2*P2*C2) -------------------
    # flat columns ordered (i, j, channel); fc1 rows are pre-permuted to match.
    flat_rows = []
    for b in range(B):
        pieces = []
        for i in range(P2):
            ys = jnp.max(a2[b * H2 + 3 * i:b * H2 + 3 * i + 3, :],
                         axis=0, keepdims=True)              # (1, H2*C2)
            for j in range(P2):
                s = 3 * C2 * j
                pieces.append(jnp.maximum(
                    jnp.maximum(ys[:, s:s + C2], ys[:, s + C2:s + 2 * C2]),
                    ys[:, s + 2 * C2:s + 3 * C2]))
        flat_rows.append(jnp.concatenate(pieces, axis=1))    # (1, P2*P2*C2)
    flat = jnp.concatenate(flat_rows, axis=0)                # (B, 64)

    # ---- MLP head (dropout == identity, eval semantics) ----------------------
    h = jnp.maximum(dot(flat, fc1w_ref[...]) + fc1b_ref[...], 0.0)
    h = jnp.maximum(dot(h, fc2w_ref[...]) + fc2b_ref[...], 0.0)
    out = dot(h, w34_ref[...]) + b34_ref[...]                # (B, 128) padded head
    out_ref[...] = out.astype(out_ref.dtype)


# -----------------------------------------------------------------------------
# One-time, host-side weight repacking (hoisted off the per-call path)
# -----------------------------------------------------------------------------
def pack_params(params, image_hw=28):
    w1 = np.asarray(params["conv1_w"], np.float32)   # (C1, Cin, 3, 3)
    b1 = np.asarray(params["conv1_b"], np.float32)
    w2 = np.asarray(params["conv2_w"], np.float32)   # (C2, C1, 3, 3)
    b2 = np.asarray(params["conv2_b"], np.float32)
    fc1w = np.asarray(params["fc1_w"], np.float32)   # (64, 256)   (in, out)
    fc1b = np.asarray(params["fc1_b"], np.float32)
    fc2w = np.asarray(params["fc2_w"], np.float32)   # (256, 128)
    fc2b = np.asarray(params["fc2_b"], np.float32)
    fc3w = np.asarray(params["fc3_w"], np.float32)   # (128, c0)
    fc3b = np.asarray(params["fc3_b"], np.float32)
    fc4w = np.asarray(params["fc4_w"], np.float32)   # (128, c1)
    fc4b = np.asarray(params["fc4_b"], np.float32)

    C1, Cin = w1.shape[0], w1.shape[1]
    C2 = w2.shape[0]
    W = image_hw
    P1 = ((W - 2) - 3) // 3 + 1          # 8
    H1 = 3 * P1                          # 24
    H2 = P1 - 2                          # 6
    P2 = (H2 - 3) // 3 + 1               # 2

    # Banded conv1 weight: (Cin, 3, W, H1*C1); row x_in, col x_out*C1 + o.
    # Row x_in contributes to output column x_out iff (x_in - x_out) in {0,1,2}.
    w1b = np.zeros((Cin, 3, W, H1 * C1), np.float32)
    for ky in range(3):
        for kx in range(3):
            for xo in range(H1):
                w1b[:, ky, xo + kx, xo * C1:(xo + 1) * C1] = w1[:, :, ky, kx].T
    b1f = np.tile(b1, H1).reshape(1, H1 * C1)

    # Banded conv2 weight: (3, P1*C1, H2*C2); row x1*C1 + c, col x2*C2 + o.
    w2b = np.zeros((3, P1 * C1, H2 * C2), np.float32)
    for ky in range(3):
        for kx in range(3):
            for xo in range(H2):
                w2b[ky, (xo + kx) * C1:(xo + kx + 1) * C1,
                    xo * C2:(xo + 1) * C2] = w2[:, :, ky, kx].T
    b2f = np.tile(b2, H2).reshape(1, H2 * C2)

    # fc1 rows permuted from torch's NCHW flatten order (c, i, j) to the
    # kernel's pool2 flatten order (i, j, c).
    dh = fc1w.shape[1]
    fc1w_p = (fc1w.reshape(C2, P2, P2, dh)
              .transpose(1, 2, 0, 3).reshape(P2 * P2 * C2, dh))

    # Merged fc3/fc4 head, zero-padded to a lane-dense width (multiple of 128).
    nc0, nc1 = fc3w.shape[1], fc4w.shape[1]
    n_out = max(128, -((nc0 + nc1) // -128) * 128)
    w34 = np.zeros((fc3w.shape[0], n_out), np.float32)
    w34[:, :nc0] = fc3w
    w34[:, nc0:nc0 + nc1] = fc4w
    b34 = np.zeros((1, n_out), np.float32)
    b34[0, :nc0] = fc3b
    b34[0, nc0:nc0 + nc1] = fc4b

    return {
        "w1b": jnp.asarray(w1b), "b1f": jnp.asarray(b1f),
        "w2b": jnp.asarray(w2b), "b2f": jnp.asarray(b2f),
        "fc1w": jnp.asarray(fc1w_p), "fc1b": jnp.asarray(fc1b.reshape(1, -1)),
        "fc2w": jnp.asarray(fc2w), "fc2b": jnp.asarray(fc2b.reshape(1, -1)),
        "w34": jnp.asarray(w34), "b34": jnp.asarray(b34),
    }


# -----------------------------------------------------------------------------
# Forward wrapper: one pallas_call, zero per-call weight prep
# -----------------------------------------------------------------------------
def mltnet_forward(x_nchw, packed, num_class):
    f32 = jnp.float32
    x = x_nchw.astype(f32)               # NCHW, consumed directly by the kernel
    B = x.shape[0]
    n_out = packed["w34"].shape[1]

    def fb(shape):
        nd = len(shape)
        return pl.BlockSpec(shape, lambda i, _nd=nd: (0,) * _nd)

    args = (x, packed["w1b"], packed["b1f"], packed["w2b"], packed["b2f"],
            packed["fc1w"], packed["fc1b"], packed["fc2w"], packed["fc2b"],
            packed["w34"], packed["b34"])

    out = pl.pallas_call(
        _mltnet_kernel,
        out_shape=jax.ShapeDtypeStruct((B, n_out), f32),
        grid=(1,),
        in_specs=[fb(a.shape) for a in args],
        out_specs=fb((B, n_out)),
        compiler_params=pltpu.CompilerParams(
            dimension_semantics=("arbitrary",),
            vmem_limit_bytes=32 * 1024 * 1024),
    )(*args)

    c0, c1 = num_class
    return out[:, :c0], out[:, c0:c0 + c1]


# -----------------------------------------------------------------------------
# Pure-JAX reference (mirrors the PyTorch module in eval mode)
# -----------------------------------------------------------------------------
def mltnet_reference(x_nchw, params):
    x = x_nchw.astype(jnp.float32)

    def conv(a, w, b):
        y = jax.lax.conv_general_dilated(
            a, w, window_strides=(1, 1), padding="VALID",
            dimension_numbers=("NCHW", "OIHW", "NCHW"))
        return jax.nn.relu(y + b.reshape(1, -1, 1, 1))

    def pool(a):
        return jax.lax.reduce_window(a, -jnp.inf, jax.lax.max,
                                     (1, 1, 3, 3), (1, 1, 3, 3), "VALID")

    a = pool(conv(x, params["conv1_w"], params["conv1_b"]))
    a = pool(conv(a, params["conv2_w"], params["conv2_b"]))
    f = a.reshape(a.shape[0], -1)
    h = jax.nn.relu(f @ params["fc1_w"] + params["fc1_b"])
    h = jax.nn.relu(h @ params["fc2_w"] + params["fc2_b"])
    return (h @ params["fc3_w"] + params["fc3_b"],
            h @ params["fc4_w"] + params["fc4_b"])


# -----------------------------------------------------------------------------
# Deterministic synthetic parameters (fc weights stored as (in, out))
# -----------------------------------------------------------------------------
def init_params(key, input_channel, num_class):
    ks = jax.random.split(key, 12)
    s = 0.1
    c0, c1 = num_class
    return {
        "conv1_w": s * jax.random.normal(ks[0], (8, input_channel, 3, 3), jnp.float32),
        "conv1_b": s * jax.random.normal(ks[1], (8,), jnp.float32),
        "conv2_w": s * jax.random.normal(ks[2], (16, 8, 3, 3), jnp.float32),
        "conv2_b": s * jax.random.normal(ks[3], (16,), jnp.float32),
        "fc1_w":   s * jax.random.normal(ks[4], (64, 256), jnp.float32),
        "fc1_b":   s * jax.random.normal(ks[5], (256,), jnp.float32),
        "fc2_w":   s * jax.random.normal(ks[6], (256, 128), jnp.float32),
        "fc2_b":   s * jax.random.normal(ks[7], (128,), jnp.float32),
        "fc3_w":   s * jax.random.normal(ks[8], (128, c0), jnp.float32),
        "fc3_b":   s * jax.random.normal(ks[9], (c0,), jnp.float32),
        "fc4_w":   s * jax.random.normal(ks[10], (128, c1), jnp.float32),
        "fc4_b":   s * jax.random.normal(ks[11], (c1,), jnp.float32),
    }


if __name__ == "__main__":
    INPUT_CHANNEL = 1
    NUM_CLASS = (10, 5)
    B = 2
    # 28x28 input so the flattened feature size is 16*2*2 = 64, matching nn.Linear(64, 256).
    x = jax.random.normal(jax.random.PRNGKey(0), (B, INPUT_CHANNEL, 28, 28),
                          dtype=jnp.float32)
    params = init_params(jax.random.PRNGKey(1), INPUT_CHANNEL, NUM_CLASS)

    packed = pack_params(params, image_hw=28)   # one-time repacking, off the call path
    fwd = jax.jit(mltnet_forward, static_argnums=2)
    x1, x2 = fwd(x, packed, NUM_CLASS)
    jax.block_until_ready((x1, x2))
    assert x1.shape == (B, NUM_CLASS[0]) and x2.shape == (B, NUM_CLASS[1])

    r1, r2 = jax.jit(mltnet_reference)(x, params)
    jax.block_until_ready((r1, r2))
    assert jnp.allclose(x1, r1, atol=1e-3, rtol=1e-3), "head-1 mismatch vs reference"
    assert jnp.allclose(x2, r2, atol=1e-3, rtol=1e-3), "head-2 mismatch vs reference"

    print("KERNEL_OK")
</pallas_src>

<mosaic_0001>
module attributes {stable_mosaic.version = 11 : i64} {
  func.func @_mltnet_kernel(%arg0: i32, %arg1: memref<2x1x28x28xf32, #tpu.memory_space<vmem>>, %arg2: memref<1x3x28x192xf32, #tpu.memory_space<vmem>>, %arg3: memref<1x192xf32, #tpu.memory_space<vmem>>, %arg4: memref<3x64x96xf32, #tpu.memory_space<vmem>>, %arg5: memref<1x96xf32, #tpu.memory_space<vmem>>, %arg6: memref<64x256xf32, #tpu.memory_space<vmem>>, %arg7: memref<1x256xf32, #tpu.memory_space<vmem>>, %arg8: memref<256x128xf32, #tpu.memory_space<vmem>>, %arg9: memref<1x128xf32, #tpu.memory_space<vmem>>, %arg10: memref<128x128xf32, #tpu.memory_space<vmem>>, %arg11: memref<1x128xf32, #tpu.memory_space<vmem>>, %arg12: memref<2x128xf32, #tpu.memory_space<vmem>>) attributes {dimension_semantics = [#tpu.dimension_semantics<arbitrary>], iteration_bounds = array<i64: 1>, scalar_prefetch = 0 : i64, scratch_operands = 0 : i64, tpu.core_type = #tpu.core_type<tc>, window_params = [{pipeline_mode = #tpu.pipeline_mode<synchronous>, transform_indices = @transform_0, window_bounds = array<i64: 2, 1, 28, 28>}, {pipeline_mode = #tpu.pipeline_mode<synchronous>, transform_indices = @transform_1, window_bounds = array<i64: 1, 3, 28, 192>}, {pipeline_mode = #tpu.pipeline_mode<synchronous>, transform_indices = @transform_2, window_bounds = array<i64: 1, 192>}, {pipeline_mode = #tpu.pipeline_mode<synchronous>, transform_indices = @transform_3, window_bounds = array<i64: 3, 64, 96>}, {pipeline_mode = #tpu.pipeline_mode<synchronous>, transform_indices = @transform_4, window_bounds = array<i64: 1, 96>}, {pipeline_mode = #tpu.pipeline_mode<synchronous>, transform_indices = @transform_5, window_bounds = array<i64: 64, 256>}, {pipeline_mode = #tpu.pipeline_mode<synchronous>, transform_indices = @transform_6, window_bounds = array<i64: 1, 256>}, {pipeline_mode = #tpu.pipeline_mode<synchronous>, transform_indices = @transform_7, window_bounds = array<i64: 256, 128>}, {pipeline_mode = #tpu.pipeline_mode<synchronous>, transform_indices = @transform_8, window_bounds = array<i64: 1, 128>}, {pipeline_mode = #tpu.pipeline_mode<synchronous>, transform_indices = @transform_9, window_bounds = array<i64: 128, 128>}, {pipeline_mode = #tpu.pipeline_mode<synchronous>, transform_indices = @transform_10, window_bounds = array<i64: 1, 128>}, {pipeline_mode = #tpu.pipeline_mode<synchronous>, transform_indices = @transform_11, window_bounds = array<i64: 2, 128>}]} {
    %cst = arith.constant 0.000000e+00 : f32
    %0 = vector.broadcast %cst : f32 to vector<48x192xf32>
    %c0 = arith.constant 0 : index
    %c0_0 = arith.constant 0 : index
    %c0_1 = arith.constant 0 : index
    %c0_2 = arith.constant 0 : index
    %1 = vector.load %arg1[%c0, %c0_0, %c0_1, %c0_2] : memref<2x1x28x28xf32, #tpu.memory_space<vmem>>, vector<1x1x24x28xf32>
    %2 = vector.shape_cast %1 : vector<1x1x24x28xf32> to vector<24x28xf32>
    %c1 = arith.constant 1 : index
    %c0_3 = arith.constant 0 : index
    %c0_4 = arith.constant 0 : index
    %c0_5 = arith.constant 0 : index
    %3 = vector.load %arg1[%c1, %c0_3, %c0_4, %c0_5] : memref<2x1x28x28xf32, #tpu.memory_space<vmem>>, vector<1x1x24x28xf32>
    %4 = vector.shape_cast %3 : vector<1x1x24x28xf32> to vector<24x28xf32>
    %5 = tpu.concatenate %2, %4 in 0 : vector<24x28xf32>, vector<24x28xf32> -> vector<48x28xf32>
    %c0_6 = arith.constant 0 : index
    %c0_7 = arith.constant 0 : index
    %c0_8 = arith.constant 0 : index
    %c0_9 = arith.constant 0 : index
    %6 = vector.load %arg2[%c0_6, %c0_7, %c0_8, %c0_9] : memref<1x3x28x192xf32, #tpu.memory_space<vmem>>, vector<1x1x28x192xf32>
    %7 = vector.shape_cast %6 : vector<1x1x28x192xf32> to vector<28x192xf32>
    %cst_10 = arith.constant dense<0.000000e+00> : vector<48x192xf32>
    %8 = tpu.matmul %5, %7, %cst_10 {dimension_numbers = #tpu.dot_dimension_numbers<[1], [0], [0], [1], [0, 0, 1, 1], [], []>, precision = #tpu.contract_precision<fp32>} : vector<48x28xf32>, vector<28x192xf32>, vector<48x192xf32> -> vector<48x192xf32>
    %9 = arith.addf %0, %8 : vector<48x192xf32>
    %c0_11 = arith.constant 0 : index
    %c0_12 = arith.constant 0 : index
    %c1_13 = arith.constant 1 : index
    %c0_14 = arith.constant 0 : index
    %10 = vector.load %arg1[%c0_11, %c0_12, %c1_13, %c0_14] : memref<2x1x28x28xf32, #tpu.memory_space<vmem>>, vector<1x1x24x28xf32>
    %11 = vector.shape_cast %10 : vector<1x1x24x28xf32> to vector<24x28xf32>
    %c1_15 = arith.constant 1 : index
    %c0_16 = arith.constant 0 : index
    %c1_17 = arith.constant 1 : index
    %c0_18 = arith.constant 0 : index
    %12 = vector.load %arg1[%c1_15, %c0_16, %c1_17, %c0_18] : memref<2x1x28x28xf32, #tpu.memory_space<vmem>>, vector<1x1x24x28xf32>
    %13 = vector.shape_cast %12 : vector<1x1x24x28xf32> to vector<24x28xf32>
    %14 = tpu.concatenate %11, %13 in 0 : vector<24x28xf32>, vector<24x28xf32> -> vector<48x28xf32>
    %c0_19 = arith.constant 0 : index
    %c1_20 = arith.constant 1 : index
    %c0_21 = arith.constant 0 : index
    %c0_22 = arith.constant 0 : index
    %15 = vector.load %arg2[%c0_19, %c1_20, %c0_21, %c0_22] : memref<1x3x28x192xf32, #tpu.memory_space<vmem>>, vector<1x1x28x192xf32>
    %16 = vector.shape_cast %15 : vector<1x1x28x192xf32> to vector<28x192xf32>
    %cst_23 = arith.constant dense<0.000000e+00> : vector<48x192xf32>
    %17 = tpu.matmul %14, %16, %cst_23 {dimension_numbers = #tpu.dot_dimension_numbers<[1], [0], [0], [1], [0, 0, 1, 1], [], []>, precision = #tpu.contract_precision<fp32>} : vector<48x28xf32>, vector<28x192xf32>, vector<48x192xf32> -> vector<48x192xf32>
    %18 = arith.addf %9, %17 : vector<48x192xf32>
    %c0_24 = arith.constant 0 : index
    %c0_25 = arith.constant 0 : index
    %c2 = arith.constant 2 : index
    %c0_26 = arith.constant 0 : index
    %19 = vector.load %arg1[%c0_24, %c0_25, %c2, %c0_26] : memref<2x1x28x28xf32, #tpu.memory_space<vmem>>, vector<1x1x24x28xf32>
    %20 = vector.shape_cast %19 : vector<1x1x24x28xf32> to vector<24x28xf32>
    %c1_27 = arith.constant 1 : index
    %c0_28 = arith.constant 0 : index
    %c2_29 = arith.constant 2 : index
    %c0_30 = arith.constant 0 : index
    %21 = vector.load %arg1[%c1_27, %c0_28, %c2_29, %c0_30] : memref<2x1x28x28xf32, #tpu.memory_space<vmem>>, vector<1x1x24x28xf32>
    %22 = vector.shape_cast %21 : vector<1x1x24x28xf32> to vector<24x28xf32>
    %23 = tpu.concatenate %20, %22 in 0 : vector<24x28xf32>, vector<24x28xf32> -> vector<48x28xf32>
    %c0_31 = arith.constant 0 : index
    %c2_32 = arith.constant 2 : index
    %c0_33 = arith.constant 0 : index
    %c0_34 = arith.constant 0 : index
    %24 = vector.load %arg2[%c0_31, %c2_32, %c0_33, %c0_34] : memref<1x3x28x192xf32, #tpu.memory_space<vmem>>, vector<1x1x28x192xf32>
    %25 = vector.shape_cast %24 : vector<1x1x28x192xf32> to vector<28x192xf32>
    %cst_35 = arith.constant dense<0.000000e+00> : vector<48x192xf32>
    %26 = tpu.matmul %23, %25, %cst_35 {dimension_numbers = #tpu.dot_dimension_numbers<[1], [0], [0], [1], [0, 0, 1, 1], [], []>, precision = #tpu.contract_precision<fp32>} : vector<48x28xf32>, vector<28x192xf32>, vector<48x192xf32> -> vector<48x192xf32>
    %27 = arith.addf %18, %26 : vector<48x192xf32>
    %c0_36 = arith.constant 0 : index
    %c0_37 = arith.constant 0 : index
    %28 = vector.load %arg3[%c0_36, %c0_37] : memref<1x192xf32, #tpu.memory_space<vmem>>, vector<1x192xf32>
    %29 = vector.broadcast %28 : vector<1x192xf32> to vector<48x192xf32>
    %30 = arith.addf %27, %29 : vector<48x192xf32>
    %cst_38 = arith.constant 0.000000e+00 : f32
    %31 = vector.broadcast %cst_38 : f32 to vector<48x192xf32>
    %32 = arith.maximumf %30, %31 : vector<48x192xf32>
    %33 = vector.extract_strided_slice %32 {offsets = [0, 0], sizes = [3, 192], strides = [1, 1]} : vector<48x192xf32> to vector<3x192xf32>
    %cst_39 = arith.constant dense<0xFF800000> : vector<192xf32>
    %34 = vector.multi_reduction <maximumf>, %33, %cst_39 [0] : vector<3x192xf32> to vector<192xf32>
    %35 = vector.shape_cast %34 : vector<192xf32> to vector<1x192xf32>
    %36 = vector.extract_strided_slice %32 {offsets = [3, 0], sizes = [3, 192], strides = [1, 1]} : vector<48x192xf32> to vector<3x192xf32>
    %cst_40 = arith.constant dense<0xFF800000> : vector<192xf32>
    %37 = vector.multi_reduction <maximumf>, %36, %cst_40 [0] : vector<3x192xf32> to vector<192xf32>
    %38 = vector.shape_cast %37 : vector<192xf32> to vector<1x192xf32>
    %39 = vector.extract_strided_slice %32 {offsets = [6, 0], sizes = [3, 192], strides = [1, 1]} : vector<48x192xf32> to vector<3x192xf32>
    %cst_41 = arith.constant dense<0xFF800000> : vector<192xf32>
    %40 = vector.multi_reduction <maximumf>, %39, %cst_41 [0] : vector<3x192xf32> to vector<192xf32>
    %41 = vector.shape_cast %40 : vector<192xf32> to vector<1x192xf32>
    %42 = vector.extract_strided_slice %32 {offsets = [9, 0], sizes = [3, 192], strides = [1, 1]} : vector<48x192xf32> to vector<3x192xf32>
    %cst_42 = arith.constant dense<0xFF800000> : vector<192xf32>
    %43 = vector.multi_reduction <maximumf>, %42, %cst_42 [0] : vector<3x192xf32> to vector<192xf32>
    %44 = vector.shape_cast %43 : vector<192xf32> to vector<1x192xf32>
    %45 = vector.extract_strided_slice %32 {offsets = [12, 0], sizes = [3, 192], strides = [1, 1]} : vector<48x192xf32> to vector<3x192xf32>
    %cst_43 = arith.constant dense<0xFF800000> : vector<192xf32>
    %46 = vector.multi_reduction <maximumf>, %45, %cst_43 [0] : vector<3x192xf32> to vector<192xf32>
    %47 = vector.shape_cast %46 : vector<192xf32> to vector<1x192xf32>
    %48 = vector.extract_strided_slice %32 {offsets = [15, 0], sizes = [3, 192], strides = [1, 1]} : vector<48x192xf32> to vector<3x192xf32>
    %cst_44 = arith.constant dense<0xFF800000> : vector<192xf32>
    %49 = vector.multi_reduction <maximumf>, %48, %cst_44 [0] : vector<3x192xf32> to vector<192xf32>
    %50 = vector.shape_cast %49 : vector<192xf32> to vector<1x192xf32>
    %51 = vector.extract_strided_slice %32 {offsets = [18, 0], sizes = [3, 192], strides = [1, 1]} : vector<48x192xf32> to vector<3x192xf32>
    %cst_45 = arith.constant dense<0xFF800000> : vector<192xf32>
    %52 = vector.multi_reduction <maximumf>, %51, %cst_45 [0] : vector<3x192xf32> to vector<192xf32>
    %53 = vector.shape_cast %52 : vector<192xf32> to vector<1x192xf32>
    %54 = vector.extract_strided_slice %32 {offsets = [21, 0], sizes = [3, 192], strides = [1, 1]} : vector<48x192xf32> to vector<3x192xf32>
    %cst_46 = arith.constant dense<0xFF800000> : vector<192xf32>
    %55 = vector.multi_reduction <maximumf>, %54, %cst_46 [0] : vector<3x192xf32> to vector<192xf32>
    %56 = vector.shape_cast %55 : vector<192xf32> to vector<1x192xf32>
    %57 = vector.extract_strided_slice %32 {offsets = [24, 0], sizes = [3, 192], strides = [1, 1]} : vector<48x192xf32> to vector<3x192xf32>
    %cst_47 = arith.constant dense<0xFF800000> : vector<192xf32>
    %58 = vector.multi_reduction <maximumf>, %57, %cst_47 [0] : vector<3x192xf32> to vector<192xf32>
    %59 = vector.shape_cast %58 : vector<192xf32> to vector<1x192xf32>
    %60 = vector.extract_strided_slice %32 {offsets = [27, 0], sizes = [3, 192], strides = [1, 1]} : vector<48x192xf32> to vector<3x192xf32>
    %cst_48 = arith.constant dense<0xFF800000> : vector<192xf32>
    %61 = vector.multi_reduction <maximumf>, %60, %cst_48 [0] : vector<3x192xf32> to vector<192xf32>
    %62 = vector.shape_cast %61 : vector<192xf32> to vector<1x192xf32>
    %63 = vector.extract_strided_slice %32 {offsets = [30, 0], sizes = [3, 192], strides = [1, 1]} : vector<48x192xf32> to vector<3x192xf32>
    %cst_49 = arith.constant dense<0xFF800000> : vector<192xf32>
    %64 = vector.multi_reduction <maximumf>, %63, %cst_49 [0] : vector<3x192xf32> to vector<192xf32>
    %65 = vector.shape_cast %64 : vector<192xf32> to vector<1x192xf32>
    %66 = vector.extract_strided_slice %32 {offsets = [33, 0], sizes = [3, 192], strides = [1, 1]} : vector<48x192xf32> to vector<3x192xf32>
    %cst_50 = arith.constant dense<0xFF800000> : vector<192xf32>
    %67 = vector.multi_reduction <maximumf>, %66, %cst_50 [0] : vector<3x192xf32> to vector<192xf32>
    %68 = vector.shape_cast %67 : vector<192xf32> to vector<1x192xf32>
    %69 = vector.extract_strided_slice %32 {offsets = [36, 0], sizes = [3, 192], strides = [1, 1]} : vector<48x192xf32> to vector<3x192xf32>
    %cst_51 = arith.constant dense<0xFF800000> : vector<192xf32>
    %70 = vector.multi_reduction <maximumf>, %69, %cst_51 [0] : vector<3x192xf32> to vector<192xf32>
    %71 = vector.shape_cast %70 : vector<192xf32> to vector<1x192xf32>
    %72 = vector.extract_strided_slice %32 {offsets = [39, 0], sizes = [3, 192], strides = [1, 1]} : vector<48x192xf32> to vector<3x192xf32>
    %cst_52 = arith.constant dense<0xFF800000> : vector<192xf32>
    %73 = vector.multi_reduction <maximumf>, %72, %cst_52 [0] : vector<3x192xf32> to vector<192xf32>
    %74 = vector.shape_cast %73 : vector<192xf32> to vector<1x192xf32>
    %75 = vector.extract_strided_slice %32 {offsets = [42, 0], sizes = [3, 192], strides = [1, 1]} : vector<48x192xf32> to vector<3x192xf32>
    %cst_53 = arith.constant dense<0xFF800000> : vector<192xf32>
    %76 = vector.multi_reduction <maximumf>, %75, %cst_53 [0] : vector<3x192xf32> to vector<192xf32>
    %77 = vector.shape_cast %76 : vector<192xf32> to vector<1x192xf32>
    %78 = vector.extract_strided_slice %32 {offsets = [45, 0], sizes = [3, 192], strides = [1, 1]} : vector<48x192xf32> to vector<3x192xf32>
    %cst_54 = arith.constant dense<0xFF800000> : vector<192xf32>
    %79 = vector.multi_reduction <maximumf>, %78, %cst_54 [0] : vector<3x192xf32> to vector<192xf32>
    %80 = vector.shape_cast %79 : vector<192xf32> to vector<1x192xf32>
    %81 = tpu.concatenate %35, %38, %41, %44, %47, %50, %53, %56, %59, %62, %65, %68, %71, %74, %77, %80 in 0 : vector<1x192xf32>, vector<1x192xf32>, vector<1x192xf32>, vector<1x192xf32>, vector<1x192xf32>, vector<1x192xf32>, vector<1x192xf32>, vector<1x192xf32>, vector<1x192xf32>, vector<1x192xf32>, vector<1x192xf32>, vector<1x192xf32>, vector<1x192xf32>, vector<1x192xf32>, vector<1x192xf32>, vector<1x192xf32> -> vector<16x192xf32>
    %82 = vector.extract_strided_slice %81 {offsets = [0, 0], sizes = [16, 8], strides = [1, 1]} : vector<16x192xf32> to vector<16x8xf32>
    %83 = vector.extract_strided_slice %81 {offsets = [0, 8], sizes = [16, 8], strides = [1, 1]} : vector<16x192xf32> to vector<16x8xf32>
    %84 = arith.maximumf %82, %83 : vector<16x8xf32>
    %85 = vector.extract_strided_slice %81 {offsets = [0, 16], sizes = [16, 8], strides = [1, 1]} : vector<16x192xf32> to vector<16x8xf32>
    %86 = arith.maximumf %84, %85 : vector<16x8xf32>
    %87 = vector.extract_strided_slice %81 {offsets = [0, 24], sizes = [16, 8], strides = [1, 1]} : vector<16x192xf32> to vector<16x8xf32>
    %88 = vector.extract_strided_slice %81 {offsets = [0, 32], sizes = [16, 8], strides = [1, 1]} : vector<16x192xf32> to vector<16x8xf32>
    %89 = arith.maximumf %87, %88 : vector<16x8xf32>
    %90 = vector.extract_strided_slice %81 {offsets = [0, 40], sizes = [16, 8], strides = [1, 1]} : vector<16x192xf32> to vector<16x8xf32>
    %91 = arith.maximumf %89, %90 : vector<16x8xf32>
    %92 = vector.extract_strided_slice %81 {offsets = [0, 48], sizes = [16, 8], strides = [1, 1]} : vector<16x192xf32> to vector<16x8xf32>
    %93 = vector.extract_strided_slice %81 {offsets = [0, 56], sizes = [16, 8], strides = [1, 1]} : vector<16x192xf32> to vector<16x8xf32>
    %94 = arith.maximumf %92, %93 : vector<16x8xf32>
    %95 = vector.extract_strided_slice %81 {offsets = [0, 64], sizes = [16, 8], strides = [1, 1]} : vector<16x192xf32> to vector<16x8xf32>
    %96 = arith.maximumf %94, %95 : vector<16x8xf32>
    %97 = vector.extract_strided_slice %81 {offsets = [0, 72], sizes = [16, 8], strides = [1, 1]} : vector<16x192xf32> to vector<16x8xf32>
    %98 = vector.extract_strided_slice %81 {offsets = [0, 80], sizes = [16, 8], strides = [1, 1]} : vector<16x192xf32> to vector<16x8xf32>
    %99 = arith.maximumf %97, %98 : vector<16x8xf32>
    %100 = vector.extract_strided_slice %81 {offsets = [0, 88], sizes = [16, 8], strides = [1, 1]} : vector<16x192xf32> to vector<16x8xf32>
    %101 = arith.maximumf %99, %100 : vector<16x8xf32>
    %102 = vector.extract_strided_slice %81 {offsets = [0, 96], sizes = [16, 8], strides = [1, 1]} : vector<16x192xf32> to vector<16x8xf32>
    %103 = vector.extract_strided_slice %81 {offsets = [0, 104], sizes = [16, 8], strides = [1, 1]} : vector<16x192xf32> to vector<16x8xf32>
    %104 = arith.maximumf %102, %103 : vector<16x8xf32>
    %105 = vector.extract_strided_slice %81 {offsets = [0, 112], sizes = [16, 8], strides = [1, 1]} : vector<16x192xf32> to vector<16x8xf32>
    %106 = arith.maximumf %104, %105 : vector<16x8xf32>
    %107 = vector.extract_strided_slice %81 {offsets = [0, 120], sizes = [16, 8], strides = [1, 1]} : vector<16x192xf32> to vector<16x8xf32>
    %108 = vector.extract_strided_slice %81 {offsets = [0, 128], sizes = [16, 8], strides = [1, 1]} : vector<16x192xf32> to vector<16x8xf32>
    %109 = arith.maximumf %107, %108 : vector<16x8xf32>
    %110 = vector.extract_strided_slice %81 {offsets = [0, 136], sizes = [16, 8], strides = [1, 1]} : vector<16x192xf32> to vector<16x8xf32>
    %111 = arith.maximumf %109, %110 : vector<16x8xf32>
    %112 = vector.extract_strided_slice %81 {offsets = [0, 144], sizes = [16, 8], strides = [1, 1]} : vector<16x192xf32> to vector<16x8xf32>
    %113 = vector.extract_strided_slice %81 {offsets = [0, 152], sizes = [16, 8], strides = [1, 1]} : vector<16x192xf32> to vector<16x8xf32>
    %114 = arith.maximumf %112, %113 : vector<16x8xf32>
    %115 = vector.extract_strided_slice %81 {offsets = [0, 160], sizes = [16, 8], strides = [1, 1]} : vector<16x192xf32> to vector<16x8xf32>
    %116 = arith.maximumf %114, %115 : vector<16x8xf32>
    %117 = vector.extract_strided_slice %81 {offsets = [0, 168], sizes = [16, 8], strides = [1, 1]} : vector<16x192xf32> to vector<16x8xf32>
    %118 = vector.extract_strided_slice %81 {offsets = [0, 176], sizes = [16, 8], strides = [1, 1]} : vector<16x192xf32> to vector<16x8xf32>
    %119 = arith.maximumf %117, %118 : vector<16x8xf32>
    %120 = vector.extract_strided_slice %81 {offsets = [0, 184], sizes = [16, 8], strides = [1, 1]} : vector<16x192xf32> to vector<16x8xf32>
    %121 = arith.maximumf %119, %120 : vector<16x8xf32>
    %122 = tpu.concatenate %86, %91, %96, %101, %106, %111, %116, %121 in 1 : vector<16x8xf32>, vector<16x8xf32>, vector<16x8xf32>, vector<16x8xf32>, vector<16x8xf32>, vector<16x8xf32>, vector<16x8xf32>, vector<16x8xf32> -> vector<16x64xf32>
    %cst_55 = arith.constant 0.000000e+00 : f32
    %123 = vector.broadcast %cst_55 : f32 to vector<12x96xf32>
    %124 = vector.extract_strided_slice %122 {offsets = [0, 0], sizes = [6, 64], strides = [1, 1]} : vector<16x64xf32> to vector<6x64xf32>
    %125 = vector.extract_strided_slice %122 {offsets = [8, 0], sizes = [6, 64], strides = [1, 1]} : vector<16x64xf32> to vector<6x64xf32>
    %126 = tpu.concatenate %124, %125 in 0 : vector<6x64xf32>, vector<6x64xf32> -> vector<12x64xf32>
    %c0_56 = arith.constant 0 : index
    %c0_57 = arith.constant 0 : index
    %c0_58 = arith.constant 0 : index
    %127 = vector.load %arg4[%c0_56, %c0_57, %c0_58] : memref<3x64x96xf32, #tpu.memory_space<vmem>>, vector<1x64x96xf32>
    %128 = vector.shape_cast %127 : vector<1x64x96xf32> to vector<64x96xf32>
    %cst_59 = arith.constant dense<0.000000e+00> : vector<12x96xf32>
    %129 = tpu.matmul %126, %128, %cst_59 {dimension_numbers = #tpu.dot_dimension_numbers<[1], [0], [0], [1], [0, 0, 1, 1], [], []>, precision = #tpu.contract_precision<fp32>} : vector<12x64xf32>, vector<64x96xf32>, vector<12x96xf32> -> vector<12x96xf32>
    %130 = arith.addf %123, %129 : vector<12x96xf32>
    %131 = vector.extract_strided_slice %122 {offsets = [1, 0], sizes = [6, 64], strides = [1, 1]} : vector<16x64xf32> to vector<6x64xf32>
    %132 = vector.extract_strided_slice %122 {offsets = [9, 0], sizes = [6, 64], strides = [1, 1]} : vector<16x64xf32> to vector<6x64xf32>
    %133 = tpu.concatenate %131, %132 in 0 : vector<6x64xf32>, vector<6x64xf32> -> vector<12x64xf32>
    %c1_60 = arith.constant 1 : index
    %c0_61 = arith.constant 0 : index
    %c0_62 = arith.constant 0 : index
    %134 = vector.load %arg4[%c1_60, %c0_61, %c0_62] : memref<3x64x96xf32, #tpu.memory_space<vmem>>, vector<1x64x96xf32>
    %135 = vector.shape_cast %134 : vector<1x64x96xf32> to vector<64x96xf32>
    %cst_63 = arith.constant dense<0.000000e+00> : vector<12x96xf32>
    %136 = tpu.matmul %133, %135, %cst_63 {dimension_numbers = #tpu.dot_dimension_numbers<[1], [0], [0], [1], [0, 0, 1, 1], [], []>, precision = #tpu.contract_precision<fp32>} : vector<12x64xf32>, vector<64x96xf32>, vector<12x96xf32> -> vector<12x96xf32>
    %137 = arith.addf %130, %136 : vector<12x96xf32>
    %138 = vector.extract_strided_slice %122 {offsets = [2, 0], sizes = [6, 64], strides = [1, 1]} : vector<16x64xf32> to vector<6x64xf32>
    %139 = vector.extract_strided_slice %122 {offsets = [10, 0], sizes = [6, 64], strides = [1, 1]} : vector<16x64xf32> to vector<6x64xf32>
    %140 = tpu.concatenate %138, %139 in 0 : vector<6x64xf32>, vector<6x64xf32> -> vector<12x64xf32>
    %c2_64 = arith.constant 2 : index
    %c0_65 = arith.constant 0 : index
    %c0_66 = arith.constant 0 : index
    %141 = vector.load %arg4[%c2_64, %c0_65, %c0_66] : memref<3x64x96xf32, #tpu.memory_space<vmem>>, vector<1x64x96xf32>
    %142 = vector.shape_cast %141 : vector<1x64x96xf32> to vector<64x96xf32>
    %cst_67 = arith.constant dense<0.000000e+00> : vector<12x96xf32>
    %143 = tpu.matmul %140, %142, %cst_67 {dimension_numbers = #tpu.dot_dimension_numbers<[1], [0], [0], [1], [0, 0, 1, 1], [], []>, precision = #tpu.contract_precision<fp32>} : vector<12x64xf32>, vector<64x96xf32>, vector<12x96xf32> -> vector<12x96xf32>
    %144 = arith.addf %137, %143 : vector<12x96xf32>
    %c0_68 = arith.constant 0 : index
    %c0_69 = arith.constant 0 : index
    %145 = vector.load %arg5[%c0_68, %c0_69] : memref<1x96xf32, #tpu.memory_space<vmem>>, vector<1x96xf32>
    %146 = vector.broadcast %145 : vector<1x96xf32> to vector<12x96xf32>
    %147 = arith.addf %144, %146 : vector<12x96xf32>
    %cst_70 = arith.constant 0.000000e+00 : f32
    %148 = vector.broadcast %cst_70 : f32 to vector<12x96xf32>
    %149 = arith.maximumf %147, %148 : vector<12x96xf32>
    %150 = vector.extract_strided_slice %149 {offsets = [0, 0], sizes = [3, 96], strides = [1, 1]} : vector<12x96xf32> to vector<3x96xf32>
    %cst_71 = arith.constant dense<0xFF800000> : vector<96xf32>
    %151 = vector.multi_reduction <maximumf>, %150, %cst_71 [0] : vector<3x96xf32> to vector<96xf32>
    %152 = vector.shape_cast %151 : vector<96xf32> to vector<1x96xf32>
    %153 = vector.extract_strided_slice %152 {offsets = [0, 0], sizes = [1, 16], strides = [1, 1]} : vector<1x96xf32> to vector<1x16xf32>
    %154 = vector.extract_strided_slice %152 {offsets = [0, 16], sizes = [1, 16], strides = [1, 1]} : vector<1x96xf32> to vector<1x16xf32>
    %155 = arith.maximumf %153, %154 : vector<1x16xf32>
    %156 = vector.extract_strided_slice %152 {offsets = [0, 32], sizes = [1, 16], strides = [1, 1]} : vector<1x96xf32> to vector<1x16xf32>
    %157 = arith.maximumf %155, %156 : vector<1x16xf32>
    %158 = vector.extract_strided_slice %152 {offsets = [0, 48], sizes = [1, 16], strides = [1, 1]} : vector<1x96xf32> to vector<1x16xf32>
    %159 = vector.extract_strided_slice %152 {offsets = [0, 64], sizes = [1, 16], strides = [1, 1]} : vector<1x96xf32> to vector<1x16xf32>
    %160 = arith.maximumf %158, %159 : vector<1x16xf32>
    %161 = vector.extract_strided_slice %152 {offsets = [0, 80], sizes = [1, 16], strides = [1, 1]} : vector<1x96xf32> to vector<1x16xf32>
    %162 = arith.maximumf %160, %161 : vector<1x16xf32>
    %163 = vector.extract_strided_slice %149 {offsets = [3, 0], sizes = [3, 96], strides = [1, 1]} : vector<12x96xf32> to vector<3x96xf32>
    %cst_72 = arith.constant dense<0xFF800000> : vector<96xf32>
    %164 = vector.multi_reduction <maximumf>, %163, %cst_72 [0] : vector<3x96xf32> to vector<96xf32>
    %165 = vector.shape_cast %164 : vector<96xf32> to vector<1x96xf32>
    %166 = vector.extract_strided_slice %165 {offsets = [0, 0], sizes = [1, 16], strides = [1, 1]} : vector<1x96xf32> to vector<1x16xf32>
    %167 = vector.extract_strided_slice %165 {offsets = [0, 16], sizes = [1, 16], strides = [1, 1]} : vector<1x96xf32> to vector<1x16xf32>
    %168 = arith.maximumf %166, %167 : vector<1x16xf32>
    %169 = vector.extract_strided_slice %165 {offsets = [0, 32], sizes = [1, 16], strides = [1, 1]} : vector<1x96xf32> to vector<1x16xf32>
    %170 = arith.maximumf %168, %169 : vector<1x16xf32>
    %171 = vector.extract_strided_slice %165 {offsets = [0, 48], sizes = [1, 16], strides = [1, 1]} : vector<1x96xf32> to vector<1x16xf32>
    %172 = vector.extract_strided_slice %165 {offsets = [0, 64], sizes = [1, 16], strides = [1, 1]} : vector<1x96xf32> to vector<1x16xf32>
    %173 = arith.maximumf %171, %172 : vector<1x16xf32>
    %174 = vector.extract_strided_slice %165 {offsets = [0, 80], sizes = [1, 16], strides = [1, 1]} : vector<1x96xf32> to vector<1x16xf32>
    %175 = arith.maximumf %173, %174 : vector<1x16xf32>
    %176 = tpu.concatenate %157, %162, %170, %175 in 1 : vector<1x16xf32>, vector<1x16xf32>, vector<1x16xf32>, vector<1x16xf32> -> vector<1x64xf32>
    %177 = vector.extract_strided_slice %149 {offsets = [6, 0], sizes = [3, 96], strides = [1, 1]} : vector<12x96xf32> to vector<3x96xf32>
    %cst_73 = arith.constant dense<0xFF800000> : vector<96xf32>
    %178 = vector.multi_reduction <maximumf>, %177, %cst_73 [0] : vector<3x96xf32> to vector<96xf32>
    %179 = vector.shape_cast %178 : vector<96xf32> to vector<1x96xf32>
    %180 = vector.extract_strided_slice %179 {offsets = [0, 0], sizes = [1, 16], strides = [1, 1]} : vector<1x96xf32> to vector<1x16xf32>
    %181 = vector.extract_strided_slice %179 {offsets = [0, 16], sizes = [1, 16], strides = [1, 1]} : vector<1x96xf32> to vector<1x16xf32>
    %182 = arith.maximumf %180, %181 : vector<1x16xf32>
    %183 = vector.extract_strided_slice %179 {offsets = [0, 32], sizes = [1, 16], strides = [1, 1]} : vector<1x96xf32> to vector<1x16xf32>
    %184 = arith.maximumf %182, %183 : vector<1x16xf32>
    %185 = vector.extract_strided_slice %179 {offsets = [0, 48], sizes = [1, 16], strides = [1, 1]} : vector<1x96xf32> to vector<1x16xf32>
    %186 = vector.extract_strided_slice %179 {offsets = [0, 64], sizes = [1, 16], strides = [1, 1]} : vector<1x96xf32> to vector<1x16xf32>
    %187 = arith.maximumf %185, %186 : vector<1x16xf32>
    %188 = vector.extract_strided_slice %179 {offsets = [0, 80], sizes = [1, 16], strides = [1, 1]} : vector<1x96xf32> to vector<1x16xf32>
    %189 = arith.maximumf %187, %188 : vector<1x16xf32>
    %190 = vector.extract_strided_slice %149 {offsets = [9, 0], sizes = [3, 96], strides = [1, 1]} : vector<12x96xf32> to vector<3x96xf32>
    %cst_74 = arith.constant dense<0xFF800000> : vector<96xf32>
    %191 = vector.multi_reduction <maximumf>, %190, %cst_74 [0] : vector<3x96xf32> to vector<96xf32>
    %192 = vector.shape_cast %191 : vector<96xf32> to vector<1x96xf32>
    %193 = vector.extract_strided_slice %192 {offsets = [0, 0], sizes = [1, 16], strides = [1, 1]} : vector<1x96xf32> to vector<1x16xf32>
    %194 = vector.extract_strided_slice %192 {offsets = [0, 16], sizes = [1, 16], strides = [1, 1]} : vector<1x96xf32> to vector<1x16xf32>
    %195 = arith.maximumf %193, %194 : vector<1x16xf32>
    %196 = vector.extract_strided_slice %192 {offsets = [0, 32], sizes = [1, 16], strides = [1, 1]} : vector<1x96xf32> to vector<1x16xf32>
    %197 = arith.maximumf %195, %196 : vector<1x16xf32>
    %198 = vector.extract_strided_slice %192 {offsets = [0, 48], sizes = [1, 16], strides = [1, 1]} : vector<1x96xf32> to vector<1x16xf32>
    %199 = vector.extract_strided_slice %192 {offsets = [0, 64], sizes = [1, 16], strides = [1, 1]} : vector<1x96xf32> to vector<1x16xf32>
    %200 = arith.maximumf %198, %199 : vector<1x16xf32>
    %201 = vector.extract_strided_slice %192 {offsets = [0, 80], sizes = [1, 16], strides = [1, 1]} : vector<1x96xf32> to vector<1x16xf32>
    %202 = arith.maximumf %200, %201 : vector<1x16xf32>
    %203 = tpu.concatenate %184, %189, %197, %202 in 1 : vector<1x16xf32>, vector<1x16xf32>, vector<1x16xf32>, vector<1x16xf32> -> vector<1x64xf32>
    %204 = tpu.concatenate %176, %203 in 0 : vector<1x64xf32>, vector<1x64xf32> -> vector<2x64xf32>
    %c0_75 = arith.constant 0 : index
    %c0_76 = arith.constant 0 : index
    %205 = vector.load %arg6[%c0_75, %c0_76] : memref<64x256xf32, #tpu.memory_space<vmem>>, vector<64x256xf32>
    %cst_77 = arith.constant dense<0.000000e+00> : vector<2x256xf32>
    %206 = tpu.matmul %204, %205, %cst_77 {dimension_numbers = #tpu.dot_dimension_numbers<[1], [0], [0], [1], [0, 0, 1, 1], [], []>, precision = #tpu.contract_precision<fp32>} : vector<2x64xf32>, vector<64x256xf32>, vector<2x256xf32> -> vector<2x256xf32>
    %c0_78 = arith.constant 0 : index
    %c0_79 = arith.constant 0 : index
    %207 = vector.load %arg7[%c0_78, %c0_79] : memref<1x256xf32, #tpu.memory_space<vmem>>, vector<1x256xf32>
    %208 = vector.broadcast %207 : vector<1x256xf32> to vector<2x256xf32>
    %209 = arith.addf %206, %208 : vector<2x256xf32>
    %cst_80 = arith.constant 0.000000e+00 : f32
    %210 = vector.broadcast %cst_80 : f32 to vector<2x256xf32>
    %211 = arith.maximumf %209, %210 : vector<2x256xf32>
    %c0_81 = arith.constant 0 : index
    %c0_82 = arith.constant 0 : index
    %212 = vector.load %arg8[%c0_81, %c0_82] : memref<256x128xf32, #tpu.memory_space<vmem>>, vector<256x128xf32>
    %cst_83 = arith.constant dense<0.000000e+00> : vector<2x128xf32>
    %213 = tpu.matmul %211, %212, %cst_83 {dimension_numbers = #tpu.dot_dimension_numbers<[1], [0], [0], [1], [0, 0, 1, 1], [], []>, precision = #tpu.contract_precision<fp32>} : vector<2x256xf32>, vector<256x128xf32>, vector<2x128xf32> -> vector<2x128xf32>
    %c0_84 = arith.constant 0 : index
    %c0_85 = arith.constant 0 : index
    %214 = vector.load %arg9[%c0_84, %c0_85] : memref<1x128xf32, #tpu.memory_space<vmem>>, vector<1x128xf32>
    %215 = vector.broadcast %214 : vector<1x128xf32> to vector<2x128xf32>
    %216 = arith.addf %213, %215 : vector<2x128xf32>
    %cst_86 = arith.constant 0.000000e+00 : f32
    %217 = vector.broadcast %cst_86 : f32 to vector<2x128xf32>
    %218 = arith.maximumf %216, %217 : vector<2x128xf32>
    %c0_87 = arith.constant 0 : index
    %c0_88 = arith.constant 0 : index
    %219 = vector.load %arg10[%c0_87, %c0_88] : memref<128x128xf32, #tpu.memory_space<vmem>>, vector<128x128xf32>
    %cst_89 = arith.constant dense<0.000000e+00> : vector<2x128xf32>
    %220 = tpu.matmul %218, %219, %cst_89 {dimension_numbers = #tpu.dot_dimension_numbers<[1], [0], [0], [1], [0, 0, 1, 1], [], []>, precision = #tpu.contract_precision<fp32>} : vector<2x128xf32>, vector<128x128xf32>, vector<2x128xf32> -> vector<2x128xf32>
    %c0_90 = arith.constant 0 : index
    %c0_91 = arith.constant 0 : index
    %221 = vector.load %arg11[%c0_90, %c0_91] : memref<1x128xf32, #tpu.memory_space<vmem>>, vector<1x128xf32>
    %222 = vector.broadcast %221 : vector<1x128xf32> to vector<2x128xf32>
    %223 = arith.addf %220, %222 : vector<2x128xf32>
    %c0_92 = arith.constant 0 : index
    %c0_93 = arith.constant 0 : index
    %224 = vector.load %arg12[%c0_92, %c0_93] : memref<2x128xf32, #tpu.memory_space<vmem>>, vector<2x128xf32>
    tpu.vector_store %arg12[%c0_92, %c0_93], %223 {strides = array<i32>} : memref<2x128xf32, #tpu.memory_space<vmem>>, vector<2x128xf32>,
    return
  }
  func.func @transform_0(%arg0: i32) -> (i32, i32, i32, i32) {
    %c0_i32 = arith.constant 0 : i32
    %c0_i32_0 = arith.constant 0 : i32
    %c0_i32_1 = arith.constant 0 : i32
    %c0_i32_2 = arith.constant 0 : i32
    %c0_i32_3 = arith.constant 0 : i32
    return %c0_i32, %c0_i32_0, %c0_i32_1, %c0_i32_2 : i32, i32, i32, i32
  }
  func.func @transform_1(%arg0: i32) -> (i32, i32, i32, i32) {
    %c0_i32 = arith.constant 0 : i32
    %c0_i32_0 = arith.constant 0 : i32
    %c0_i32_1 = arith.constant 0 : i32
    %c0_i32_2 = arith.constant 0 : i32
    %c0_i32_3 = arith.constant 0 : i32
    return %c0_i32, %c0_i32_0, %c0_i32_1, %c0_i32_2 : i32, i32, i32, i32
  }
  func.func @transform_2(%arg0: i32) -> (i32, i32) {
    %c0_i32 = arith.constant 0 : i32
    %c0_i32_0 = arith.constant 0 : i32
    %c0_i32_1 = arith.constant 0 : i32
    return %c0_i32, %c0_i32_0 : i32, i32
  }
  func.func @transform_3(%arg0: i32) -> (i32, i32, i32) {
    %c0_i32 = arith.constant 0 : i32
    %c0_i32_0 = arith.constant 0 : i32
    %c0_i32_1 = arith.constant 0 : i32
    %c0_i32_2 = arith.constant 0 : i32
    return %c0_i32, %c0_i32_0, %c0_i32_1 : i32, i32, i32
  }
  func.func @transform_4(%arg0: i32) -> (i32, i32) {
    %c0_i32 = arith.constant 0 : i32
    %c0_i32_0 = arith.constant 0 : i32
    %c0_i32_1 = arith.constant 0 : i32
    return %c0_i32, %c0_i32_0 : i32, i32
  }
  func.func @transform_5(%arg0: i32) -> (i32, i32) {
    %c0_i32 = arith.constant 0 : i32
    %c0_i32_0 = arith.constant 0 : i32
    %c0_i32_1 = arith.constant 0 : i32
    return %c0_i32, %c0_i32_0 : i32, i32
  }
  func.func @transform_6(%arg0: i32) -> (i32, i32) {
    %c0_i32 = arith.constant 0 : i32
    %c0_i32_0 = arith.constant 0 : i32
    %c0_i32_1 = arith.constant 0 : i32
    return %c0_i32, %c0_i32_0 : i32, i32
  }
  func.func @transform_7(%arg0: i32) -> (i32, i32) {
    %c0_i32 = arith.constant 0 : i32
    %c0_i32_0 = arith.constant 0 : i32
    %c0_i32_1 = arith.constant 0 : i32
    return %c0_i32, %c0_i32_0 : i32, i32
  }
  func.func @transform_8(%arg0: i32) -> (i32, i32) {
    %c0_i32 = arith.constant 0 : i32
    %c0_i32_0 = arith.constant 0 : i32
    %c0_i32_1 = arith.constant 0 : i32
    return %c0_i32, %c0_i32_0 : i32, i32
  }
  func.func @transform_9(%arg0: i32) -> (i32, i32) {
    %c0_i32 = arith.constant 0 : i32
    %c0_i32_0 = arith.constant 0 : i32
    %c0_i32_1 = arith.constant 0 : i32
    return %c0_i32, %c0_i32_0 : i32, i32
  }
  func.func @transform_10(%arg0: i32) -> (i32, i32) {
    %c0_i32 = arith.constant 0 : i32
    %c0_i32_0 = arith.constant 0 : i32
    %c0_i32_1 = arith.constant 0 : i32
    return %c0_i32, %c0_i32_0 : i32, i32
  }
  func.func @transform_11(%arg0: i32) -> (i32, i32) {
    %c0_i32 = arith.constant 0 : i32
    %c0_i32_0 = arith.constant 0 : i32
    %c0_i32_1 = arith.constant 0 : i32
    return %c0_i32, %c0_i32_0 : i32, i32
  }
}

</mosaic_0001>

<bundles_post_ra>
// kernel: mltnet_forward.1
= control target key start
LH: loop header
LB: loop body
LE: loop exit
PB: predicated region body
PF: predicated region fallthrough
CT: control target
= control target key end

     0   :  { %16 = vsyncpa [#allocation3], 0  ;;  %s12096_s0 = inlined_call_operand.vmem [shape: f32[2,1,28,28], index: 0, kind: input, shape index: {}]   ;;  %s12097_s1 = inlined_call_operand.vmem [shape: f32[1,3,28,192], index: 1, kind: input, shape index: {}]   ;;  %s12098_s2 = inlined_call_operand.vmem [shape: f32[1,192], index: 2, kind: input, shape index: {}]   ;;  %s12099_s3 = inlined_call_operand.vmem [shape: f32[3,64,96], index: 3, kind: input, shape index: {}]   ;;  %s12100_s4 = inlined_call_operand.vmem [shape: f32[1,96], index: 4, kind: input, shape index: {}]   ;;  %s12101_s5 = inlined_call_operand.hbm [shape: f32[64,256], index: 5, kind: input, shape index: {}]   ;;  %s12102_s6 = inlined_call_operand.vmem [shape: f32[1,256], index: 6, kind: input, shape index: {}]   ;;  %s12103_s7 = inlined_call_operand.vmem [shape: f32[256,128], index: 7, kind: input, shape index: {}]   ;;  %s12104_s8 = inlined_call_operand.vmem [shape: f32[1,128], index: 8, kind: input, shape index: {}]   ;;  %s12105_s9 = inlined_call_operand.hbm [shape: f32[128,128], index: 9, kind: input, shape index: {}]   ;;  %s12106_s10 = inlined_call_operand.vmem [shape: f32[1,128], index: 10, kind: input, shape index: {}]   ;;  %s12107_s11 = inlined_call_operand.vmem [shape: f32[2,128], index: 11, kind: output, shape index: {}]  }
   0x1   :  { %17 = vsyncpa [#allocation5], 0  ;;  %s9434_s17 = smov [#allocation2]   ;;  %s9386_s21 = scalar_lea.hbm %s12101_s5, 2048 }
   0x2   :  { %s33_s18 = sshll.u32 %s9434_s17, 4  ;;  %p9387_p0 = scmp.ne.s32.totalorder %s12101_s5, %s9386_s21  ;;  %s34_s18 = int_to_ptr.vmem [resolvable:$true] %s33_s18 }
   0x3   :  { %p9390_p1 = scmp.lt.u32.totalorder %s9386_s21, %s12101_s5 }
   0x5   :  { %p9392_p2 = pnand %p9390_p1, %p9387_p0 }
   0x7   :  { %9395 = shalt.err (!%p9392_p2)
}
   0x8   :  { %s9396_s26 = scalar_lea.vmem %s34_s18, 2048  ;;  %p9401_p4 = scmp.lt.s32.totalorder %s34_s18, %s34_s18 }
   0x9   :  { %p9397_p3 = scmp.ne.s32.totalorder %s34_s18, %s9396_s26  ;;  %p9402_p5 = scmp.lt.s32.totalorder %s9396_s26, %s9396_s26 }
   0xb   :  { %p9403_p6 = por %p9402_p5, %p9401_p4 }
   0xd   :  { %p9404_p7 = pnand %p9403_p6, %p9397_p3 }
   0xf   :  { %9407 = shalt.err (!%p9404_p7)
}
  0x10   :  { %s9435_s27 = smov 256   ;;  %s9436_s28 = smov 16  }
  0x11   :  { %39 = dma.hbm_to_vmem [thread:$0]  %s12101_s5, 2048, %s34_s18, [#allocation3], %s9435_s27, %s9435_s27, %s9436_s28  }
  0x12   :  { %s9437_s12 = smov [#allocation4]   ;;  %s9408_s16 = scalar_lea.hbm %s12105_s9, 2048 }
  0x13   :  { %s51_s13 = sshll.u32 %s9437_s12, 4  ;;  %p9409_p8 = scmp.ne.s32.totalorder %s12105_s9, %s9408_s16  ;;  %s52_s13 = int_to_ptr.vmem [resolvable:$true] %s51_s13 }
  0x14   :  { %p9412_p9 = scmp.lt.u32.totalorder %s9408_s16, %s12105_s9 }
  0x16   :  { %p9414_p10 = pnand %p9412_p9, %p9409_p8 }
  0x18   :  { %9417 = shalt.err (!%p9414_p10)
}
  0x19   :  { %s9418_s22 = scalar_lea.vmem %s52_s13, 2048  ;;  %p9423_p12 = scmp.lt.s32.totalorder %s52_s13, %s52_s13 }
  0x1a   :  { %p9419_p11 = scmp.ne.s32.totalorder %s52_s13, %s9418_s22  ;;  %p9424_p13 = scmp.lt.s32.totalorder %s9418_s22, %s9418_s22 }
  0x1c   :  { %p9425_p0 = por %p9424_p13, %p9423_p12 }
  0x1e   :  { %p9426_p1 = pnand %p9425_p0, %p9419_p11 }
  0x20   :  { %9429 = shalt.err (!%p9426_p1)
}
  0x21   :  { %s9438_s5 = smov 128   ;;  %s9439_s18 = smov 8  }
  0x22   :  { %57 = dma.hbm_to_vmem [thread:$0]  %s12105_s9, 2048, %s52_s13, [#allocation5], %s9438_s5, %s9438_s5, %s9439_s18  }
  0x23   :  { %9430 = dma.done.wait [#allocation3], 2048  }
  0x24   :  { %9431 = vsyncadd [#allocation3], 4294965248 }
  0x25   :  { %9432 = dma.done.wait [#allocation5], 2048  }
  0x26   :  { %9433 = vsyncadd [#allocation5], 4294965248  ;;  %v12116_v0 = vmov 0.0   ;;  %v7164_v1 = vld [vmem:[%s12097_s1 + $0x48] sm:$0xff]  ;;  %v7166_v2 = vld [vmem:[%s12097_s1 + $0x58] sm:$0xff]  ;;  %vm12108_vm0 = vcmask 1043456  }
  0x27   :  { %194 = vmatprep.mubr.f32.mxu0 %v12116_v0  ;;  %v7163_v3 = vld [vmem:[%s12097_s1 + $0x40] sm:$0xff]  ;;  %vm96_vm1 = vcmask 228352   ;;  %v122_v4 = vand.u32 4294901760, %v7164_v1  ;;  %v126_v5 = vand.u32 4294901760, %v7166_v2  ;;  %v7165_v6 = vld [vmem:[%s12097_s1 + $0x50] sm:$0xff]  ;;  %v7168_v8 = vld [vmem:[%s12097_s1 + $0x68] sm:$0xff] }
  0x28   :  { %v124_v7 = vand.u32 4294901760, %v7163_v3  ;;  %v7167_v9 = vld [vmem:[%s12097_s1 + $0x60] sm:$0xff]  ;;  %v128_v10 = vand.u32 4294901760, %v7165_v6  ;;  %v7170_v11 = vld [vmem:[%s12097_s1 + $0x78] sm:$0xf]  ;;  %v130_v12 = vand.u32 4294901760, %v7168_v8 }
  0x29   :  { %v7169_v13 = vld [vmem:[%s12097_s1 + $0x70] sm:$0xf]  ;;  %v9560_v14 = vpack.c.bf16 %v126_v5, %v122_v4  ;;  %v9562_v15 = vsub.f32 %v7164_v1, %v122_v4  ;;  %v9564_v16 = vsub.f32 %v7166_v2, %v126_v5  ;;  %v81_v18 = vld [vmem:[%s12096_s0 + $0x1] sm:$0xff]  ;;  %v120_v21 = vsel %vm12108_vm0, %v7170_v11, 0  ;;  %s9442_s30 = smov 120   ;;  %s9443_s12 = smov 96  }
  0x2a   :  { %v9566_v17 = vsub.f32 %v7163_v3, %v124_v7  ;;  %v9571_v19 = vpack.c.bf16 %v128_v10, %v124_v7  ;;  %v9573_v20 = vsub.f32 %v7165_v6, %v128_v10  ;;  %v9576_v22 = vsub.f32 %v7168_v8, %v130_v12  ;;  %v82_v31 = vld [vmem:[%s12096_s0 + $0x9] sm:$0xff]  ;;  %v83_v36 = vld [vmem:[%s12096_s0 + $0x11] sm:$0xff]  ;;  %v7160_v45 = vld [vmem:[%s12096_s0 + $0x21] sm:$0xff]  ;;  %s9444_s9 = smov 80   ;;  %s9445_s17 = smov 64  }
  0x2b   :  { %8246 = vmatprep.subr.bf16.mxu0 %v9560_v14  ;;  %v134_v23 = vand.u32 4294901760, %v120_v21  ;;  %v117_v24 = vsel %vm12108_vm0, %v7169_v13, 0  ;;  %v132_v25 = vand.u32 4294901760, %v7167_v9  ;;  %v98_v26 = vsel %vm96_vm1, %v81_v18, 0  ;;  %v7161_v3 = vld [vmem:[%s12096_s0 + $0x29] sm:$0xff]  ;;  %s9446_s24 = smov 48  }
  0x2c   :  { %8248 = vmatpush1.bf16.msra.mxu0 %v9571_v19  ;;  %v136_v27 = vand.u32 4294901760, %v117_v24  ;;  %v9582_v28 = vand.u32 4294901760, %v98_v26  ;;  %v263_v29 = vand.u32 4294901760, %v9562_v15  ;;  %v275_v30 = vand.u32 4294901760, %v9564_v16  ;;  %s9447_s25 = smov 32  }
  0x2d   :  { %v9589_v32 = vpack.c.bf16 %v134_v23, %v130_v12  ;;  %v9591_v33 = vsub.f32 %v120_v21, %v134_v23  ;;  %v9593_v34 = vsub.f32 %v7167_v9, %v132_v25  ;;  %v269_v35 = vand.u32 4294901760, %v9566_v17  ;;  %v7162_v12 = vld [vmem:[%s12096_s0 + $0x31] sm:$0xff] }
  0x2e   :  { %v9599_v37 = vpack.c.bf16 %v136_v27, %v132_v25  ;;  %v9601_v38 = vsub.f32 %v117_v24, %v136_v27  ;;  %v9604_v39 = vsub.f32 %v98_v26, %v9582_v28  ;;  %v264_v40 = vsub.f32 %v9562_v15, %v263_v29 }
  0x2f   :  { %8250 = vmatprep.subr.bf16.mxu0 %v9589_v32  ;;  %v276_v41 = vsub.f32 %v9564_v16, %v275_v30  ;;  %v270_v42 = vsub.f32 %v9566_v17, %v269_v35  ;;  %v281_v43 = vand.u32 4294901760, %v9573_v20  ;;  %v101_v44 = vsel %vm96_vm1, %v82_v31, 0 }
  0x30   :  { %8252 = vmatpush1.bf16.msra.mxu0 %v9599_v37  ;;  %v197_v46 = vand.u32 4294901760, %v9604_v39  ;;  %v265_v47 = vand.u32 4294901760, %v264_v40  ;;  %v9623_v48 = vand.u32 4294901760, %v101_v44  ;;  %v104_v49 = vsel %vm96_vm1, %v83_v36, 0 }
  0x31   :  { %v277_v50 = vand.u32 4294901760, %v276_v41  ;;  %v271_v51 = vand.u32 4294901760, %v270_v42  ;;  %v282_v52 = vsub.f32 %v9573_v20, %v281_v43  ;;  %v9627_v53 = vand.u32 4294901760, %v104_v49 }
  0x32   :  { %v198_v54 = vsub.f32 %v9604_v39, %v197_v46  ;;  %v9633_v55 = vsub.f32 %v101_v44, %v9623_v48  ;;  %v107_v56 = vsel %vm96_vm1, %v7160_v45, 0  ;;  %v287_v57 = vand.u32 4294901760, %v9576_v22 }
  0x33   :  { %v8253_v58 = vpack.c.bf16 %v277_v50, %v265_v47  ;;  %v283_v59 = vand.u32 4294901760, %v282_v52  ;;  %v9638_v60 = vsub.f32 %v104_v49, %v9627_v53  ;;  %v9640_v61 = vand.u32 4294901760, %v107_v56 }
  0x34   :  { %v199_v62 = vand.u32 4294901760, %v198_v54  ;;  %v208_v63 = vand.u32 4294901760, %v9633_v55  ;;  %v288_v1 = vsub.f32 %v9576_v22, %v287_v57  ;;  %v299_v2 = vand.u32 4294901760, %v9591_v33 }
  0x35   :  { %8254 = vmatprep.subr.bf16.mxu0 %v8253_v58  ;;  %v8255_v4 = vpack.c.bf16 %v283_v59, %v271_v51  ;;  %v219_v5 = vand.u32 4294901760, %v9638_v60  ;;  %v9650_v6 = vsub.f32 %v107_v56, %v9640_v61  ;;  %v293_v7 = vand.u32 4294901760, %v9593_v34 }
  0x36   :  { %200 = vmatmul.mubr.f32.vlgmr.msra.gmra.mrb[0].mxu0 %v199_v62  ;;  %v209_v8 = vsub.f32 %v9633_v55, %v208_v63  ;;  %v289_v9 = vand.u32 4294901760, %v288_v1  ;;  %v300_v10 = vsub.f32 %v9591_v33, %v299_v2  ;;  %v305_v11 = vand.u32 4294901760, %v9601_v38 }
  0x37   :  { %8256 = vmatpush1.bf16.msra.mxu0 %v8255_v4  ;;  %205 = vmatprep.mubr.f32.mxu0 %v12116_v0  ;;  %v220_v13 = vsub.f32 %v9638_v60, %v219_v5  ;;  %v230_v18 = vand.u32 4294901760, %v9650_v6  ;;  %v294_v21 = vsub.f32 %v9593_v34, %v293_v7  ;;  %v110_v23 = vsel %vm96_vm1, %v7161_v3, 0 }
  0x38   :  { %v210_v24 = vand.u32 4294901760, %v209_v8  ;;  %v301_v25 = vand.u32 4294901760, %v300_v10  ;;  %v306_v26 = vsub.f32 %v9601_v38, %v305_v11  ;;  %v9669_v27 = vand.u32 4294901760, %v110_v23 }
  0x39   :  { %v221_v31 = vand.u32 4294901760, %v220_v13  ;;  %v231_v36 = vsub.f32 %v9650_v6, %v230_v18  ;;  %v295_v40 = vand.u32 4294901760, %v294_v21  ;;  %v113_v41 = vsel %vm96_vm1, %v7162_v12, 0 }
  0x3a   :  { %211 = vmatmul.mubr.f32.gmra.mrb[2].mxu0 %v210_v24  ;;  %v8257_v42 = vpack.c.bf16 %v301_v25, %v289_v9  ;;  %v307_v44 = vand.u32 4294901760, %v306_v26  ;;  %v9676_v45 = vsub.f32 %v110_v23, %v9669_v27  ;;  %v9678_v47 = vand.u32 4294901760, %v113_v41  ;;  %v67_v26 = vld [vmem:[%s12096_s0 + $0x8] sm:$0xff] }
  0x3b   :  { %216 = vmatprep.mubr.f32.mxu0 %v12116_v0  ;;  %v8261_v52 = vpack.c.bf16 %v9564_v16, %v9562_v15  ;;  %v8279_v54 = vpack.c.bf16 %v281_v43, %v269_v35  ;;  %v8281_v56 = vpack.c.bf16 %v299_v2, %v287_v57  ;;  %v8283_v58 = vpack.c.bf16 %v305_v11, %v293_v7  ;;  %v74_v15 = vld [vmem:[%s12097_s1 + $0x8] sm:$0xff] }
  0x3c   :  { %8258 = vmatprep.subr.bf16.mxu0 %v8257_v42  ;;  %v8259_v49 = vpack.c.bf16 %v307_v44, %v295_v40  ;;  %v241_v50 = vand.u32 4294901760, %v9676_v45  ;;  %v9683_v51 = vsub.f32 %v113_v41, %v9678_v47  ;;  %v232_v59 = vand.u32 4294901760, %v231_v36 }
  0x3d   :  { %v8263_v57 = vpack.c.bf16 %v9573_v20, %v9566_v17  ;;  %v8265_v2 = vpack.c.bf16 %v9591_v33, %v9576_v22  ;;  %v8267_v4 = vpack.c.bf16 %v9601_v38, %v9593_v34  ;;  %v8277_v17 = vpack.c.bf16 %v275_v30, %v263_v29  ;;  %v80_v30 = vld [vmem:[%s12097_s1 + $0x38] sm:$0xf]  ;;  %v75_v33 = vld [vmem:[%s12097_s1 + $0x10] sm:$0xff]  ;;  %v78_v34 = vld [vmem:[%s12097_s1 + $0x28] sm:$0xff] }
  0x3e   :  { %222 = vmatmul.mubr.f32.gmra.mrb[4].mxu0 %v221_v31  ;;  %v242_v62 = vsub.f32 %v9676_v45, %v241_v50  ;;  %v252_v1 = vand.u32 4294901760, %v9683_v51  ;;  %v934_v16 = vand.u32 4294901760, %v74_v15  ;;  %v914_v40 = vsel %vm96_vm1, %v67_v26, 0 }
  0x3f   :  { %227 = vmatprep.mubr.f32.mxu0 %v12116_v0  ;;  %8260 = vmatpush1.bf16.msra.mxu0 %v8259_v49  ;;  %vm12113_vm2 = vcmask 1042432   ;;  %vm2613_vm3 = vcmask 1045507   ;;  %vm2629_vm4 = vcmask 1047558   ;;  %vm2605_vm5 = vcmask 518144  }
  0x40   :  { %8262 = vmatprep.subr.bf16.mxu0 %v8261_v52  ;;  %v243_v3 = vand.u32 4294901760, %v242_v62  ;;  %v253_v35 = vsub.f32 %v9683_v51, %v252_v1  ;;  %v9775_v29 = vsub.f32 %v74_v15, %v934_v16  ;;  %v7158_v15 = vld [vmem:[%s12096_s0 + $0x28] sm:$0xff]  ;;  %vm2621_vm6 = vcmask 521219  }
  0x41   :  { %vm12112_vm7 = vcmask 523270   ;;  %vm2631_vm8 = vcmask 1040384   ;;  %vm12110_vm9 = vcmask 1043457   ;;  %vm12109_vm10 = vcmask 1046532  }
  0x42   :  { %233 = vmatmul.mubr.f32.gmra.mrb[6].mxu0 %v232_v59  ;;  %v254_v43 = vand.u32 4294901760, %v253_v35  ;;  %vm12111_vm11 = vcmask 516096   ;;  %vm2659_vm12 = vcmask 519169   ;;  %vm2675_vm13 = vcmask 522244  }
  0x43   :  { %238 = vmatprep.mubr.f32.mxu0 %v12116_v0  ;;  %vm2683_vm14 = vcmask 1047559   ;;  %vm2685_vm15 = vcmask 1041408  }
  0x46   :  { %244 = vmatmul.mubr.f32.gmra.mrb[8].mxu0 %v243_v3 }
  0x47   :  { %249 = vmatprep.mubr.f32.mxu0 %v12116_v0 }
  0x4a   :  { %255 = vmatmul.mubr.f32.gmra.mrb[10].mxu0 %v254_v43 }
  0x4b   :  { %365 = vmatprep.mubr.f32.mxu0 %v12116_v0 }
  0x4e   :  { %367 = vmatmul.mubr.f32.vlgmr.msra.gmra.mrb[0].mxu0 %v9582_v28 }
  0x4f   :  { %8264 = vmatpush1.bf16.msra.mxu0 %v8263_v57  ;;  %372 = vmatprep.mubr.f32.mxu0 %v12116_v0 }
  0x50   :  { %8266 = vmatprep.subr.bf16.mxu0 %v8265_v2 }
  0x52   :  { %374 = vmatmul.mubr.f32.gmra.mrb[2].mxu0 %v9623_v48 }
  0x53   :  { %379 = vmatprep.mubr.f32.mxu0 %v12116_v0  ;;  %8268 = vmatpush1.bf16.msra.mxu0 %v8267_v4 }
  0x54   :  { %8270 = vmatprep.subr.bf16.mxu0 %v9560_v14 }
  0x56   :  { %381 = vmatmul.mubr.f32.gmra.mrb[4].mxu0 %v9627_v53 }
  0x57   :  { %386 = vmatprep.mubr.f32.mxu0 %v12116_v0 }
  0x5a   :  { %388 = vmatmul.mubr.f32.gmra.mrb[6].mxu0 %v9640_v61 }
  0x5b   :  { %393 = vmatprep.mubr.f32.mxu0 %v12116_v0 }
  0x5e   :  { %395 = vmatmul.mubr.f32.gmra.mrb[8].mxu0 %v9669_v27 }
  0x5f   :  { %400 = vmatprep.mubr.f32.mxu0 %v12116_v0 }
  0x62   :  { %402 = vmatmul.mubr.f32.gmra.mrb[10].mxu0 %v9678_v47 }
  0x63   :  { %488 = vmatprep.mubr.f32.mxu0 %v12116_v0 }
  0x66   :  { %491 = vmatmul.mubr.f32.vlgmr.msra.gmra.mrb[0].mxu0 %v9604_v39  ;;  %v932_v39 = vsel %vm12108_vm0, %v80_v30, 0 }
  0x67   :  { %8272 = vmatpush1.bf16.msra.mxu0 %v9571_v19  ;;  %496 = vmatprep.mubr.f32.mxu0 %v12116_v0 }
  0x68   :  { %8274 = vmatprep.subr.bf16.mxu0 %v9589_v32 }
  0x6a   :  { %499 = vmatmul.mubr.f32.gmra.mrb[2].mxu0 %v9633_v55 }
  0x6b   :  { %504 = vmatprep.mubr.f32.mxu0 %v12116_v0  ;;  %8276 = vmatpush1.bf16.msra.mxu0 %v9599_v37 }
  0x6c   :  { %8278 = vmatprep.subr.bf16.mxu0 %v8277_v17 }
  0x6e   :  { %507 = vmatmul.mubr.f32.gmra.mrb[4].mxu0 %v9638_v60  ;;  %v940_v60 = vand.u32 4294901760, %v75_v33 }
  0x6f   :  { %512 = vmatprep.mubr.f32.mxu0 %v12116_v0 }
  0x70   :  { %v9836_v41 = vsub.f32 %v75_v33, %v940_v60 }
  0x72   :  { %515 = vmatmul.mubr.f32.gmra.mrb[6].mxu0 %v9650_v6  ;;  %v77_v6 = vld [vmem:[%s12097_s1 + $0x20] sm:$0xff] }
  0x73   :  { %520 = vmatprep.mubr.f32.mxu0 %v12116_v0  ;;  %v944_v11 = vand.u32 4294901760, %v77_v6 }
  0x76   :  { %523 = vmatmul.mubr.f32.gmra.mrb[8].mxu0 %v9676_v45  ;;  %v68_v45 = vld [vmem:[%s12096_s0 + $0x10] sm:$0xff] }
  0x77   :  { %528 = vmatprep.mubr.f32.mxu0 %v12116_v0 }
  0x7a   :  { %531 = vmatmul.mubr.f32.gmra.mrb[10].mxu0 %v9683_v51  ;;  %v9855_v51 = vsub.f32 %v77_v6, %v944_v11 }
  0x7b   :  { %609 = vmatprep.mubr.f32.mxu0 %v12116_v0 }
  0x7c   :  { %v1105_v2 = vand.u32 4294901760, %v9855_v51 }
  0x7e   :  { %613 = vmatmul.mubr.f32.vlgmr.msra.gmra.mrb[0].mxu0 %v197_v46  ;;  %v79_v46 = vld [vmem:[%s12097_s1 + $0x30] sm:$0xf] }
  0x7f   :  { %8280 = vmatpush1.bf16.msra.mxu0 %v8279_v54  ;;  %618 = vmatprep.mubr.f32.mxu0 %v12116_v0  ;;  %v929_v7 = vsel %vm12108_vm0, %v79_v46, 0  ;;  %v1093_v54 = vand.u32 4294901760, %v9836_v41 }
  0x80   :  { %8282 = vmatprep.subr.bf16.mxu0 %v8281_v56  ;;  %v948_v12 = vand.u32 4294901760, %v929_v7  ;;  %v917_v56 = vsel %vm96_vm1, %v68_v45, 0 }
  0x81   :  { %v9874_v35 = vand.u32 4294901760, %v917_v56  ;;  %v1094_v43 = vsub.f32 %v9836_v41, %v1093_v54 }
  0x82   :  { %622 = vmatmul.mubr.f32.gmra.mrb[2].mxu0 %v208_v63  ;;  %v942_v63 = vand.u32 4294901760, %v78_v34  ;;  %v9823_v24 = vpack.c.bf16 %v948_v12, %v944_v11  ;;  %v9857_v52 = vsub.f32 %v929_v7, %v948_v12 }
  0x83   :  { %627 = vmatprep.mubr.f32.mxu0 %v12116_v0  ;;  %8284 = vmatpush1.bf16.msra.mxu0 %v8283_v58  ;;  %v7157_v58 = vld [vmem:[%s12096_s0 + $0x20] sm:$0xff]  ;;  %v9898_v30 = vsub.f32 %v917_v56, %v9874_v35  ;;  %v1095_v33 = vand.u32 4294901760, %v1094_v43 }
  0x84   :  { %8286 = vmatprep.subr.bf16.mxu0 %v9560_v14  ;;  %v76_v14 = vld [vmem:[%s12097_s1 + $0x18] sm:$0xff]  ;;  %v9840_v42 = vsub.f32 %v78_v34, %v942_v63  ;;  %v920_v57 = vsel %vm96_vm1, %v7157_v58, 0  ;;  %v1106_v34 = vsub.f32 %v9855_v51, %v1105_v2 }
  0x85   :  { %v938_v20 = vand.u32 4294901760, %v76_v14  ;;  %v1031_v6 = vand.u32 4294901760, %v9898_v30 }
  0x86   :  { %631 = vmatmul.mubr.f32.gmra.mrb[4].mxu0 %v219_v5  ;;  %v946_v5 = vand.u32 4294901760, %v932_v39  ;;  %v1107_v11 = vand.u32 4294901760, %v1106_v34 }
  0x87   :  { %636 = vmatprep.mubr.f32.mxu0 %v12116_v0  ;;  %v9767_v22 = vpack.c.bf16 %v938_v20, %v934_v16 }
  0x88   :  { %v9815_v13 = vpack.c.bf16 %v946_v5, %v942_v63  ;;  %v9842_v44 = vsub.f32 %v932_v39, %v946_v5  ;;  %v923_v39 = vsel %vm96_vm1, %v7158_v15, 0 }
  0x8a   :  { %640 = vmatmul.mubr.f32.gmra.mrb[6].mxu0 %v230_v18  ;;  %v66_v18 = vld [vmem:[%s12096_s0] sm:$0xff]  ;;  %v1111_v59 = vand.u32 4294901760, %v9842_v44  ;;  %v8313_v34 = vpack.c.bf16 %v9842_v44, %v9840_v42 }
  0x8b   :  { %645 = vmatprep.mubr.f32.mxu0 %v12116_v0  ;;  %v911_v25 = vsel %vm96_vm1, %v66_v18, 0 }
  0x8c   :  { %v1112_v17 = vsub.f32 %v9842_v44, %v1111_v59 }
  0x8e   :  { %649 = vmatmul.mubr.f32.gmra.mrb[8].mxu0 %v241_v50 }
  0x8f   :  { %654 = vmatprep.mubr.f32.mxu0 %v12116_v0 }
  0x92   :  { %658 = vmatmul.mubr.f32.gmra.mrb[10].mxu0 %v252_v1 }
  0x93   :  { %752 = vmatprep.mubr.f32.mxu0 %v12116_v0 }
  0x96   :  { %754 = vmatmul.mubr.f32.vlgmr.msra.gmra.mrb[0].mxu0 %v9582_v28 }
  0x97   :  { %8288 = vmatpush1.bf16.msra.mxu0 %v9571_v19  ;;  %759 = vmatprep.mubr.f32.mxu0 %v12116_v0  ;;  %v9777_v19 = vsub.f32 %v76_v14, %v938_v20 }
  0x98   :  { %8290 = vmatprep.subr.bf16.mxu0 %v9589_v32  ;;  %v73_v32 = vld [vmem:[%s12097_s1] sm:$0xff] }
  0x99   :  { %v1087_v38 = vand.u32 4294901760, %v9777_v19  ;;  %v936_v55 = vand.u32 4294901760, %v73_v32  ;;  %v8309_v45 = vpack.c.bf16 %v9777_v19, %v9775_v29 }
  0x9a   :  { %761 = vmatmul.mubr.f32.gmra.mrb[2].mxu0 %v9623_v48 }
  0x9b   :  { %766 = vmatprep.mubr.f32.mxu0 %v12116_v0  ;;  %8292 = vmatpush1.bf16.msra.mxu0 %v9599_v37  ;;  %v1075_v37 = vand.u32 4294901760, %v9775_v29  ;;  %v1088_v9 = vsub.f32 %v9777_v19, %v1087_v38  ;;  %v9813_v10 = vpack.c.bf16 %v940_v60, %v936_v55  ;;  %v9830_v36 = vsub.f32 %v73_v32, %v936_v55  ;;  %v7159_v60 = vld [vmem:[%s12096_s0 + $0x30] sm:$0xff] }
  0x9c   :  { %8294 = vmatprep.subr.bf16.mxu0 %v9767_v22  ;;  %v9900_v32 = vand.u32 4294901760, %v920_v57  ;;  %v1113_v55 = vand.u32 4294901760, %v1112_v17  ;;  %v926_v18 = vsel %vm96_vm1, %v7159_v60, 0 }
  0x9d   :  { %v1076_v8 = vsub.f32 %v9775_v29, %v1075_v37  ;;  %v1089_v23 = vand.u32 4294901760, %v1088_v9  ;;  %v1081_v50 = vand.u32 4294901760, %v9830_v36 }
  0x9e   :  { %768 = vmatmul.mubr.f32.gmra.mrb[4].mxu0 %v9627_v53  ;;  %v9919_v7 = vsub.f32 %v920_v57, %v9900_v32 }
  0x9f   :  { %773 = vmatprep.mubr.f32.mxu0 %v12116_v0  ;;  %v1077_v21 = vand.u32 4294901760, %v1076_v8  ;;  %v1082_v3 = vsub.f32 %v9830_v36, %v1081_v50  ;;  %v9921_v8 = vand.u32 4294901760, %v923_v39  ;;  %v8327_v29 = vpack.c.bf16 %v1093_v54, %v1081_v50  ;;  %v7179_v50 = vld [vmem:[%s12097_s1 + $0xa8] sm:$0xff] }
  0xa1   :  { %v8301_v31 = vpack.c.bf16 %v1089_v23, %v1077_v21  ;;  %v1083_v20 = vand.u32 4294901760, %v1082_v3  ;;  %v9930_v26 = vsub.f32 %v923_v39, %v9921_v8  ;;  %v8325_v39 = vpack.c.bf16 %v1087_v38, %v1075_v37  ;;  %v7175_v38 = vld [vmem:[%s12097_s1 + $0x88] sm:$0xff] }
  0xa2   :  { %775 = vmatmul.mubr.f32.gmra.mrb[6].mxu0 %v9640_v61 }
  0xa3   :  { %780 = vmatprep.mubr.f32.mxu0 %v12116_v0  ;;  %v8303_v9 = vpack.c.bf16 %v1095_v33, %v1083_v20  ;;  %v1053_v3 = vand.u32 4294901760, %v9930_v26  ;;  %v8311_v33 = vpack.c.bf16 %v9836_v41, %v9830_v36  ;;  %v1761_v36 = vand.u32 4294901760, %v7175_v38 }
  0xa5   :  { %v10043_v44 = vsub.f32 %v7175_v38, %v1761_v36  ;;  %v7172_v38 = vld [vmem:[%s12096_s0 + $0x2a] sm:$0xff] }
  0xa6   :  { %782 = vmatmul.mubr.f32.gmra.mrb[8].mxu0 %v9669_v27 }
  0xa7   :  { %787 = vmatprep.mubr.f32.mxu0 %v12116_v0 }
  0xaa   :  { %789 = vmatmul.mubr.f32.gmra.mrb[10].mxu0 %v9678_v47 }
  0xab   :  { %867 = vmatprep.mubr.f32.mxu0 %v12116_v0 }
  0xae   :  { %869 = vmatmul.mubr.f32.vlgmr.msra.gmra.mrb[0].mxu0 %v9582_v28  ;;  %v9833_v28 = vand.u32 4294901760, %v911_v25 }
  0xaf   :  { %8296 = vmatpush1.bf16.msra.mxu0 %v9813_v10  ;;  %874 = vmatprep.mubr.f32.mxu0 %v12116_v0 }
  0xb0   :  { %8298 = vmatprep.subr.bf16.mxu0 %v9815_v13  ;;  %v9851_v49 = vsub.f32 %v911_v25, %v9833_v28  ;;  %v1042_v25 = vand.u32 4294901760, %v9919_v7 }
  0xb2   :  { %876 = vmatmul.mubr.f32.gmra.mrb[2].mxu0 %v9623_v48  ;;  %v9847_v48 = vand.u32 4294901760, %v914_v40  ;;  %v1009_v1 = vand.u32 4294901760, %v9851_v49  ;;  %v1043_v58 = vsub.f32 %v9919_v7, %v1042_v25 }
  0xb3   :  { %881 = vmatprep.mubr.f32.mxu0 %v12116_v0  ;;  %8300 = vmatpush1.bf16.msra.mxu0 %v9823_v24 }
  0xb4   :  { %8302 = vmatprep.subr.bf16.mxu0 %v8301_v31  ;;  %v9867_v62 = vsub.f32 %v914_v40, %v9847_v48  ;;  %v1010_v16 = vsub.f32 %v9851_v49, %v1009_v1  ;;  %v9932_v31 = vand.u32 4294901760, %v926_v18  ;;  %v1044_v57 = vand.u32 4294901760, %v1043_v58 }
  0xb6   :  { %883 = vmatmul.mubr.f32.gmra.mrb[4].mxu0 %v9627_v53  ;;  %v1099_v53 = vand.u32 4294901760, %v9840_v42  ;;  %v1020_v14 = vand.u32 4294901760, %v9867_v62  ;;  %v1011_v5 = vand.u32 4294901760, %v1010_v16  ;;  %v9942_v43 = vsub.f32 %v926_v18, %v9932_v31  ;;  %v1723_v18 = vld [vmem:[%s12096_s0 + $0xa] sm:$0xff] }
  0xb7   :  { %888 = vmatprep.mubr.f32.mxu0 %v12116_v0 }
  0xb8   :  { %v1100_v4 = vsub.f32 %v9840_v42, %v1099_v53  ;;  %v1021_v63 = vsub.f32 %v9867_v62, %v1020_v14  ;;  %v1064_v17 = vand.u32 4294901760, %v9942_v43  ;;  %v8329_v19 = vpack.c.bf16 %v1111_v59, %v1099_v53  ;;  %v7180_v53 = vld [vmem:[%s12097_s1 + $0xb0] sm:$0xf] }
  0xba   :  { %890 = vmatmul.mubr.f32.gmra.mrb[6].mxu0 %v9640_v61  ;;  %v1117_v61 = vand.u32 4294901760, %v9857_v52  ;;  %v1101_v46 = vand.u32 4294901760, %v1100_v4  ;;  %v1022_v23 = vand.u32 4294901760, %v1021_v63  ;;  %v1054_v4 = vsub.f32 %v9930_v26, %v1053_v3 }
  0xbb   :  { %895 = vmatprep.mubr.f32.mxu0 %v12116_v0  ;;  %v1065_v16 = vsub.f32 %v9942_v43, %v1064_v17 }
  0xbc   :  { %v8305_v21 = vpack.c.bf16 %v1113_v55, %v1101_v46  ;;  %v1055_v15 = vand.u32 4294901760, %v1054_v4  ;;  %v8331_v37 = vpack.c.bf16 %v1117_v61, %v1105_v2 }
  0xbd   :  { %v1066_v20 = vand.u32 4294901760, %v1065_v16 }
  0xbe   :  { %897 = vmatmul.mubr.f32.gmra.mrb[8].mxu0 %v9669_v27  ;;  %v1118_v27 = vsub.f32 %v9857_v52, %v1117_v61  ;;  %v7178_v61 = vld [vmem:[%s12097_s1 + $0xa0] sm:$0xff] }
  0xbf   :  { %902 = vmatprep.mubr.f32.mxu0 %v12116_v0  ;;  %v1771_v60 = vand.u32 4294901760, %v7178_v61 }
  0xc0   :  { %v1119_v12 = vand.u32 4294901760, %v1118_v27  ;;  %v8315_v27 = vpack.c.bf16 %v9857_v52, %v9855_v51  ;;  %v1902_v51 = vand.u32 4294901760, %v10043_v44 }
  0xc2   :  { %904 = vmatmul.mubr.f32.gmra.mrb[10].mxu0 %v9678_v47  ;;  %v1032_v47 = vsub.f32 %v9898_v30, %v1031_v6  ;;  %v8307_v40 = vpack.c.bf16 %v1119_v12, %v1107_v11 }
  0xc3   :  { %1006 = vmatprep.mubr.f32.mxu0 %v12116_v0 }
  0xc4   :  { %v1033_v56 = vand.u32 4294901760, %v1032_v47  ;;  %v1741_v47 = vsel %vm96_vm1, %v1723_v18, 0 }
  0xc6   :  { %1012 = vmatmul.mubr.f32.vlgmr.msra.gmra.mrb[0].mxu0 %v1011_v5 }
  0xc7   :  { %8304 = vmatpush1.bf16.msra.mxu0 %v8303_v9  ;;  %1017 = vmatprep.mubr.f32.mxu0 %v12116_v0 }
  0xc8   :  { %8306 = vmatprep.subr.bf16.mxu0 %v8305_v21 }
  0xca   :  { %1023 = vmatmul.mubr.f32.gmra.mrb[2].mxu0 %v1022_v23 }
  0xcb   :  { %1028 = vmatprep.mubr.f32.mxu0 %v12116_v0  ;;  %8308 = vmatpush1.bf16.msra.mxu0 %v8307_v40 }
  0xcc   :  { %8310 = vmatprep.subr.bf16.mxu0 %v8309_v45  ;;  %v1724_v45 = vld [vmem:[%s12096_s0 + $0x12] sm:$0xff] }
  0xcd   :  { %v1744_v4 = vsel %vm96_vm1, %v1724_v45, 0 }
  0xce   :  { %1034 = vmatmul.mubr.f32.gmra.mrb[4].mxu0 %v1033_v56 }
  0xcf   :  { %1039 = vmatprep.mubr.f32.mxu0 %v12116_v0 }
  0xd2   :  { %1045 = vmatmul.mubr.f32.gmra.mrb[6].mxu0 %v1044_v57 }
  0xd3   :  { %1050 = vmatprep.mubr.f32.mxu0 %v12116_v0 }
  0xd6   :  { %1056 = vmatmul.mubr.f32.gmra.mrb[8].mxu0 %v1055_v15 }
  0xd7   :  { %1061 = vmatprep.mubr.f32.mxu0 %v12116_v0 }
  0xda   :  { %1067 = vmatmul.mubr.f32.gmra.mrb[10].mxu0 %v1066_v20 }
  0xdb   :  { %1177 = vmatprep.mubr.f32.mxu0 %v12116_v0 }
  0xde   :  { %1179 = vmatmul.mubr.f32.vlgmr.msra.gmra.mrb[0].mxu0 %v9833_v28 }
  0xdf   :  { %8312 = vmatpush1.bf16.msra.mxu0 %v8311_v33  ;;  %1184 = vmatprep.mubr.f32.mxu0 %v12116_v0 }
  0xe0   :  { %8314 = vmatprep.subr.bf16.mxu0 %v8313_v34  ;;  %v10142_v34 = vand.u32 4294901760, %v1744_v4 }
  0xe2   :  { %1186 = vmatmul.mubr.f32.gmra.mrb[2].mxu0 %v9847_v48 }
  0xe3   :  { %1191 = vmatprep.mubr.f32.mxu0 %v12116_v0  ;;  %8316 = vmatpush1.bf16.msra.mxu0 %v8315_v27 }
  0xe4   :  { %8318 = vmatprep.subr.bf16.mxu0 %v9767_v22 }
  0xe6   :  { %1193 = vmatmul.mubr.f32.gmra.mrb[4].mxu0 %v9874_v35 }
  0xe7   :  { %1198 = vmatprep.mubr.f32.mxu0 %v12116_v0 }
  0xea   :  { %1200 = vmatmul.mubr.f32.gmra.mrb[6].mxu0 %v9900_v32 }
  0xeb   :  { %1205 = vmatprep.mubr.f32.mxu0 %v12116_v0 }
  0xee   :  { %1207 = vmatmul.mubr.f32.gmra.mrb[8].mxu0 %v9921_v8 }
  0xef   :  { %1212 = vmatprep.mubr.f32.mxu0 %v12116_v0 }
  0xf2   :  { %1214 = vmatmul.mubr.f32.gmra.mrb[10].mxu0 %v9932_v31 }
  0xf3   :  { %1300 = vmatprep.mubr.f32.mxu0 %v12116_v0 }
  0xf6   :  { %1303 = vmatmul.mubr.f32.vlgmr.msra.gmra.mrb[0].mxu0 %v9851_v49  ;;  %v7176_v49 = vld [vmem:[%s12097_s1 + $0x90] sm:$0xff] }
  0xf7   :  { %8320 = vmatpush1.bf16.msra.mxu0 %v9813_v10  ;;  %1308 = vmatprep.mubr.f32.mxu0 %v12116_v0 }
  0xf8   :  { %8322 = vmatprep.subr.bf16.mxu0 %v9815_v13 }
  0xfa   :  { %1311 = vmatmul.mubr.f32.gmra.mrb[2].mxu0 %v9867_v62  ;;  %v1767_v62 = vand.u32 4294901760, %v7176_v49 }
  0xfb   :  { %1316 = vmatprep.mubr.f32.mxu0 %v12116_v0  ;;  %8324 = vmatpush1.bf16.msra.mxu0 %v9823_v24 }
  0xfc   :  { %8326 = vmatprep.subr.bf16.mxu0 %v8325_v39 }
  0xfe   :  { %1319 = vmatmul.mubr.f32.gmra.mrb[4].mxu0 %v9898_v30  ;;  %v1903_v30 = vsub.f32 %v10043_v44, %v1902_v51 }
  0xff   :  { %1324 = vmatprep.mubr.f32.mxu0 %v12116_v0 }
 0x102   :  { %1327 = vmatmul.mubr.f32.gmra.mrb[6].mxu0 %v9919_v7  ;;  %v1904_v7 = vand.u32 4294901760, %v1903_v30 }
 0x103   :  { %1332 = vmatprep.mubr.f32.mxu0 %v12116_v0 }
 0x106   :  { %1335 = vmatmul.mubr.f32.gmra.mrb[8].mxu0 %v9930_v26 }
 0x107   :  { %1340 = vmatprep.mubr.f32.mxu0 %v12116_v0 }
 0x10a   :  { %1343 = vmatmul.mubr.f32.gmra.mrb[10].mxu0 %v9942_v43 }
 0x10b   :  { %1421 = vmatprep.mubr.f32.mxu0 %v12116_v0 }
 0x10e   :  { %1425 = vmatmul.mubr.f32.vlgmr.msra.gmra.mrb[0].mxu0 %v1009_v1  ;;  %v1769_v1 = vand.u32 4294901760, %v7179_v50 }
 0x10f   :  { %8328 = vmatpush1.bf16.msra.mxu0 %v8327_v29  ;;  %1430 = vmatprep.mubr.f32.mxu0 %v12116_v0 }
 0x110   :  { %8330 = vmatprep.subr.bf16.mxu0 %v8329_v19  ;;  %v10108_v26 = vsub.f32 %v7179_v50, %v1769_v1 }
 0x112   :  { %1434 = vmatmul.mubr.f32.gmra.mrb[2].mxu0 %v1020_v14  ;;  %v1756_v14 = vsel %vm12108_vm0, %v7180_v53, 0 }
 0x113   :  { %1439 = vmatprep.mubr.f32.mxu0 %v12116_v0  ;;  %8332 = vmatpush1.bf16.msra.mxu0 %v8331_v37  ;;  %v1775_v63 = vand.u32 4294901760, %v1756_v14 }
 0x114   :  { %8334 = vmatprep.subr.bf16.mxu0 %v9767_v22  ;;  %v7177_v22 = vld [vmem:[%s12097_s1 + $0x98] sm:$0xff] }
 0x115   :  { %v1765_v41 = vand.u32 4294901760, %v7177_v22  ;;  %v10091_v11 = vpack.c.bf16 %v1775_v63, %v1771_v60  ;;  %v10125_v43 = vsub.f32 %v1756_v14, %v1775_v63 }
 0x116   :  { %1443 = vmatmul.mubr.f32.gmra.mrb[4].mxu0 %v1031_v6  ;;  %v1722_v6 = vld [vmem:[%s12096_s0 + $0x2] sm:$0xff] }
 0x117   :  { %1448 = vmatprep.mubr.f32.mxu0 %v12116_v0  ;;  %v10035_v42 = vpack.c.bf16 %v1765_v41, %v1761_v36  ;;  %v1738_v12 = vsel %vm96_vm1, %v1722_v6, 0 }
 0x11a   :  { %1452 = vmatmul.mubr.f32.gmra.mrb[6].mxu0 %v1042_v25  ;;  %v10104_v25 = vsub.f32 %v7176_v49, %v1767_v62 }
 0x11b   :  { %1457 = vmatprep.mubr.f32.mxu0 %v12116_v0 }
 0x11c   :  { %v1920_v57 = vand.u32 4294901760, %v10104_v25 }
 0x11e   :  { %1461 = vmatmul.mubr.f32.gmra.mrb[8].mxu0 %v1053_v3  ;;  %v10123_v3 = vsub.f32 %v7178_v61, %v1771_v60  ;;  %v1921_v27 = vsub.f32 %v10104_v25, %v1920_v57 }
 0x11f   :  { %1466 = vmatprep.mubr.f32.mxu0 %v12116_v0 }
 0x120   :  { %v1932_v29 = vand.u32 4294901760, %v10123_v3  ;;  %v1922_v49 = vand.u32 4294901760, %v1921_v27 }
 0x122   :  { %1470 = vmatmul.mubr.f32.gmra.mrb[10].mxu0 %v1064_v17  ;;  %v7171_v17 = vld [vmem:[%s12096_s0 + $0x22] sm:$0xff]  ;;  %v1933_v50 = vsub.f32 %v10123_v3, %v1932_v29 }
 0x123   :  { %1564 = vmatprep.mubr.f32.mxu0 %v12116_v0  ;;  %v1747_v39 = vsel %vm96_vm1, %v7171_v17, 0 }
 0x124   :  { %v1934_v60 = vand.u32 4294901760, %v1933_v50 }
 0x126   :  { %1566 = vmatmul.mubr.f32.vlgmr.msra.gmra.mrb[0].mxu0 %v9833_v28 }
 0x127   :  { %8336 = vmatpush1.bf16.msra.mxu0 %v9813_v10  ;;  %1571 = vmatprep.mubr.f32.mxu0 %v12116_v0  ;;  %v10045_v10 = vsub.f32 %v7177_v22, %v1765_v41 }
 0x128   :  { %8338 = vmatprep.subr.bf16.mxu0 %v9815_v13  ;;  %v7181_v13 = vld [vmem:[%s12097_s1 + $0xb8] sm:$0xf] }
 0x129   :  { %v1914_v52 = vand.u32 4294901760, %v10045_v10  ;;  %v1759_v54 = vsel %vm12108_vm0, %v7181_v13, 0  ;;  %v10166_v13 = vsub.f32 %v1744_v4, %v10142_v34  ;;  %v8357_v45 = vpack.c.bf16 %v10045_v10, %v10043_v44 }
 0x12a   :  { %1573 = vmatmul.mubr.f32.gmra.mrb[2].mxu0 %v9847_v48  ;;  %v1773_v2 = vand.u32 4294901760, %v1759_v54  ;;  %vm2721_vm0 = vcmask 1047557  }
 0x12b   :  { %1578 = vmatprep.mubr.f32.mxu0 %v12116_v0  ;;  %8340 = vmatpush1.bf16.msra.mxu0 %v9823_v24  ;;  %v7174_v24 = vld [vmem:[%s12097_s1 + $0x80] sm:$0xff]  ;;  %v1915_v46 = vsub.f32 %v10045_v10, %v1914_v52  ;;  %v1858_v61 = vand.u32 4294901760, %v10166_v13 }
 0x12c   :  { %8342 = vmatprep.subr.bf16.mxu0 %v10035_v42  ;;  %v1763_v59 = vand.u32 4294901760, %v7174_v24  ;;  %v10083_v5 = vpack.c.bf16 %v1773_v2, %v1769_v1  ;;  %v10110_v40 = vsub.f32 %v1759_v54, %v1773_v2  ;;  %v1750_v54 = vsel %vm96_vm1, %v7172_v38, 0 }
 0x12d   :  { %v1916_v9 = vand.u32 4294901760, %v1915_v46  ;;  %v10189_v30 = vand.u32 4294901760, %v1750_v54 }
 0x12e   :  { %1580 = vmatmul.mubr.f32.gmra.mrb[4].mxu0 %v9874_v35  ;;  %v10081_v55 = vpack.c.bf16 %v1767_v62, %v1763_v59  ;;  %v10098_v23 = vsub.f32 %v7174_v24, %v1763_v59  ;;  %v1938_v15 = vand.u32 4294901760, %v10110_v40  ;;  %v10168_v24 = vand.u32 4294901760, %v1747_v39  ;;  %v7173_v62 = vld [vmem:[%s12096_s0 + $0x32] sm:$0xff] }
 0x12f   :  { %1585 = vmatprep.mubr.f32.mxu0 %v12116_v0  ;;  %v8349_v21 = vpack.c.bf16 %v1916_v9, %v1904_v7  ;;  %v1753_v6 = vsel %vm96_vm1, %v7173_v62, 0  ;;  %v10198_v18 = vsub.f32 %v1750_v54, %v10189_v30  ;;  %v8361_v50 = vpack.c.bf16 %v10110_v40, %v10108_v26 }
 0x130   :  { %v1908_v58 = vand.u32 4294901760, %v10098_v23  ;;  %v1939_v37 = vsub.f32 %v10110_v40, %v1938_v15  ;;  %v10187_v14 = vsub.f32 %v1747_v39, %v10168_v24  ;;  %v8373_v54 = vpack.c.bf16 %v1914_v52, %v1902_v51 }
 0x131   :  { %vm2705_vm1 = vcmask 1044482  }
 0x132   :  { %1587 = vmatmul.mubr.f32.gmra.mrb[6].mxu0 %v9900_v32  ;;  %v1909_v33 = vsub.f32 %v10098_v23, %v1908_v58  ;;  %v1940_v59 = vand.u32 4294901760, %v1939_v37  ;;  %v8375_v44 = vpack.c.bf16 %v1920_v57, %v1908_v58 }
 0x133   :  { %1592 = vmatprep.mubr.f32.mxu0 %v12116_v0 }
 0x134   :  { %v1910_v41 = vand.u32 4294901760, %v1909_v33  ;;  %v1880_v33 = vand.u32 4294901760, %v10198_v18 }
 0x136   :  { %1594 = vmatmul.mubr.f32.gmra.mrb[8].mxu0 %v9921_v8  ;;  %v8351_v46 = vpack.c.bf16 %v1922_v49, %v1910_v41  ;;  %v8359_v49 = vpack.c.bf16 %v10104_v25, %v10098_v23 }
 0x137   :  { %1599 = vmatprep.mubr.f32.mxu0 %v12116_v0 }
 0x13a   :  { %1601 = vmatmul.mubr.f32.gmra.mrb[10].mxu0 %v9932_v31 }
 0x13b   :  { %1679 = vmatprep.mubr.f32.mxu0 %v12116_v0 }
 0x13e   :  { %1681 = vmatmul.mubr.f32.vlgmr.msra.gmra.mrb[0].mxu0 %v9833_v28  ;;  %v10101_v28 = vand.u32 4294901760, %v1738_v12 }
 0x13f   :  { %8344 = vmatpush1.bf16.msra.mxu0 %v10081_v55  ;;  %1686 = vmatprep.mubr.f32.mxu0 %v12116_v0 }
 0x140   :  { %8346 = vmatprep.subr.bf16.mxu0 %v10083_v5  ;;  %v10119_v56 = vsub.f32 %v1738_v12, %v10101_v28  ;;  %v1869_v12 = vand.u32 4294901760, %v10187_v14 }
 0x142   :  { %1688 = vmatmul.mubr.f32.gmra.mrb[2].mxu0 %v9847_v48  ;;  %v10115_v48 = vand.u32 4294901760, %v1741_v47  ;;  %v1836_v20 = vand.u32 4294901760, %v10119_v56  ;;  %v1870_v17 = vsub.f32 %v10187_v14, %v1869_v12 }
 0x143   :  { %1693 = vmatprep.mubr.f32.mxu0 %v12116_v0  ;;  %8348 = vmatpush1.bf16.msra.mxu0 %v10091_v11 }
 0x144   :  { %8350 = vmatprep.subr.bf16.mxu0 %v8349_v21  ;;  %v10135_v16 = vsub.f32 %v1741_v47, %v10115_v48  ;;  %v1837_v36 = vsub.f32 %v10119_v56, %v1836_v20  ;;  %v10200_v21 = vand.u32 4294901760, %v1753_v6  ;;  %v1871_v39 = vand.u32 4294901760, %v1870_v17 }
 0x146   :  { %1695 = vmatmul.mubr.f32.gmra.mrb[4].mxu0 %v9874_v35  ;;  %v1926_v35 = vand.u32 4294901760, %v10108_v26  ;;  %v1847_v22 = vand.u32 4294901760, %v10135_v16  ;;  %v1838_v2 = vand.u32 4294901760, %v1837_v36  ;;  %v10210_v27 = vsub.f32 %v1753_v6, %v10200_v21 }
 0x147   :  { %1700 = vmatprep.mubr.f32.mxu0 %v12116_v0 }
 0x148   :  { %v1927_v19 = vsub.f32 %v10108_v26, %v1926_v35  ;;  %v1848_v1 = vsub.f32 %v10135_v16, %v1847_v22  ;;  %v1891_v37 = vand.u32 4294901760, %v10210_v27  ;;  %v8377_v10 = vpack.c.bf16 %v1938_v15, %v1926_v35 }
 0x14a   :  { %1702 = vmatmul.mubr.f32.gmra.mrb[6].mxu0 %v9900_v32  ;;  %v1944_v32 = vand.u32 4294901760, %v10125_v43  ;;  %v1928_v53 = vand.u32 4294901760, %v1927_v19  ;;  %v1849_v9 = vand.u32 4294901760, %v1848_v1  ;;  %v1881_v19 = vsub.f32 %v10198_v18, %v1880_v33 }
 0x14b   :  { %1707 = vmatprep.mubr.f32.mxu0 %v12116_v0  ;;  %v1892_v36 = vsub.f32 %v10210_v27, %v1891_v37 }
 0x14c   :  { %v8353_v7 = vpack.c.bf16 %v1940_v59, %v1928_v53  ;;  %v1882_v38 = vand.u32 4294901760, %v1881_v19  ;;  %v8379_v51 = vpack.c.bf16 %v1944_v32, %v1932_v29 }
 0x14d   :  { %v1893_v41 = vand.u32 4294901760, %v1892_v36 }
 0x14e   :  { %1709 = vmatmul.mubr.f32.gmra.mrb[8].mxu0 %v9921_v8  ;;  %v1945_v8 = vsub.f32 %v10125_v43, %v1944_v32 }
 0x14f   :  { %1714 = vmatprep.mubr.f32.mxu0 %v12116_v0 }
 0x150   :  { %v1946_v63 = vand.u32 4294901760, %v1945_v8  ;;  %v8363_v8 = vpack.c.bf16 %v10125_v43, %v10123_v3 }
 0x152   :  { %1716 = vmatmul.mubr.f32.gmra.mrb[10].mxu0 %v9932_v31  ;;  %v1859_v31 = vsub.f32 %v10166_v13, %v1858_v61  ;;  %v8355_v47 = vpack.c.bf16 %v1946_v63, %v1934_v60 }
 0x153   :  { %1833 = vmatprep.mubr.f32.mxu0 %v12116_v0 }
 0x154   :  { %v1860_v4 = vand.u32 4294901760, %v1859_v31 }
 0x156   :  { %1839 = vmatmul.mubr.f32.vlgmr.msra.gmra.mrb[0].mxu0 %v1838_v2 }
 0x157   :  { %8352 = vmatpush1.bf16.msra.mxu0 %v8351_v46  ;;  %1844 = vmatprep.mubr.f32.mxu0 %v12116_v0 }
 0x158   :  { %8354 = vmatprep.subr.bf16.mxu0 %v8353_v7 }
 0x15a   :  { %1850 = vmatmul.mubr.f32.gmra.mrb[2].mxu0 %v1849_v9 }
 0x15b   :  { %1855 = vmatprep.mubr.f32.mxu0 %v12116_v0  ;;  %8356 = vmatpush1.bf16.msra.mxu0 %v8355_v47 }
 0x15c   :  { %8358 = vmatprep.subr.bf16.mxu0 %v8357_v45 }
 0x15e   :  { %1861 = vmatmul.mubr.f32.gmra.mrb[4].mxu0 %v1860_v4 }
 0x15f   :  { %1866 = vmatprep.mubr.f32.mxu0 %v12116_v0 }
 0x162   :  { %1872 = vmatmul.mubr.f32.gmra.mrb[6].mxu0 %v1871_v39 }
 0x163   :  { %1877 = vmatprep.mubr.f32.mxu0 %v12116_v0 }
 0x166   :  { %1883 = vmatmul.mubr.f32.gmra.mrb[8].mxu0 %v1882_v38 }
 0x167   :  { %1888 = vmatprep.mubr.f32.mxu0 %v12116_v0 }
 0x16a   :  { %1894 = vmatmul.mubr.f32.gmra.mrb[10].mxu0 %v1893_v41 }
 0x16b   :  { %2004 = vmatprep.mubr.f32.mxu0 %v12116_v0 }
 0x16e   :  { %2006 = vmatmul.mubr.f32.vlgmr.msra.gmra.mrb[0].mxu0 %v10101_v28 }
 0x16f   :  { %8360 = vmatpush1.bf16.msra.mxu0 %v8359_v49  ;;  %2011 = vmatprep.mubr.f32.mxu0 %v12116_v0 }
 0x170   :  { %8362 = vmatprep.subr.bf16.mxu0 %v8361_v50 }
 0x172   :  { %2013 = vmatmul.mubr.f32.gmra.mrb[2].mxu0 %v10115_v48 }
 0x173   :  { %2018 = vmatprep.mubr.f32.mxu0 %v12116_v0  ;;  %8364 = vmatpush1.bf16.msra.mxu0 %v8363_v8 }
 0x174   :  { %8366 = vmatprep.subr.bf16.mxu0 %v10035_v42 }
 0x176   :  { %2020 = vmatmul.mubr.f32.gmra.mrb[4].mxu0 %v10142_v34 }
 0x177   :  { %2025 = vmatprep.mubr.f32.mxu0 %v12116_v0 }
 0x17a   :  { %2027 = vmatmul.mubr.f32.gmra.mrb[6].mxu0 %v10168_v24 }
 0x17b   :  { %2032 = vmatprep.mubr.f32.mxu0 %v12116_v0 }
 0x17e   :  { %2034 = vmatmul.mubr.f32.gmra.mrb[8].mxu0 %v10189_v30 }
 0x17f   :  { %2039 = vmatprep.mubr.f32.mxu0 %v12116_v0 }
 0x182   :  { %2041 = vmatmul.mubr.f32.gmra.mrb[10].mxu0 %v10200_v21 }
 0x183   :  { %2127 = vmatprep.mubr.f32.mxu0 %v12116_v0 }
 0x186   :  { %2130 = vmatmul.mubr.f32.vlgmr.msra.gmra.mrb[0].mxu0 %v10119_v56 }
 0x187   :  { %8368 = vmatpush1.bf16.msra.mxu0 %v10081_v55  ;;  %2135 = vmatprep.mubr.f32.mxu0 %v12116_v0 }
 0x188   :  { %8370 = vmatprep.subr.bf16.mxu0 %v10083_v5 }
 0x18a   :  { %2138 = vmatmul.mubr.f32.gmra.mrb[2].mxu0 %v10135_v16 }
 0x18b   :  { %2143 = vmatprep.mubr.f32.mxu0 %v12116_v0  ;;  %8372 = vmatpush1.bf16.msra.mxu0 %v10091_v11 }
 0x18c   :  { %8374 = vmatprep.subr.bf16.mxu0 %v8373_v54 }
 0x18e   :  { %2146 = vmatmul.mubr.f32.gmra.mrb[4].mxu0 %v10166_v13 }
 0x18f   :  { %2151 = vmatprep.mubr.f32.mxu0 %v12116_v0 }
 0x192   :  { %2154 = vmatmul.mubr.f32.gmra.mrb[6].mxu0 %v10187_v14 }
 0x193   :  { %2159 = vmatprep.mubr.f32.mxu0 %v12116_v0 }
 0x196   :  { %2162 = vmatmul.mubr.f32.gmra.mrb[8].mxu0 %v10198_v18 }
 0x197   :  { %2167 = vmatprep.mubr.f32.mxu0 %v12116_v0 }
 0x19a   :  { %2170 = vmatmul.mubr.f32.gmra.mrb[10].mxu0 %v10210_v27 }
 0x19b   :  { %2248 = vmatprep.mubr.f32.mxu0 %v12116_v0 }
 0x19e   :  { %2252 = vmatmul.mubr.f32.vlgmr.msra.gmra.mrb[0].mxu0 %v1836_v20 }
 0x19f   :  { %8376 = vmatpush1.bf16.msra.mxu0 %v8375_v44  ;;  %2257 = vmatprep.mubr.f32.mxu0 %v12116_v0 }
 0x1a0   :  { %8378 = vmatprep.subr.bf16.mxu0 %v8377_v10 }
 0x1a2   :  { %2261 = vmatmul.mubr.f32.gmra.mrb[2].mxu0 %v1847_v22 }
 0x1a3   :  { %2266 = vmatprep.mubr.f32.mxu0 %v12116_v0  ;;  %8380 = vmatpush1.bf16.msra.mxu0 %v8379_v51 }
 0x1a4   :  { %8382 = vmatprep.subr.bf16.mxu0 %v10035_v42  ;;  %v2563_v42 = vlaneseq }
 0x1a6   :  { %2270 = vmatmul.mubr.f32.gmra.mrb[4].mxu0 %v1858_v61  ;;  %v10319_v52 = vshrl.u32 %v2563_v42, 7 }
 0x1a7   :  { %2275 = vmatprep.mubr.f32.mxu0 %v12116_v0 }
 0x1a8   :  { %12200 = vst [vmem:[#allocation8_spill] sm:$0xff] %v10319_v52 }
 0x1aa   :  { %2279 = vmatmul.mubr.f32.gmra.mrb[6].mxu0 %v1869_v12 }
 0x1ab   :  { %2284 = vmatprep.mubr.f32.mxu0 %v12116_v0 }
 0x1ae   :  { %2288 = vmatmul.mubr.f32.gmra.mrb[8].mxu0 %v1880_v33 }
 0x1af   :  { %2293 = vmatprep.mubr.f32.mxu0 %v12116_v0 }
 0x1b2   :  { %2297 = vmatmul.mubr.f32.gmra.mrb[10].mxu0 %v1891_v37 }
 0x1b3   :  { %2391 = vmatprep.mubr.f32.mxu0 %v12116_v0 }
 0x1b6   :  { %2393 = vmatmul.mubr.f32.vlgmr.msra.gmra.mrb[0].mxu0 %v10101_v28 }
 0x1b7   :  { %8384 = vmatpush1.bf16.msra.mxu0 %v10081_v55  ;;  %2398 = vmatprep.mubr.f32.mxu0 %v12116_v0  ;;  %v12115_v55 = vsub.s32 0, %v10319_v52 }
 0x1b8   :  { %8386 = vmatprep.subr.bf16.mxu0 %v10083_v5  ;;  %v2561_v5 = vld [vmem:[%s12098_s2] sm:$0x3]  ;;  %s9441_s2 = smov 112  }
 0x1b9   :  { %v10328_v23 = vrot.slane %v2561_v5, %v12115_v55 }
 0x1ba   :  { %2400 = vmatmul.mubr.f32.gmra.mrb[2].mxu0 %v10115_v48 }
 0x1bb   :  { %2405 = vmatprep.mubr.f32.mxu0 %v12116_v0  ;;  %8388 = vmatpush1.bf16.msra.mxu0 %v10091_v11  ;;  %v12114_v11 = vsub.s32 1, %v10319_v52 }
 0x1be   :  { %2407 = vmatmul.mubr.f32.gmra.mrb[4].mxu0 %v10142_v34 }
 0x1bf   :  { %2412 = vmatprep.mubr.f32.mxu0 %v12116_v0 }
 0x1c2   :  { %2414 = vmatmul.mubr.f32.gmra.mrb[6].mxu0 %v10168_v24 }
 0x1c3   :  { %2419 = vmatprep.mubr.f32.mxu0 %v12116_v0 }
 0x1c6   :  { %2421 = vmatmul.mubr.f32.gmra.mrb[8].mxu0 %v10189_v30 }
 0x1c7   :  { %2426 = vmatprep.mubr.f32.mxu0 %v12116_v0 }
 0x1ca   :  { %2428 = vmatmul.mubr.f32.gmra.mrb[10].mxu0 %v10200_v21 }
 0x1cb   :  { %2506 = vmatprep.mubr.f32.mxu0 %v12116_v0 }
 0x1ce   :  { %2508 = vmatmul.mubr.f32.vlgmr.msra.gmra.mrb[0].mxu0 %v10101_v28  ;;  %v10332_v28 = vrot.slane %v2561_v5, %v12114_v11 }
 0x1cf   :  { %2513 = vmatprep.mubr.f32.mxu0 %v12116_v0 }
 0x1d2   :  { %2515 = vmatmul.mubr.f32.gmra.mrb[2].mxu0 %v10115_v48 }
 0x1d3   :  { %2520 = vmatprep.mubr.f32.mxu0 %v12116_v0 }
 0x1d6   :  { %2522 = vmatmul.mubr.f32.gmra.mrb[4].mxu0 %v10142_v34 }
 0x1d7   :  { %2527 = vmatprep.mubr.f32.mxu0 %v12116_v0 }
 0x1da   :  { %2529 = vmatmul.mubr.f32.gmra.mrb[6].mxu0 %v10168_v24 }
 0x1db   :  { %2534 = vmatprep.mubr.f32.mxu0 %v12116_v0 }
 0x1de   :  { %2536 = vmatmul.mubr.f32.gmra.mrb[8].mxu0 %v10189_v30 }
 0x1df   :  { %2541 = vmatprep.mubr.f32.mxu0 %v12116_v0 }
 0x1e2   :  { %2543 = vmatmul.mubr.f32.gmra.mrb[10].mxu0 %v10200_v21 }
 0x2a1   :  { %v2509_v25 = vpop.f32.mrb[0].mxu0 }
 0x2a2   :  { %v2573_v26 = vadd.f32 %v10328_v23, %v2509_v25  ;;  %v2511_v40 = vpop.f32.mrb[1].mxu0 }
 0x2a3   :  { %v2574_v48 = vadd.f32 %v10332_v28, %v2511_v40 }
 0x2a4   :  { %v2585_v56 = vmax.f32 %v2573_v26, 0.0 }
 0x2a5   :  { %v2586_v58 = vmax.f32 %v2574_v48, 0.0  ;;  %v2516_v3 = vpop.f32.mrb[2].mxu0 }
 0x2a6   :  { %v2598_v43 = vsel %vm12113_vm2, %v2585_v56, -inf  ;;  %v2614_v57 = vsel %vm2613_vm3, %v2585_v56, -inf  ;;  %v2575_v35 = vadd.f32 %v10328_v23, %v2516_v3  ;;  %v2518_v15 = vpop.f32.mrb[3].mxu0  ;;  %v2630_v32 = vsel %vm2629_vm4, %v2585_v56, -inf }
 0x2a7   :  { %v2599_v16 = vrot.slane %v2598_v43, 4  ;;  %v2615_v20 = vrot.slane %v2614_v57, 4  ;;  %v2606_v34 = vsel %vm2605_vm5, %v2586_v58, -inf  ;;  %v2622_v29 = vsel %vm2621_vm6, %v2586_v58, -inf }
 0x2a8   :  { %v2607_v22 = vrot.slane %v2606_v34, 4  ;;  %v2623_v13 = vrot.slane %v2622_v29, 4  ;;  %v10342_v24 = vmax.f32 %v2575_v35, 0.0  ;;  %v2641_v62 = vsel %vm12112_vm7, %v2586_v58, -inf }
 0x2a9   :  { %v2600_v53 = vmax.f32 %v2598_v43, %v2599_v16  ;;  %v2616_v59 = vmax.f32 %v2614_v57, %v2615_v20  ;;  %v2576_v1 = vadd.f32 %v10332_v28, %v2518_v15  ;;  %v2523_v2 = vpop.f32.mrb[4].mxu0  ;;  %vm2729_vm7 = vcmask 523269  }
 0x2aa   :  { %v2608_v61 = vmax.f32 %v2606_v34, %v2607_v22  ;;  %v2624_v14 = vmax.f32 %v2622_v29, %v2623_v13  ;;  %v2632_v30 = vsel %vm2631_vm8, %v10342_v24, -inf  ;;  %v2652_v46 = vsel %vm12110_vm9, %v10342_v24, -inf  ;;  %v10350_v60 = vpop.f32.mrb[5].mxu0 }
 0x2ab   :  { %v2601_v63 = vrot.slane %v2600_v53, 2  ;;  %v2617_v6 = vrot.slane %v2616_v59, 2  ;;  %v2633_v7 = vmax.f32 %v2630_v32, %v2632_v30  ;;  %v2653_v9 = vrot.slane %v2652_v46, 4 }
 0x2ac   :  { %v2609_v31 = vrot.slane %v2608_v61, 2  ;;  %v2625_v12 = vrot.slane %v2624_v14, 2  ;;  %v2668_v18 = vsel %vm12109_vm10, %v10342_v24, -inf  ;;  %v10354_v21 = vmax.f32 %v2576_v1, 0.0 }
 0x2ad   :  { %v2602_v47 = vmax.f32 %v2600_v53, %v2601_v63  ;;  %v2618_v45 = vmax.f32 %v2616_v59, %v2617_v6  ;;  %v2634_v4 = vrot.slane %v2633_v7, 4  ;;  %v2654_v17 = vmax.f32 %v2652_v46, %v2653_v9  ;;  %v10356_v33 = vpop.f32.mrb[6].mxu0 }
 0x2ae   :  { %v2610_v27 = vmax.f32 %v2608_v61, %v2609_v31  ;;  %v2626_v39 = vmax.f32 %v2624_v14, %v2625_v12  ;;  %v2669_v19 = vrot.slane %v2668_v18, 4  ;;  %v2643_v37 = vsel %vm12111_vm11, %v10354_v21, -inf  ;;  %v10360_v38 = vpop.f32.mrb[7].mxu0 }
 0x2af   :  { %v2603_v36 = vrot.slane %v2602_v47, 1  ;;  %v2619_v41 = vrot.slane %v2618_v45, 1  ;;  %v2635_v49 = vmax.f32 %v2633_v7, %v2634_v4  ;;  %v2655_v50 = vrot.slane %v2654_v17, 2 }
 0x2b0   :  { %v2611_v8 = vrot.slane %v2610_v27, 1  ;;  %v2627_v54 = vrot.slane %v2626_v39, 1  ;;  %v2670_v44 = vmax.f32 %v2668_v18, %v2669_v19  ;;  %v2644_v10 = vmax.f32 %v2641_v62, %v2643_v37 }
 0x2b1   :  { %vm2696_vm10 = vcmask 517120   ;;  %v2604_v51 = vmax.f32 %v2602_v47, %v2603_v36  ;;  %v2620_v42 = vmax.f32 %v2618_v45, %v2619_v41  ;;  %v2636_v5 = vrot.slane %v2635_v49, 2  ;;  %v10362_v26 = vpop.f32.mrb[8].mxu0 }
 0x2b2   :  { %v2656_v25 = vmax.f32 %v2654_v17, %v2655_v50  ;;  %vm2694_vm9 = vcmask 523271   ;;  %v2612_v40 = vmax.f32 %v2610_v27, %v2611_v8  ;;  %v2628_v48 = vmax.f32 %v2626_v39, %v2627_v54  ;;  %v10364_v3 = vpop.f32.mrb[9].mxu0 }
 0x2b3   :  { %v2671_v56 = vrot.slane %v2670_v44, 2  ;;  %v2645_v58 = vrot.slane %v2644_v10, 4  ;;  %v2637_v43 = vmax.f32 %v2635_v49, %v2636_v5  ;;  %v2660_v35 = vsel %vm2659_vm12, %v10354_v21, -inf }
 0x2b4   :  { %v2657_v57 = vrot.slane %v2656_v25, 1  ;;  %vm2713_vm11 = vcmask 520194   ;;  %v10369_v15 = vsel %vm2631_vm8, %v2604_v51, %v2620_v42  ;;  %v2661_v34 = vrot.slane %v2660_v35, 4 }
 0x2b5   :  { %v2672_v16 = vmax.f32 %v2670_v44, %v2671_v56  ;;  %v2646_v20 = vmax.f32 %v2644_v10, %v2645_v58  ;;  %v10372_v29 = vsel %vm2631_vm8, %v2612_v40, %v2628_v48  ;;  %v2638_v32 = vrot.slane %v2637_v43, 1  ;;  %v10377_v53 = vpop.f32.mrb[10].mxu0 }
 0x2b6   :  { %v2676_v22 = vsel %vm2675_vm13, %v10354_v21, -inf  ;;  %v2577_v13 = vadd.f32 %v10328_v23, %v2523_v2  ;;  %v10379_v59 = vmax.f32 %v2656_v25, %v2657_v57  ;;  %v2662_v1 = vmax.f32 %v2660_v35, %v2661_v34  ;;  %v10381_v14 = vpop.f32.mrb[11].mxu0 }
 0x2b7   :  { %v2647_v62 = vrot.slane %v2646_v20, 2  ;;  %v2677_v61 = vrot.slane %v2676_v22, 4  ;;  %v10383_v30 = vmax.f32 %v2637_v43, %v2638_v32  ;;  %v2673_v46 = vrot.slane %v2672_v16, 1 }
 0x2b8   :  { %v2589_v63 = vmax.f32 %v2577_v13, 0.0  ;;  %v2578_v6 = vadd.f32 %v10332_v28, %v10350_v60  ;;  %v2663_v9 = vrot.slane %v2662_v1, 2  ;;  %v2684_v2 = vsel %vm2683_vm14, %v10342_v24, -inf }
 0x2b9   :  { %v2648_v7 = vmax.f32 %v2646_v20, %v2647_v62  ;;  %v2678_v31 = vmax.f32 %v2676_v22, %v2677_v61  ;;  %v10392_v19 = vmax.f32 %v2672_v16, %v2673_v46  ;;  %v2695_v50 = vsel %vm2694_vm9, %v10354_v21, -inf }
 0x2ba   :  { %v2686_v12 = vsel %vm2685_vm15, %v2589_v63, -inf  ;;  %v2706_v18 = vsel %vm2705_vm1, %v2589_v63, -inf  ;;  %v2722_v47 = vsel %vm2721_vm0, %v2589_v63, -inf  ;;  %v2590_v45 = vmax.f32 %v2578_v6, 0.0 }
 0x2bb   :  { %v2649_v4 = vrot.slane %v2648_v7, 1  ;;  %v2664_v17 = vmax.f32 %v2662_v1, %v2663_v9  ;;  %v2679_v27 = vrot.slane %v2678_v31, 2  ;;  %v2687_v39 = vmax.f32 %v2684_v2, %v2686_v12 }
 0x2bc   :  { %v2707_v60 = vrot.slane %v2706_v18, 4  ;;  %v2723_v37 = vrot.slane %v2722_v47, 4  ;;  %v2697_v36 = vsel %vm2696_vm10, %v2590_v45, -inf  ;;  %v2714_v10 = vsel %vm2713_vm11, %v2590_v45, -inf }
 0x2bd   :  { %v2665_v41 = vrot.slane %v2664_v17, 1  ;;  %v10395_v49 = vmax.f32 %v2678_v31, %v2679_v27  ;;  %v2688_v24 = vrot.slane %v2687_v39, 4  ;;  %v2698_v44 = vmax.f32 %v2695_v50, %v2697_v36 }
 0x2be   :  { %v2708_v8 = vmax.f32 %v2706_v18, %v2707_v60  ;;  %v2724_v54 = vmax.f32 %v2722_v47, %v2723_v37  ;;  %v10400_v51 = vmax.f32 %v2648_v7, %v2649_v4  ;;  %v2715_v25 = vrot.slane %v2714_v10, 4 }
 0x2bf   :  { %v10402_v42 = vmax.f32 %v2664_v17, %v2665_v41  ;;  %v2689_v5 = vmax.f32 %v2687_v39, %v2688_v24  ;;  %v2699_v56 = vrot.slane %v2698_v44, 4  ;;  %v2730_v58 = vsel %vm2729_vm7, %v2590_v45, -inf }
 0x2c0   :  { %v2709_v40 = vrot.slane %v2708_v8, 2  ;;  %v2725_v48 = vrot.slane %v2724_v54, 2  ;;  %v2716_v57 = vmax.f32 %v2714_v10, %v2715_v25  ;;  %v2731_v35 = vrot.slane %v2730_v58, 4 }
 0x2c1   :  { %v2690_v43 = vrot.slane %v2689_v5, 2  ;;  %v2579_v21 = vadd.f32 %v10328_v23, %v10356_v33  ;;  %v2681_v16 = vrot.slane %v10395_v49, 1  ;;  %v2700_v34 = vmax.f32 %v2698_v44, %v2699_v56 }
 0x2c2   :  { %v10408_v20 = vmax.f32 %v2708_v8, %v2709_v40  ;;  %v2580_v32 = vadd.f32 %v10332_v28, %v10360_v38  ;;  %v2717_v13 = vrot.slane %v2716_v57, 2  ;;  %v10414_v62 = vmax.f32 %v2730_v58, %v2731_v35 }
 0x2c3   :  { %v10412_v22 = vmax.f32 %v2689_v5, %v2690_v43  ;;  %v2591_v1 = vmax.f32 %v2579_v21, 0.0  ;;  %v10417_v46 = vmax.f32 %v2724_v54, %v2725_v48  ;;  %v2701_v63 = vrot.slane %v2700_v34, 2 }
 0x2c4   :  { %v2711_v61 = vrot.slane %v10408_v20, 1  ;;  %v2592_v33 = vmax.f32 %v2580_v32, 0.0  ;;  %v10420_v7 = vmax.f32 %v2716_v57, %v2717_v13  ;;  %v2581_v38 = vadd.f32 %v10328_v23, %v10362_v26 }
 0x2c5   :  { %v2692_v6 = vrot.slane %v10412_v22, 1  ;;  %v2737_v9 = vsel %vm12113_vm2, %v2591_v1, -inf  ;;  %v10425_v31 = vmax.f32 %v2700_v34, %v2701_v63  ;;  %v2733_v2 = vrot.slane %v10414_v62, 2 }
 0x2c6   :  { %v2738_v12 = vrot.slane %v2737_v9, 4  ;;  %v2751_v18 = vsel %vm2613_vm3, %v2591_v1, -inf  ;;  %v2765_v45 = vsel %vm2629_vm4, %v2591_v1, -inf  ;;  %v2744_v4 = vsel %vm2605_vm5, %v2592_v33, -inf }
 0x2c7   :  { %v2752_v47 = vrot.slane %v2751_v18, 4  ;;  %v2758_v17 = vsel %vm2621_vm6, %v2592_v33, -inf  ;;  %v2745_v39 = vrot.slane %v2744_v4, 4  ;;  %vm12201_vm2 = vcmask 523270  }
 0x2c8   :  { %v2739_v27 = vmax.f32 %v2737_v9, %v2738_v12  ;;  %v2759_v60 = vrot.slane %v2758_v17, 4  ;;  %v2774_v37 = vsel %vm12201_vm2, %v2592_v33, -inf  ;;  %v2703_v26 = vrot.slane %v10425_v31, 1 }
 0x2c9   :  { %v2753_v36 = vmax.f32 %v2751_v18, %v2752_v47  ;;  %v2593_v41 = vmax.f32 %v2581_v38, 0.0  ;;  %v2582_v24 = vadd.f32 %v10332_v28, %v10364_v3  ;;  %v2746_v8 = vmax.f32 %v2744_v4, %v2745_v39 }
 0x2ca   :  { %v2740_v50 = vrot.slane %v2739_v27, 2  ;;  %v2760_v54 = vmax.f32 %v2758_v17, %v2759_v60  ;;  %v2583_v44 = vadd.f32 %v10328_v23, %v10377_v53  ;;  %vm12202_vm3 = vcmask 1043457  }
 0x2cb   :  { %v2754_v10 = vrot.slane %v2753_v36, 2  ;;  %v2766_v5 = vsel %vm2631_vm8, %v2593_v41, -inf  ;;  %v2783_v25 = vsel %vm12202_vm3, %v2593_v41, -inf  ;;  %vm12203_vm4 = vcmask 1046532  }
 0x2cc   :  { %v2797_v40 = vsel %vm12203_vm4, %v2593_v41, -inf  ;;  %v2741_v48 = vmax.f32 %v2739_v27, %v2740_v50  ;;  %v2747_v56 = vrot.slane %v2746_v8, 2  ;;  %v2761_v58 = vrot.slane %v2760_v54, 2 }
 0x2cd   :  { %v2767_v43 = vmax.f32 %v2765_v45, %v2766_v5  ;;  %v2755_v57 = vmax.f32 %v2753_v36, %v2754_v10  ;;  %v2784_v35 = vrot.slane %v2783_v25, 4  ;;  %v2798_v3 = vrot.slane %v2797_v40, 4 }
 0x2ce   :  { %v2594_v21 = vmax.f32 %v2582_v24, 0.0  ;;  %v2742_v34 = vrot.slane %v2741_v48, 1  ;;  %v2748_v32 = vmax.f32 %v2746_v8, %v2747_v56  ;;  %v2762_v13 = vmax.f32 %v2760_v54, %v2761_v58 }
 0x2cf   :  { %v2768_v1 = vrot.slane %v2767_v43, 4  ;;  %v2756_v23 = vrot.slane %v2755_v57, 1  ;;  %v2785_v53 = vmax.f32 %v2783_v25, %v2784_v35  ;;  %v2799_v63 = vmax.f32 %v2797_v40, %v2798_v3 }
 0x2d0   :  { %vm12204_vm2 = vcmask 516096   ;;  %v2743_v9 = vmax.f32 %v2741_v48, %v2742_v34  ;;  %v2749_v38 = vrot.slane %v2748_v32, 1  ;;  %v2763_v12 = vrot.slane %v2762_v13, 1 }
 0x2d1   :  { %v2775_v33 = vsel %vm12204_vm2, %v2594_v21, -inf  ;;  %v2769_v18 = vmax.f32 %v2767_v43, %v2768_v1  ;;  %v2757_v47 = vmax.f32 %v2755_v57, %v2756_v23  ;;  %v2786_v4 = vrot.slane %v2785_v53, 2 }
 0x2d2   :  { %v2800_v45 = vrot.slane %v2799_v63, 2  ;;  %v2776_v17 = vmax.f32 %v2774_v37, %v2775_v33  ;;  %v2750_v27 = vmax.f32 %v2748_v32, %v2749_v38  ;;  %v2764_v39 = vmax.f32 %v2762_v13, %v2763_v12 }
 0x2d3   :  { %v2770_v60 = vrot.slane %v2769_v18, 2  ;;  %v2790_v36 = vsel %vm2659_vm12, %v2594_v21, -inf  ;;  %v2787_v24 = vmax.f32 %v2785_v53, %v2786_v4  ;;  %v2584_v54 = vadd.f32 %v10332_v28, %v10381_v14 }
 0x2d4   :  { %v2801_v50 = vmax.f32 %v2799_v63, %v2800_v45  ;;  %v2777_v8 = vrot.slane %v2776_v17, 4  ;;  %v10446_v10 = vsel %vm2631_vm8, %v2743_v9, %v2757_v47  ;;  %v2791_v25 = vrot.slane %v2790_v36, 4 }
 0x2d5   :  { %v2771_v5 = vmax.f32 %v2769_v18, %v2770_v60  ;;  %v2804_v40 = vsel %vm2675_vm13, %v2594_v21, -inf  ;;  %v2788_v48 = vrot.slane %v2787_v24, 1  ;;  %v10450_v43 = vsel %vm2631_vm8, %v2750_v27, %v2764_v39 }
 0x2d6   :  { %v2802_v37 = vrot.slane %v2801_v50, 1  ;;  %v2778_v56 = vmax.f32 %v2776_v17, %v2777_v8  ;;  %v2805_v58 = vrot.slane %v2804_v40, 4  ;;  %v2792_v35 = vmax.f32 %v2790_v36, %v2791_v25 }
 0x2d7   :  { %v2772_v57 = vrot.slane %v2771_v5, 1  ;;  %v2595_v3 = vmax.f32 %v2583_v44, 0.0  ;;  %v10452_v34 = vmax.f32 %v2787_v24, %v2788_v48  ;;  %v2811_v32 = vsel %vm2683_vm14, %v2593_v41, -inf }
 0x2d8   :  { %v2779_v28 = vrot.slane %v2778_v56, 2  ;;  %v2806_v14 = vmax.f32 %v2804_v40, %v2805_v58  ;;  %v10455_v13 = vmax.f32 %v2801_v50, %v2802_v37  ;;  %v2793_v1 = vrot.slane %v2792_v35, 2 }
 0x2d9   :  { %v2812_v23 = vsel %vm2685_vm15, %v2595_v3, -inf  ;;  %v2829_v53 = vsel %vm2705_vm1, %v2595_v3, -inf  ;;  %v2773_v12 = vmax.f32 %v2771_v5, %v2772_v57  ;;  %v2843_v44 = vsel %vm2721_vm0, %v2595_v3, -inf }
 0x2da   :  { %v2780_v63 = vmax.f32 %v2778_v56, %v2779_v28  ;;  %v2807_v33 = vrot.slane %v2806_v14, 2  ;;  %v2813_v9 = vmax.f32 %v2811_v32, %v2812_v23  ;;  %v2830_v38 = vrot.slane %v2829_v53, 4 }
 0x2db   :  { %v10459_v18 = vmax.f32 %v2792_v35, %v2793_v1  ;;  %v2596_v47 = vmax.f32 %v2584_v54, 0.0  ;;  %vm2865_vm5 = vcmask 1044480   ;;  %v2844_v27 = vrot.slane %v2843_v44, 4 }
 0x2dc   :  { %v2781_v4 = vrot.slane %v2780_v63, 1  ;;  %v10462_v45 = vmax.f32 %v2806_v14, %v2807_v33  ;;  %v2814_v41 = vrot.slane %v2813_v9, 4  ;;  %v2831_v17 = vmax.f32 %v2829_v53, %v2830_v38 }
 0x2dd   :  { %v2820_v39 = vsel %vm2694_vm9, %v2594_v21, -inf  ;;  %v2821_v60 = vsel %vm2696_vm10, %v2596_v47, -inf  ;;  %v2836_v36 = vsel %vm2713_vm11, %v2596_v47, -inf  ;;  %vm2868_vm6 = vcmask 1045504  }
 0x2de   :  { %v10467_v24 = vmax.f32 %v2780_v63, %v2781_v4  ;;  %v2795_v50 = vrot.slane %v10459_v18, 1  ;;  %v2815_v8 = vmax.f32 %v2813_v9, %v2814_v41  ;;  %v2832_v54 = vrot.slane %v2831_v17, 2 }
 0x2df   :  { %vm2871_vm0 = vcmask 1046528   ;;  %v2809_v5 = vrot.slane %v10462_v45, 1  ;;  %v2845_v25 = vmax.f32 %v2843_v44, %v2844_v27  ;;  %v2822_v40 = vmax.f32 %v2820_v39, %v2821_v60 }
 0x2e0   :  { %v2837_v48 = vrot.slane %v2836_v36, 4  ;;  %v2816_v37 = vrot.slane %v2815_v8, 2  ;;  %v2833_v56 = vmax.f32 %v2831_v17, %v2832_v54  ;;  %v2850_v21 = vsel %vm2729_vm7, %v2596_v47, -inf }
 0x2e1   :  { %v2693_v58 = vmax.f32 %v10412_v22, %v2692_v6  ;;  %v2846_v57 = vrot.slane %v2845_v25, 2  ;;  %v2823_v35 = vrot.slane %v2822_v40, 4  ;;  %v2851_v28 = vrot.slane %v2850_v21, 4 }
 0x2e2   :  { %v2838_v3 = vmax.f32 %v2836_v36, %v2837_v48  ;;  %v2817_v14 = vmax.f32 %v2815_v8, %v2816_v37  ;;  %v2834_v32 = vrot.slane %v2833_v56, 1  ;;  %v2712_v1 = vmax.f32 %v10408_v20, %v2711_v61 }
 0x2e3   :  { %v2727_v23 = vrot.slane %v10417_v46, 1  ;;  %v2847_v53 = vmax.f32 %v2845_v25, %v2846_v57  ;;  %v2824_v63 = vmax.f32 %v2822_v40, %v2823_v35  ;;  %v2852_v9 = vmax.f32 %v2850_v21, %v2851_v28 }
 0x2e4   :  { %v2839_v33 = vrot.slane %v2838_v3, 2  ;;  %v2818_v38 = vrot.slane %v2817_v14, 1  ;;  %v2859_v22 = vsel %vm2685_vm15, %v10369_v15, %v10383_v30  ;;  %v2835_v6 = vmax.f32 %v2833_v56, %v2834_v32 }
 0x2e5   :  { %v2728_v44 = vmax.f32 %v10417_v46, %v2727_v23  ;;  %v2825_v47 = vrot.slane %v2824_v63, 2  ;;  %v2853_v41 = vrot.slane %v2852_v9, 2  ;;  %vm12205_vm7 = vcmask 1042432  }
 0x2e6   :  { %v2840_v4 = vmax.f32 %v2838_v3, %v2839_v33  ;;  %v2861_v20 = vsel %vm12205_vm7, %v2859_v22, %v10379_v59  ;;  %vm12206_vm9 = vcmask 1043456   ;;  %v2819_v17 = vmax.f32 %v2817_v14, %v2818_v38  ;;  %vm12207_vm10 = vmmov %vm12205_vm7  ;;  %v7182_v22 = vld [vmem:[%s12099_s3 + $0x40] sm:$0xff] }
 0x2e7   :  { %v2863_v61 = vsel %vm12206_vm9, %v2861_v20, %v10392_v19  ;;  %v2848_v27 = vrot.slane %v2847_v53, 1  ;;  %v2876_v39 = vsel %vm2685_vm15, %v10446_v10, %v2773_v12  ;;  %v2826_v46 = vmax.f32 %v2824_v63, %v2825_v47  ;;  %vm12208_vm11 = vmmov %vm12206_vm9  ;;  %v7184_v20 = vld [vmem:[%s12099_s3 + $0x50] sm:$0xff] }
 0x2e8   :  { %v2866_v60 = vsel %vm2865_vm5, %v2863_v61, %v2693_v58  ;;  %v2878_v15 = vsel %vm12207_vm10, %v2876_v39, %v10452_v34  ;;  %v2682_v30 = vmax.f32 %v10395_v49, %v2681_v16  ;;  %v2704_v10 = vmax.f32 %v10425_v31, %v2703_v26  ;;  %vm12209_vm12 = vmmov %vm12205_vm7  ;;  %v7185_v61 = vld [vmem:[%s12099_s3 + $0x58] sm:$0xff] }
 0x2e9   :  { %v2869_v59 = vsel %vm2868_vm6, %v2866_v60, %v2712_v1  ;;  %v2849_v36 = vmax.f32 %v2847_v53, %v2848_v27  ;;  %v2880_v19 = vsel %vm12208_vm11, %v2878_v15, %v10455_v13  ;;  %v2827_v12 = vrot.slane %v2826_v46, 1  ;;  %vm12210_vm13 = vmmov %vm12206_vm9  ;;  %v7187_v60 = vld [vmem:[%s12099_s3 + $0x68] sm:$0xff] }
 0x2ea   :  { %v10502_v8 = vsel %vm2871_vm0, %v2869_v59, %v2728_v44  ;;  %v2882_v34 = vsel %vm2865_vm5, %v2880_v19, %v2819_v17  ;;  %v2719_v54 = vrot.slane %v10420_v7, 1  ;;  %v2734_v16 = vmax.f32 %v10414_v62, %v2733_v2  ;;  %vm12211_vm14 = vmmov %vm12205_vm7 }
 0x2eb   :  { %2898 = vrot.lane.b32.xlu1 %v10502_v8, %s9441_s2  ;;  %2890 = vrot.lane.b32.xlu0 %v10502_v8, %s9442_s30  ;;  %v2884_v49 = vsel %vm2868_vm6, %v2882_v34, %v2835_v6  ;;  %v2860_v31 = vsel %vm2685_vm15, %v10372_v29, %v10400_v51  ;;  %v2796_v26 = vmax.f32 %v10459_v18, %v2795_v50  ;;  %v2841_v40 = vrot.slane %v2840_v4, 1  ;;  %vm12212_vm1 = vmmov %vm12206_vm9  ;;  %v7183_v6 = vld [vmem:[%s12099_s3 + $0x48] sm:$0xff] }
 0x2ec   :  { %v10519_v13 = vsel %vm2871_vm0, %v2884_v49, %v2849_v36  ;;  %v2862_v25 = vsel %vm12209_vm12, %v2860_v31, %v10402_v42  ;;  %v2720_v48 = vmax.f32 %v10420_v7, %v2719_v54  ;;  %v2735_v37 = vrot.slane %v2734_v16, 1 }
 0x2ed   :  { %v2864_v56 = vsel %vm12210_vm13, %v2862_v25, %v2682_v30  ;;  %v2828_v21 = vmax.f32 %v2826_v46, %v2827_v12  ;;  %v2810_v2 = vmax.f32 %v10462_v45, %v2809_v5  ;;  %v2854_v29 = vmax.f32 %v2852_v9, %v2853_v41  ;;  %v7186_v46 = vld [vmem:[%s12099_s3 + $0x60] sm:$0xff] }
 0x2ee   :  { %v2867_v62 = vsel %vm2865_vm5, %v2864_v56, %v2704_v10  ;;  %v2877_v51 = vsel %vm2685_vm15, %v10450_v43, %v10467_v24  ;;  %v2736_v42 = vmax.f32 %v2734_v16, %v2735_v37  ;;  %v2842_v50 = vmax.f32 %v2840_v4, %v2841_v40 }
 0x2ef   :  { %2900 = vrot.lane.b32.xlu1 %v10519_v13, %s9441_s2  ;;  %2892 = vrot.lane.b32.xlu0 %v10519_v13, %s9442_s30  ;;  %v2870_v7 = vsel %vm2868_vm6, %v2867_v62, %v2720_v48  ;;  %v2879_v18 = vsel %vm12211_vm14, %v2877_v51, %v2796_v26  ;;  %v2855_v58 = vrot.slane %v2854_v29, 1  ;;  %v3031_v4 = vand.u32 4294901760, %v7182_v22 }
 0x2f0   :  { %v2881_v45 = vsel %vm12212_vm1, %v2879_v18, %v2810_v2  ;;  %v2873_v5 = vsel %vm2871_vm0, %v2870_v7, %v2736_v42  ;;  %v3034_v41 = vand.u32 4294901760, %v7183_v6  ;;  %v3037_v27 = vand.u32 4294901760, %v7184_v20 }
 0x2f1   :  { %v2883_v57 = vsel %vm2865_vm5, %v2881_v45, %v2828_v21  ;;  %v2856_v43 = vmax.f32 %v2854_v29, %v2855_v58  ;;  %v3040_v39 = vand.u32 4294901760, %v7185_v61  ;;  %v10587_v30 = vsub.f32 %v7182_v22, %v3031_v4 }
 0x2f2   :  { %v2885_v24 = vsel %vm2868_vm6, %v2883_v57, %v2842_v50  ;;  %v10585_v15 = vpack.c.bf16 %v3034_v41, %v3031_v4  ;;  %v10589_v59 = vsub.f32 %v7183_v6, %v3034_v41  ;;  %v3043_v36 = vand.u32 4294901760, %v7186_v46 }
 0x2f3   :  { %2908 = vrot.lane.b32.xlu0 %v2873_v5, %s9442_s30  ;;  %v10542_v35 = vsel %vm2871_vm0, %v2885_v24, %v2856_v43  ;;  %v10591_v10 = vpack.c.bf16 %v3040_v39, %v3037_v27  ;;  %v10593_v12 = vsub.f32 %v7184_v20, %v3037_v27  ;;  %v3046_v34 = vand.u32 4294901760, %v7187_v60 }
 0x2f4   :  { %2910 = vrot.lane.b32.xlu1 %v10542_v35, %s9442_s30  ;;  %v3126_v49 = vand.u32 4294901760, %v10587_v30  ;;  %v3133_v16 = vand.u32 4294901760, %v10589_v59  ;;  %v10601_v31 = vsub.f32 %v7186_v46, %v3043_v36  ;;  %8390 = vmatprep.subr.bf16.mxu0 %v10585_v15  ;;  %vm2976_vm15 = vcmask 64512  }
 0x2f5   :  { %v3140_v25 = vand.u32 4294901760, %v10593_v12  ;;  %v10605_v48 = vsub.f32 %v7187_v60, %v3046_v34  ;;  %8392 = vmatpush3.bf16.msra.mxu0 %v10585_v15  ;;  %v10622_v29 = vpack.c.bf16 %v3046_v34, %v3043_v36  ;;  %vm2979_vm3 = vcmask 130048  }
 0x2f6   :  { %v3127_v37 = vsub.f32 %v10587_v30, %v3126_v49  ;;  %v3134_v56 = vsub.f32 %v10589_v59, %v3133_v16  ;;  %v3154_v21 = vand.u32 4294901760, %v10601_v31  ;;  %8394 = vmatprep.subr.bf16.mxu0 %v10591_v10  ;;  %v10662_v46 = vpack.c.bf16 %v3133_v16, %v3126_v49 }
 0x2f7   :  { %2916 = vrot.lane.b32.xlu0 %v2873_v5, %s9441_s2  ;;  %v3141_v62 = vsub.f32 %v10593_v12, %v3140_v25  ;;  %v3161_v51 = vand.u32 4294901760, %v10605_v48  ;;  %vm2982_vm4 = vcmask 195584   ;;  %vm2985_vm2 = vcmask 261120  }
 0x2f8   :  { %2918 = vrot.lane.b32.xlu1 %v10542_v35, %s9441_s2  ;;  %v3128_v7 = vand.u32 4294901760, %v3127_v37  ;;  %v3135_v18 = vand.u32 4294901760, %v3134_v56  ;;  %v3155_v50 = vsub.f32 %v10601_v31, %v3154_v21  ;;  %vm2988_vm5 = vcmask 326656  }
 0x2f9   :  { %v3142_v58 = vand.u32 4294901760, %v3141_v62  ;;  %8396 = vmatpush3.bf16.msra.mxu0 %v10591_v10  ;;  %v10670_v36 = vpack.c.bf16 %v3161_v51, %v3154_v21  ;;  %vm2991_vm0 = vcmask 392192   ;;  %vm2994_vm7 = vcmask 457728  }
 0x2fa   :  { %v8405_v43 = vpack.c.bf16 %v3135_v18, %v3128_v7  ;;  %8398 = vmatprep.subr.bf16.mxu0 %v10622_v29  ;;  %vm3024_vm9 = vcmask 523264   ;;  %vm4872_vm10 = vcmask 781313   ;;  %vm4807_vm11 = vcmask 780288  }
 0x2fb   :  { %vm4824_vm12 = vcmask 783363   ;;  %vm4852_vm13 = vcmask 785414  }
 0x2fc   :  { %8406 = vmatprep.subr.bf16.mxu1 %v8405_v43 }
 0x2fd   :  { %8408 = vmatpush3.bf16.msra.mxu1 %v8405_v43  ;;  %8400 = vmatpush3.bf16.msra.mxu0 %v10622_v29 }
 0x35d   :  { %v2891_v3 = vpop.permute.xlu0 %2890  ;;  %v2899_v14 = vpop.permute.xlu1 %2898 }
 0x35e   :  { %v2896_v28 = vmax.f32 %v10502_v8, %v2891_v3  ;;  %v3156_v3 = vand.u32 4294901760, %v3155_v50 }
 0x360   :  { %v10550_v32 = vmax.f32 %v2896_v28, %v2899_v14  ;;  %v7189_v14 = vld [vmem:[%s12099_s3 + $0x78] sm:$0xff] }
 0x361   :  { %v2893_v1 = vpop.permute.xlu0 %2892  ;;  %v2901_v53 = vpop.permute.xlu1 %2900 }
 0x362   :  { %2930 = vrot.lane.b32.xlu0 %v10550_v32, %s9441_s2  ;;  %v2897_v23 = vmax.f32 %v10519_v13, %v2893_v1 }
 0x364   :  { %v10555_v63 = vmax.f32 %v2897_v23, %v2901_v53  ;;  %v3052_v23 = vand.u32 4294901760, %v7189_v14 }
 0x365   :  { %v2909_v33 = vpop.permute.xlu0 %2908 }
 0x366   :  { %2936 = vrot.lane.b32.xlu0 %v10550_v32, %s9443_s12  ;;  %2932 = vrot.lane.b32.xlu1 %v10555_v63, %s9441_s2  ;;  %v2911_v9 = vpop.permute.xlu1 %2910  ;;  %v2914_v44 = vmax.f32 %v10502_v8, %v2909_v33  ;;  %v2924_v17 = vmax.f32 %v2873_v5, %v2909_v33  ;;  %v10595_v8 = vsub.f32 %v7185_v61, %v3040_v39 }
 0x367   :  { %v2915_v54 = vmax.f32 %v10519_v13, %v2911_v9  ;;  %v2925_v42 = vmax.f32 %v10542_v35, %v2911_v9  ;;  %v3162_v5 = vsub.f32 %v10605_v48, %v3161_v51  ;;  %v7188_v35 = vld [vmem:[%s12099_s3 + $0x70] sm:$0xff]  ;;  %v3174_v9 = vsub.f32 %v7189_v14, %v3052_v23 }
 0x368   :  { %v3147_v40 = vand.u32 4294901760, %v10595_v8  ;;  %v3049_v1 = vand.u32 4294901760, %v7188_v35  ;;  %v10652_v61 = vpack.c.bf16 %v10605_v48, %v10601_v31  ;;  %v8421_v39 = vpack.c.bf16 %v10589_v59, %v10587_v30 }
 0x369   :  { %v2917_v38 = vpop.permute.xlu0 %2916  ;;  %v3163_v28 = vand.u32 4294901760, %v3162_v5  ;;  %v3175_v6 = vand.u32 4294901760, %v3174_v9 }
 0x36a   :  { %2942 = vrot.lane.b32.xlu0 %v10550_v32, %s9444_s9  ;;  %2938 = vrot.lane.b32.xlu1 %v10555_v63, %s9443_s12  ;;  %v2922_v47 = vmax.f32 %v2914_v44, %v2917_v38  ;;  %v2919_v19 = vpop.permute.xlu1 %2918  ;;  %v2926_v26 = vmax.f32 %v2924_v17, %v2917_v38  ;;  %v3148_v2 = vsub.f32 %v10595_v8, %v3147_v40 }
 0x36b   :  { %v2923_v13 = vmax.f32 %v2915_v54, %v2919_v19  ;;  %v2927_v57 = vmax.f32 %v2925_v42, %v2919_v19  ;;  %v10640_v53 = vpack.c.bf16 %v3052_v23, %v3049_v1  ;;  %v3167_v33 = vsub.f32 %v7188_v35, %v3049_v1 }
 0x36c   :  { %v3149_v45 = vand.u32 4294901760, %v3148_v2  ;;  %v8413_v38 = vpack.c.bf16 %v3163_v28, %v3156_v3  ;;  %v10645_v44 = vpack.c.bf16 %v10595_v8, %v10593_v12  ;;  %v3176_v4 = vsub.f32 %v3174_v9, %v3175_v6 }
 0x36d   :  { %v3168_v22 = vand.u32 4294901760, %v3167_v33  ;;  %8402 = vmatprep.subr.bf16.mxu0 %v10640_v53  ;;  %v10654_v27 = vpack.c.bf16 %v3174_v9, %v3167_v33  ;;  %v10668_v60 = vpack.c.bf16 %v3147_v40, %v3140_v25 }
 0x36e   :  { %2948 = vrot.lane.b32.xlu0 %v10550_v32, %s9445_s17  ;;  %2944 = vrot.lane.b32.xlu1 %v10555_v63, %s9444_s9  ;;  %v8409_v24 = vpack.c.bf16 %v3149_v45, %v3142_v58  ;;  %v3177_v20 = vand.u32 4294901760, %v3176_v4 }
 0x36f   :  { %8404 = vmatpush3.bf16.msra.mxu0 %v10640_v53  ;;  %v10672_v19 = vpack.c.bf16 %v3175_v6, %v3168_v22 }
 0x370   :  { %8410 = vmatprep.subr.bf16.mxu1 %v8409_v24 }
 0x371   :  { %8412 = vmatpush3.bf16.msra.mxu1 %v8409_v24 }
 0x372   :  { %2956 = vrot.lane.b32.xlu0 %v2922_v47, %s9446_s24  ;;  %2950 = vrot.lane.b32.xlu1 %v10555_v63, %s9445_s17  ;;  %v3169_v47 = vsub.f32 %v3167_v33, %v3168_v22 }
 0x373   :  { %8414 = vmatprep.subr.bf16.mxu1 %v8413_v38 }
 0x374   :  { %v3170_v41 = vand.u32 4294901760, %v3169_v47 }
 0x375   :  { %8416 = vmatpush3.bf16.msra.mxu1 %v8413_v38 }
 0x376   :  { %2964 = vrot.lane.b32.xlu0 %v2926_v26, %s9447_s25  ;;  %2958 = vrot.lane.b32.xlu1 %v2923_v13, %s9446_s24  ;;  %v8417_v17 = vpack.c.bf16 %v3177_v20, %v3170_v41 }
 0x378   :  { %8418 = vmatprep.subr.bf16.mxu1 %v8417_v17 }
 0x379   :  { %8420 = vmatpush3.bf16.msra.mxu1 %v8417_v17 }
 0x37a   :  { %2970 = vrot.lane.b32.xlu0 %v2926_v26, %s9436_s28  ;;  %2966 = vrot.lane.b32.xlu1 %v2927_v57, %s9447_s25 }
 0x37b   :  { %8422 = vmatprep.subr.bf16.mxu1 %v8421_v39 }
 0x37e   :  { %2972 = vrot.lane.b32.xlu1 %v2927_v57, %s9436_s28 }
 0x3d4   :  { %v2931_v34 = vpop.permute.xlu0 %2930 }
 0x3d5   :  { %v2977_v16 = vsel %vm2976_vm15, %v10550_v32, %v2931_v34  ;;  %v3004_v34 = vld [vmem:[%s12099_s3 + $0x18] sm:$0xff] }
 0x3d8   :  { %v2937_v54 = vpop.permute.xlu0 %2936  ;;  %v2933_v31 = vpop.permute.xlu1 %2932 }
 0x3d9   :  { %v2980_v25 = vsel %vm2979_vm3, %v2977_v16, %v2937_v54  ;;  %v2978_v37 = vsel %vm2976_vm15, %v10555_v63, %v2933_v31 }
 0x3dc   :  { %v2943_v26 = vpop.permute.xlu0 %2942  ;;  %v2939_v48 = vpop.permute.xlu1 %2938 }
 0x3dd   :  { %v2983_v40 = vsel %vm2982_vm4, %v2980_v25, %v2943_v26  ;;  %v2981_v21 = vsel %vm2979_vm3, %v2978_v37, %v2939_v48  ;;  %v3625_v48 = vand.u32 4294901760, %v3004_v34 }
 0x3e0   :  { %v2949_v30 = vpop.permute.xlu0 %2948  ;;  %v2945_v13 = vpop.permute.xlu1 %2944 }
 0x3e1   :  { %v2986_v56 = vsel %vm2985_vm2, %v2983_v40, %v2949_v30  ;;  %v2984_v42 = vsel %vm2982_vm4, %v2981_v21, %v2945_v13  ;;  %v10778_v40 = vsub.f32 %v3004_v34, %v3625_v48 }
 0x3e4   :  { %v2957_v59 = vpop.permute.xlu0 %2956  ;;  %v2951_v49 = vpop.permute.xlu1 %2950 }
 0x3e5   :  { %v2989_v51 = vsel %vm2988_vm5, %v2986_v56, %v2957_v59  ;;  %v2987_v7 = vsel %vm2985_vm2, %v2984_v42, %v2951_v49  ;;  %v3006_v59 = vld [vmem:[%s12099_s3 + $0x28] sm:$0xff] }
 0x3e6   :  { %v3631_v21 = vand.u32 4294901760, %v3006_v59 }
 0x3e8   :  { %v2965_v12 = vpop.permute.xlu0 %2964  ;;  %v2959_v8 = vpop.permute.xlu1 %2958 }
 0x3e9   :  { %v2992_v32 = vsel %vm2991_vm0, %v2989_v51, %v2965_v12  ;;  %v2990_v50 = vsel %vm2988_vm5, %v2987_v7, %v2959_v8  ;;  %v3007_v12 = vld [vmem:[%s12099_s3 + $0x30] sm:$0xff]  ;;  %v3008_v8 = vld [vmem:[%s12099_s3 + $0x38] sm:$0xff] }
 0x3ea   :  { %v3637_v51 = vand.u32 4294901760, %v3008_v8 }
 0x3ec   :  { %v2971_v62 = vpop.permute.xlu0 %2970  ;;  %v2967_v2 = vpop.permute.xlu1 %2966 }
 0x3ed   :  { %v2995_v18 = vsel %vm2994_vm7, %v2992_v32, %v2971_v62  ;;  %v2993_v58 = vsel %vm2991_vm0, %v2990_v50, %v2967_v2  ;;  %v3634_v2 = vand.u32 4294901760, %v3007_v12 }
 0x3ee   :  { %v3010_v5 = vrot.slane %v2995_v18, 1  ;;  %v4195_v24 = vrot.slane %v2995_v18, 2 }
 0x3f0   :  { %v2973_v63 = vpop.permute.xlu1 %2972 }
 0x3f1   :  { %v10684_v45 = vsel %vm2994_vm7, %v2993_v58, %v2973_v63 }
 0x3f2   :  { %v3012_v57 = vrot.slane %v10684_v45, 3  ;;  %v4197_v43 = vrot.slane %v10684_v45, 4 }
 0x3f4   :  { %v3014_v3 = vsel %vm2868_vm6, %v3010_v5, %v3012_v57  ;;  %v3028_v28 = vsel %vm3024_vm9, %v3012_v57, 0  ;;  %v10695_v14 = vsel %vm2868_vm6, %v4195_v24, %v4197_v43  ;;  %v10803_v5 = vsub.f32 %v3006_v59, %v3631_v21 }
 0x3f5   :  { %v10690_v35 = vand.u32 4294901760, %v3028_v28  ;;  %v3026_v1 = vsel %vm3024_vm9, %v3014_v3, 0  ;;  %v10805_v57 = vpack.c.bf16 %v3637_v51, %v3634_v2 }
 0x3f6   :  { %v3103_v33 = vand.u32 4294901760, %v3026_v1 }
 0x3f7   :  { %v3114_v23 = vsub.f32 %v3028_v28, %v10690_v35 }
 0x3f8   :  { %7728 = vmatprep.mubr.f32.mxu1 %v3103_v33  ;;  %v3104_v38 = vsub.f32 %v3026_v1, %v3103_v33 }
 0x3f9   :  { %v3115_v9 = vand.u32 4294901760, %v3114_v23  ;;  %7729 = vmatmul.mubr.f32.vlgmr.msra.gmra.mrb[0].mxu1 %v10690_v35 }
 0x3fa   :  { %8424 = vmatpush3.bf16.msra.mxu1 %v8421_v39  ;;  %7747 = vmatprep.mubr.f32.mxu1 %v3104_v38  ;;  %v3105_v22 = vand.u32 4294901760, %v3104_v38  ;;  %v3002_v39 = vld [vmem:[%s12099_s3 + $0x8] sm:$0xff] }
 0x3fb   :  { %v3116_v6 = vsub.f32 %v3114_v23, %v3115_v9  ;;  %8426 = vmatprep.subr.bf16.mxu1 %v10645_v44 }
 0x3fc   :  { %v3106_v47 = vsub.f32 %v3104_v38, %v3105_v22  ;;  %v10820_v38 = vsub.f32 %v3008_v8, %v3637_v51 }
 0x3fd   :  { %v3117_v41 = vand.u32 4294901760, %v3116_v6 }
 0x3fe   :  { %8428 = vmatpush3.bf16.msra.mxu1 %v10645_v44  ;;  %v3107_v4 = vand.u32 4294901760, %v3106_v47  ;;  %v2998_v44 = vrot.slane %v10684_v45, 2  ;;  %v7194_v45 = vld [vmem:[%s12099_s3 + $0xa0] sm:$0xff] }
 0x3ff   :  { %8430 = vmatprep.subr.bf16.mxu1 %v10652_v61 }
 0x400   :  { %7709 = vmatprep.mubr.f32.mxu0 %v3107_v4  ;;  %v3000_v20 = vsel %vm2868_vm6, %v2995_v18, %v2998_v44  ;;  %v3613_v30 = vsel %vm3024_vm9, %v2998_v44, 0  ;;  %v3732_v18 = vand.u32 4294901760, %v10778_v40  ;;  %vm4854_vm6 = vcmask 778240  }
 0x401   :  { %7710 = vmatmul.mubr.f32.vlgmr.msra.gmra.mrb[12].mxu0 %v3117_v41  ;;  %v10780_v37 = vand.u32 4294901760, %v3613_v30 }
 0x402   :  { %8432 = vmatpush3.bf16.msra.mxu1 %v10652_v61  ;;  %v3611_v61 = vsel %vm3024_vm9, %v3000_v20, 0 }
 0x403   :  { %8434 = vmatprep.subr.bf16.mxu1 %v10654_v27  ;;  %v10726_v17 = vand.u32 4294901760, %v3611_v61  ;;  %v10798_v58 = vsub.f32 %v3613_v30, %v10780_v37 }
 0x406   :  { %8436 = vmatpush3.bf16.msra.mxu1 %v10654_v27  ;;  %v3001_v27 = vld [vmem:[%s12099_s3] sm:$0xff] }
 0x407   :  { %8438 = vmatprep.subr.bf16.mxu1 %v10585_v15 }
 0x409   :  { %7748 = vmatmul.mubr.f32.vlgmr.msra.gmra.mrb[0].mxu1 %v3114_v23  ;;  %v3700_v23 = vand.u32 4294901760, %v10798_v58 }
 0x40a   :  { %8440 = vmatpush3.bf16.msra.mxu1 %v10585_v15  ;;  %7766 = vmatprep.mubr.f32.mxu1 %v3105_v22 }
 0x40b   :  { %8442 = vmatprep.subr.bf16.mxu1 %v10591_v10  ;;  %v3701_v41 = vsub.f32 %v10798_v58, %v3700_v23 }
 0x40e   :  { %8444 = vmatpush3.bf16.msra.mxu1 %v10591_v10 }
 0x40f   :  { %8446 = vmatprep.subr.bf16.mxu1 %v10622_v29 }
 0x412   :  { %8448 = vmatpush3.bf16.msra.mxu1 %v10622_v29 }
 0x413   :  { %8450 = vmatprep.subr.bf16.mxu1 %v10640_v53 }
 0x416   :  { %8452 = vmatpush3.bf16.msra.mxu1 %v10640_v53 }
 0x417   :  { %8454 = vmatprep.subr.bf16.mxu1 %v10662_v46 }
 0x419   :  { %7767 = vmatmul.mubr.f32.vlgmr.msra.gmra.mrb[0].mxu1 %v3115_v9  ;;  %v10818_v9 = vsub.f32 %v3007_v12, %v3634_v2  ;;  %v4212_v2 = vsel %vm3024_vm9, %v4197_v43, 0  ;;  %v7195_v43 = vld [vmem:[%s12099_s3 + $0xa8] sm:$0xff] }
 0x41a   :  { %8456 = vmatpush3.bf16.msra.mxu1 %v10662_v46  ;;  %7785 = vmatprep.mubr.f32.mxu1 %v3103_v33  ;;  %v10738_v46 = vsub.f32 %v3611_v61, %v10726_v17  ;;  %v3760_v61 = vand.u32 4294901760, %v10820_v38 }
 0x41b   :  { %8458 = vmatprep.subr.bf16.mxu1 %v10668_v60  ;;  %v3753_v20 = vand.u32 4294901760, %v10818_v9  ;;  %v8529_v8 = vpack.c.bf16 %v10820_v38, %v10818_v9 }
 0x41c   :  { %v3761_v34 = vsub.f32 %v10820_v38, %v3760_v61 }
 0x41e   :  { %8460 = vmatpush3.bf16.msra.mxu1 %v10668_v60  ;;  %v3616_v60 = vand.u32 4294901760, %v3001_v27  ;;  %v3762_v30 = vand.u32 4294901760, %v3761_v34 }
 0x41f   :  { %8462 = vmatprep.subr.bf16.mxu1 %v10670_v36 }
 0x420   :  { %v10750_v54 = vsub.f32 %v3001_v27, %v3616_v60 }
 0x422   :  { %8464 = vmatpush3.bf16.msra.mxu1 %v10670_v36  ;;  %v3690_v36 = vand.u32 4294901760, %v10738_v46  ;;  %v3711_v16 = vand.u32 4294901760, %v10750_v54 }
 0x423   :  { %8466 = vmatprep.subr.bf16.mxu1 %v10672_v19 }
 0x424   :  { %v3691_v13 = vsub.f32 %v10738_v46, %v3690_v36  ;;  %v3712_v32 = vsub.f32 %v10750_v54, %v3711_v16 }
 0x426   :  { %8468 = vmatpush3.bf16.msra.mxu1 %v10672_v19  ;;  %v3003_v19 = vld [vmem:[%s12099_s3 + $0x10] sm:$0xff]  ;;  %v3692_v62 = vand.u32 4294901760, %v3691_v13  ;;  %v3713_v3 = vand.u32 4294901760, %v3712_v32 }
 0x427   :  { %8470 = vmatprep.subr.bf16.mxu1 %v10585_v15  ;;  %v3622_v26 = vand.u32 4294901760, %v3003_v19 }
 0x429   :  { %7786 = vmatmul.mubr.f32.vlgmr.msra.gmra.mrb[0].mxu1 %v10690_v35  ;;  %v10767_v49 = vsub.f32 %v3003_v19, %v3622_v26  ;;  %v10783_v56 = vpack.c.bf16 %v3625_v48, %v3622_v26  ;;  %v3754_v19 = vsub.f32 %v10818_v9, %v3753_v20 }
 0x42a   :  { %8472 = vmatpush3.bf16.msra.mxu1 %v10585_v15  ;;  %7804 = vmatprep.mubr.f32.mxu1 %v3103_v33  ;;  %v3619_v15 = vand.u32 4294901760, %v3002_v39  ;;  %v3746_v33 = vand.u32 4294901760, %v10803_v5 }
 0x42b   :  { %8474 = vmatprep.subr.bf16.mxu1 %v10591_v10  ;;  %v3725_v42 = vand.u32 4294901760, %v10767_v49  ;;  %v3755_v48 = vand.u32 4294901760, %v3754_v19  ;;  %v8521_v59 = vpack.c.bf16 %v10778_v40, %v10767_v49 }
 0x42c   :  { %v10752_v31 = vsub.f32 %v3002_v39, %v3619_v15  ;;  %v3747_v44 = vsub.f32 %v10803_v5, %v3746_v33 }
 0x42d   :  { %v3726_v24 = vsub.f32 %v10767_v49, %v3725_v42  ;;  %v8513_v13 = vpack.c.bf16 %v3762_v30, %v3755_v48 }
 0x42e   :  { %8476 = vmatpush3.bf16.msra.mxu1 %v10591_v10  ;;  %v10755_v10 = vpack.c.bf16 %v3619_v15, %v3616_v60  ;;  %v3718_v25 = vand.u32 4294901760, %v10752_v31  ;;  %v3702_v60 = vand.u32 4294901760, %v3701_v41  ;;  %v3748_v15 = vand.u32 4294901760, %v3747_v44 }
 0x42f   :  { %8478 = vmatprep.subr.bf16.mxu1 %v10622_v29  ;;  %v3727_v6 = vand.u32 4294901760, %v3726_v24 }
 0x430   :  { %v3719_v7 = vsub.f32 %v10752_v31, %v3718_v25 }
 0x432   :  { %8480 = vmatpush3.bf16.msra.mxu1 %v10622_v29  ;;  %v3005_v29 = vld [vmem:[%s12099_s3 + $0x20] sm:$0xff]  ;;  %v3720_v28 = vand.u32 4294901760, %v3719_v7 }
 0x433   :  { %8482 = vmatprep.subr.bf16.mxu1 %v10640_v53 }
 0x434   :  { %v8501_v22 = vpack.c.bf16 %v3720_v28, %v3713_v3 }
 0x436   :  { %8484 = vmatpush3.bf16.msra.mxu1 %v10640_v53  ;;  %v3628_v53 = vand.u32 4294901760, %v3005_v29 }
 0x437   :  { %8486 = vmatprep.subr.bf16.mxu1 %v10755_v10 }
 0x438   :  { %v10795_v50 = vsub.f32 %v3005_v29, %v3628_v53  ;;  %v10801_v63 = vpack.c.bf16 %v3631_v21, %v3628_v53  ;;  %v8517_v29 = vpack.c.bf16 %v10752_v31, %v10750_v54  ;;  %v8549_v53 = vpack.c.bf16 %v3718_v25, %v3711_v16  ;;  %v7190_v16 = vld [vmem:[%s12099_s3 + $0x80] sm:$0xff]  ;;  %v7192_v21 = vld [vmem:[%s12099_s3 + $0x90] sm:$0xff] }
 0x439   :  { %7805 = vmatmul.mubr.f32.vlgmr.msra.gmra.mrb[0].mxu1 %v10690_v35  ;;  %v3733_v35 = vsub.f32 %v10778_v40, %v3732_v18  ;;  %v8561_v54 = vpack.c.bf16 %v3760_v61, %v3753_v20  ;;  %v4210_v31 = vsel %vm3024_vm9, %v10695_v14, 0  ;;  %v7191_v14 = vld [vmem:[%s12099_s3 + $0x88] sm:$0xff]  ;;  %v4221_v32 = vand.u32 4294901760, %v7192_v21 }
 0x43a   :  { %8488 = vmatpush3.bf16.msra.mxu1 %v10755_v10  ;;  %7823 = vmatprep.mubr.f32.mxu1 %v3692_v62  ;;  %v3739_v1 = vand.u32 4294901760, %v10795_v50  ;;  %v8525_v12 = vpack.c.bf16 %v10803_v5, %v10795_v50  ;;  %v10874_v49 = vand.u32 4294901760, %v4210_v31  ;;  %v4218_v40 = vand.u32 4294901760, %v7191_v14  ;;  %v7193_v62 = vld [vmem:[%s12099_s3 + $0x98] sm:$0xff] }
 0x43b   :  { %8490 = vmatprep.subr.bf16.mxu1 %v10783_v56  ;;  %v3734_v47 = vand.u32 4294901760, %v3733_v35  ;;  %v4224_v7 = vand.u32 4294901760, %v7193_v62  ;;  %v10929_v3 = vsub.f32 %v7192_v21, %v4221_v32 }
 0x43c   :  { %v3740_v4 = vsub.f32 %v10795_v50, %v3739_v1  ;;  %v10887_v25 = vsub.f32 %v4210_v31, %v10874_v49  ;;  %v10904_v51 = vsub.f32 %v7191_v14, %v4218_v40  ;;  %v10918_v50 = vand.u32 4294901760, %v4212_v2 }
 0x43d   :  { %v8505_v27 = vpack.c.bf16 %v3734_v47, %v3727_v6  ;;  %v10931_v28 = vsub.f32 %v7193_v62, %v4224_v7  ;;  %v10934_v35 = vpack.c.bf16 %v4224_v7, %v4221_v32  ;;  %v4324_v47 = vand.u32 4294901760, %v10929_v3 }
 0x43e   :  { %8492 = vmatpush3.bf16.msra.mxu1 %v10783_v56  ;;  %v3741_v39 = vand.u32 4294901760, %v3740_v4  ;;  %v4317_v24 = vand.u32 4294901760, %v10904_v51 }
 0x43f   :  { %8494 = vmatprep.subr.bf16.mxu1 %v10801_v63  ;;  %v4331_v4 = vand.u32 4294901760, %v10931_v28  ;;  %v8617_v7 = vpack.c.bf16 %v10931_v28, %v10929_v3 }
 0x440   :  { %v8509_v26 = vpack.c.bf16 %v3748_v15, %v3741_v39  ;;  %v4318_v6 = vsub.f32 %v10904_v51, %v4317_v24 }
 0x441   :  { %v4332_v15 = vsub.f32 %v10931_v28, %v4331_v4 }
 0x442   :  { %8496 = vmatpush3.bf16.msra.mxu1 %v10801_v63  ;;  %v4319_v39 = vand.u32 4294901760, %v4318_v6 }
 0x443   :  { %8498 = vmatprep.subr.bf16.mxu1 %v10805_v57 }
 0x446   :  { %8500 = vmatpush3.bf16.msra.mxu1 %v10805_v57 }
 0x447   :  { %8502 = vmatprep.subr.bf16.mxu1 %v8501_v22 }
 0x449   :  { %7824 = vmatmul.mubr.f32.vlgmr.msra.gmra.mrb[0].mxu1 %v3702_v60  ;;  %v4325_v60 = vsub.f32 %v10929_v3, %v4324_v47 }
 0x44a   :  { %8504 = vmatpush3.bf16.msra.mxu1 %v8501_v22  ;;  %7842 = vmatprep.mubr.f32.mxu1 %v10726_v17 }
 0x44b   :  { %8506 = vmatprep.subr.bf16.mxu1 %v8505_v27 }
 0x44e   :  { %8508 = vmatpush3.bf16.msra.mxu1 %v8505_v27 }
 0x44f   :  { %8510 = vmatprep.subr.bf16.mxu1 %v8509_v26 }
 0x452   :  { %8512 = vmatpush3.bf16.msra.mxu1 %v8509_v26 }
 0x453   :  { %8514 = vmatprep.subr.bf16.mxu1 %v8513_v13 }
 0x456   :  { %8516 = vmatpush3.bf16.msra.mxu1 %v8513_v13 }
 0x457   :  { %8518 = vmatprep.subr.bf16.mxu1 %v8517_v29 }
 0x459   :  { %7843 = vmatmul.mubr.f32.vlgmr.msra.gmra.mrb[0].mxu1 %v10780_v37 }
 0x45a   :  { %8520 = vmatpush3.bf16.msra.mxu1 %v8517_v29  ;;  %7861 = vmatprep.mubr.f32.mxu1 %v10738_v46  ;;  %v8553_v46 = vpack.c.bf16 %v3732_v18, %v3725_v42  ;;  %v4326_v29 = vand.u32 4294901760, %v4325_v60 }
 0x45b   :  { %8522 = vmatprep.subr.bf16.mxu1 %v8521_v59 }
 0x45e   :  { %8524 = vmatpush3.bf16.msra.mxu1 %v8521_v59  ;;  %v4333_v59 = vand.u32 4294901760, %v4332_v15 }
 0x45f   :  { %8526 = vmatprep.subr.bf16.mxu1 %v8525_v12 }
 0x462   :  { %8528 = vmatpush3.bf16.msra.mxu1 %v8525_v12 }
 0x463   :  { %8530 = vmatprep.subr.bf16.mxu1 %v8529_v8 }
 0x466   :  { %8532 = vmatpush3.bf16.msra.mxu1 %v8529_v8 }
 0x467   :  { %8534 = vmatprep.subr.bf16.mxu1 %v10755_v10 }
 0x469   :  { %7862 = vmatmul.mubr.f32.vlgmr.msra.gmra.mrb[0].mxu1 %v10798_v58  ;;  %v7196_v58 = vld [vmem:[%s12099_s3 + $0xb0] sm:$0xff] }
 0x46a   :  { %8536 = vmatpush3.bf16.msra.mxu1 %v10755_v10  ;;  %7880 = vmatprep.mubr.f32.mxu1 %v3690_v36  ;;  %v8557_v36 = vpack.c.bf16 %v3746_v33, %v3739_v1  ;;  %v4230_v1 = vand.u32 4294901760, %v7195_v43  ;;  %v10937_v33 = vsub.f32 %v4212_v2, %v10918_v50  ;;  %v4233_v9 = vand.u32 4294901760, %v7196_v58 }
 0x46b   :  { %8538 = vmatprep.subr.bf16.mxu1 %v10783_v56 }
 0x46c   :  { %v10954_v44 = vsub.f32 %v7195_v43, %v4230_v1  ;;  %v4299_v61 = vand.u32 4294901760, %v10937_v33  ;;  %v10969_v26 = vsub.f32 %v7196_v58, %v4233_v9 }
 0x46e   :  { %8540 = vmatpush3.bf16.msra.mxu1 %v10783_v56  ;;  %v4345_v34 = vand.u32 4294901760, %v10954_v44  ;;  %v4300_v30 = vsub.f32 %v10937_v33, %v4299_v61 }
 0x46f   :  { %8542 = vmatprep.subr.bf16.mxu1 %v10801_v63 }
 0x470   :  { %v4346_v8 = vsub.f32 %v10954_v44, %v4345_v34 }
 0x472   :  { %8544 = vmatpush3.bf16.msra.mxu1 %v10801_v63 }
 0x473   :  { %8546 = vmatprep.subr.bf16.mxu1 %v10805_v57 }
 0x476   :  { %8548 = vmatpush3.bf16.msra.mxu1 %v10805_v57 }
 0x477   :  { %8550 = vmatprep.subr.bf16.mxu1 %v8549_v53 }
 0x479   :  { %7881 = vmatmul.mubr.f32.vlgmr.msra.gmra.mrb[0].mxu1 %v3700_v23 }
 0x47a   :  { %8552 = vmatpush3.bf16.msra.mxu1 %v8549_v53  ;;  %7899 = vmatprep.mubr.f32.mxu1 %v10726_v17  ;;  %v4352_v53 = vand.u32 4294901760, %v10969_v26 }
 0x47b   :  { %8554 = vmatprep.subr.bf16.mxu1 %v8553_v46 }
 0x47c   :  { %v4353_v14 = vsub.f32 %v10969_v26, %v4352_v53 }
 0x47e   :  { %8556 = vmatpush3.bf16.msra.mxu1 %v8553_v46  ;;  %v4354_v21 = vand.u32 4294901760, %v4353_v14  ;;  %v4907_v14 = vld [vmem:[#allocation2 + $0x18] sm:$0xff] }
 0x47f   :  { %8558 = vmatprep.subr.bf16.mxu1 %v8557_v36 }
 0x482   :  { %8560 = vmatpush3.bf16.msra.mxu1 %v8557_v36  ;;  %v4301_v36 = vand.u32 4294901760, %v4300_v30 }
 0x483   :  { %8562 = vmatprep.subr.bf16.mxu1 %v8561_v54 }
 0x486   :  { %8564 = vmatpush3.bf16.msra.mxu1 %v8561_v54  ;;  %v8601_v54 = vpack.c.bf16 %v4333_v59, %v4326_v29 }
 0x487   :  { %8566 = vmatprep.subr.bf16.mxu1 %v10755_v10 }
 0x489   :  { %7900 = vmatmul.mubr.f32.vlgmr.msra.gmra.mrb[0].mxu1 %v10780_v37 }
 0x48a   :  { %8568 = vmatpush3.bf16.msra.mxu1 %v10755_v10  ;;  %7918 = vmatprep.mubr.f32.mxu1 %v10726_v17  ;;  %v4215_v10 = vand.u32 4294901760, %v7190_v16  ;;  %v4289_v17 = vand.u32 4294901760, %v10887_v25 }
 0x48b   :  { %8570 = vmatprep.subr.bf16.mxu1 %v10783_v56 }
 0x48c   :  { %v10907_v42 = vpack.c.bf16 %v4218_v40, %v4215_v10  ;;  %v4290_v18 = vsub.f32 %v10887_v25, %v4289_v17 }
 0x48e   :  { %8572 = vmatpush3.bf16.msra.mxu1 %v10783_v56  ;;  %v10902_v56 = vsub.f32 %v7190_v16, %v4215_v10  ;;  %v4291_v23 = vand.u32 4294901760, %v4290_v18  ;;  %v4347_v16 = vand.u32 4294901760, %v4346_v8 }
 0x48f   :  { %8574 = vmatprep.subr.bf16.mxu1 %v10801_v63 }
 0x490   :  { %v4310_v5 = vand.u32 4294901760, %v10902_v56  ;;  %v8613_v32 = vpack.c.bf16 %v10904_v51, %v10902_v56 }
 0x492   :  { %8576 = vmatpush3.bf16.msra.mxu1 %v10801_v63  ;;  %v7197_v63 = vld [vmem:[%s12099_s3 + $0xb8] sm:$0xff]  ;;  %v4311_v22 = vsub.f32 %v10902_v56, %v4310_v5  ;;  %v8645_v43 = vpack.c.bf16 %v4317_v24, %v4310_v5 }
 0x493   :  { %8578 = vmatprep.subr.bf16.mxu1 %v10805_v57  ;;  %v4236_v38 = vand.u32 4294901760, %v7197_v63 }
 0x494   :  { %v4312_v27 = vand.u32 4294901760, %v4311_v22 }
 0x495   :  { %v10956_v20 = vpack.c.bf16 %v4236_v38, %v4233_v9  ;;  %v10971_v48 = vsub.f32 %v7197_v63, %v4236_v38 }
 0x496   :  { %8580 = vmatpush3.bf16.msra.mxu1 %v10805_v57  ;;  %v4227_v57 = vand.u32 4294901760, %v7194_v45  ;;  %v8597_v13 = vpack.c.bf16 %v4319_v39, %v4312_v27 }
 0x497   :  { %8582 = vmatprep.subr.bf16.mxu1 %v10907_v42  ;;  %v4359_v46 = vand.u32 4294901760, %v10971_v48 }
 0x498   :  { %v10952_v41 = vsub.f32 %v7194_v45, %v4227_v57  ;;  %v8625_v45 = vpack.c.bf16 %v10971_v48, %v10969_v26 }
 0x499   :  { %7919 = vmatmul.mubr.f32.vlgmr.msra.gmra.mrb[0].mxu1 %v10780_v37  ;;  %v10950_v37 = vpack.c.bf16 %v4230_v1, %v4227_v57  ;;  %v4360_v10 = vsub.f32 %v10971_v48, %v4359_v46  ;;  %v8657_v56 = vpack.c.bf16 %v4359_v46, %v4352_v53 }
 0x49a   :  { %8584 = vmatpush3.bf16.msra.mxu1 %v10907_v42  ;;  %7937 = vmatprep.mubr.f32.mxu1 %v4291_v23  ;;  %v4338_v19 = vand.u32 4294901760, %v10952_v41  ;;  %v8621_v18 = vpack.c.bf16 %v10954_v44, %v10952_v41 }
 0x49b   :  { %8586 = vmatprep.subr.bf16.mxu1 %v10934_v35  ;;  %v4361_v62 = vand.u32 4294901760, %v4360_v10  ;;  %v4904_v10 = vld [vmem:[#allocation2] sm:$0xff] }
 0x49c   :  { %v4339_v12 = vsub.f32 %v10952_v41, %v4338_v19 }
 0x49d   :  { %v8609_v2 = vpack.c.bf16 %v4361_v62, %v4354_v21 }
 0x49e   :  { %8588 = vmatpush3.bf16.msra.mxu1 %v10934_v35  ;;  %v4340_v31 = vand.u32 4294901760, %v4339_v12 }
 0x49f   :  { %8590 = vmatprep.subr.bf16.mxu1 %v10950_v37 }
 0x4a0   :  { %v8605_v40 = vpack.c.bf16 %v4347_v16, %v4340_v31  ;;  %v4905_v16 = vld [vmem:[#allocation2 + $0x8] sm:$0xff] }
 0x4a1   :  { %v4935_v62 = vand.u32 4294901760, %v4905_v16 }
 0x4a2   :  { %8592 = vmatpush3.bf16.msra.mxu1 %v10950_v37 }
 0x4a3   :  { %8594 = vmatprep.subr.bf16.mxu1 %v10956_v20 }
 0x4a6   :  { %8596 = vmatpush3.bf16.msra.mxu1 %v10956_v20 }
 0x4a7   :  { %8598 = vmatprep.subr.bf16.mxu1 %v8597_v13 }
 0x4a9   :  { %7938 = vmatmul.mubr.f32.vlgmr.msra.gmra.mrb[0].mxu1 %v4301_v36 }
 0x4aa   :  { %8600 = vmatpush3.bf16.msra.mxu1 %v8597_v13  ;;  %7956 = vmatprep.mubr.f32.mxu1 %v10874_v49 }
 0x4ab   :  { %8602 = vmatprep.subr.bf16.mxu1 %v8601_v54 }
 0x4ae   :  { %8604 = vmatpush3.bf16.msra.mxu1 %v8601_v54 }
 0x4af   :  { %8606 = vmatprep.subr.bf16.mxu1 %v8605_v40 }
 0x4b2   :  { %8608 = vmatpush3.bf16.msra.mxu1 %v8605_v40 }
 0x4b3   :  { %8610 = vmatprep.subr.bf16.mxu1 %v8609_v2 }
 0x4b6   :  { %8612 = vmatpush3.bf16.msra.mxu1 %v8609_v2  ;;  %v4939_v2 = vand.u32 4294901760, %v4907_v14 }
 0x4b7   :  { %8614 = vmatprep.subr.bf16.mxu1 %v8613_v32 }
 0x4b9   :  { %7957 = vmatmul.mubr.f32.vlgmr.msra.gmra.mrb[0].mxu1 %v10918_v50 }
 0x4ba   :  { %8616 = vmatpush3.bf16.msra.mxu1 %v8613_v32  ;;  %7975 = vmatprep.mubr.f32.mxu1 %v10887_v25  ;;  %v8649_v25 = vpack.c.bf16 %v4331_v4, %v4324_v47  ;;  %v4906_v32 = vld [vmem:[#allocation2 + $0x10] sm:$0xff] }
 0x4bb   :  { %8618 = vmatprep.subr.bf16.mxu1 %v8617_v7 }
 0x4be   :  { %8620 = vmatpush3.bf16.msra.mxu1 %v8617_v7  ;;  %v4937_v7 = vand.u32 4294901760, %v4904_v10 }
 0x4bf   :  { %8622 = vmatprep.subr.bf16.mxu1 %v8621_v18 }
 0x4c2   :  { %8624 = vmatpush3.bf16.msra.mxu1 %v8621_v18  ;;  %v4941_v18 = vand.u32 4294901760, %v4906_v32 }
 0x4c3   :  { %8626 = vmatprep.subr.bf16.mxu1 %v8625_v45 }
 0x4c6   :  { %8628 = vmatpush3.bf16.msra.mxu1 %v8625_v45  ;;  %v11053_v45 = vpack.c.bf16 %v4939_v2, %v4935_v62 }
 0x4c7   :  { %8630 = vmatprep.subr.bf16.mxu1 %v10907_v42 }
 0x4c9   :  { %7976 = vmatmul.mubr.f32.vlgmr.msra.gmra.mrb[0].mxu1 %v10937_v33 }
 0x4ca   :  { %8632 = vmatpush3.bf16.msra.mxu1 %v10907_v42  ;;  %7994 = vmatprep.mubr.f32.mxu1 %v4289_v17  ;;  %v8653_v17 = vpack.c.bf16 %v4345_v34, %v4338_v19 }
 0x4cb   :  { %8634 = vmatprep.subr.bf16.mxu1 %v10934_v35 }
 0x4ce   :  { %8636 = vmatpush3.bf16.msra.mxu1 %v10934_v35 }
 0x4cf   :  { %8638 = vmatprep.subr.bf16.mxu1 %v10950_v37 }
 0x4d2   :  { %8640 = vmatpush3.bf16.msra.mxu1 %v10950_v37 }
 0x4d3   :  { %8642 = vmatprep.subr.bf16.mxu1 %v10956_v20 }
 0x4d4   :  { %v7711_v58 = vpop.f32.mrb[12].mxu0 }
 0x4d5   :  { %v3109_v63 = vpop.f32.mrb[13].mxu0 }
 0x4d6   :  { %8644 = vmatpush3.bf16.msra.mxu1 %v10956_v20 }
 0x4d7   :  { %8646 = vmatprep.subr.bf16.mxu1 %v8645_v43 }
 0x4d9   :  { %7995 = vmatmul.mubr.f32.vlgmr.msra.gmra.mrb[0].mxu1 %v4299_v61 }
 0x4da   :  { %8648 = vmatpush3.bf16.msra.mxu1 %v8645_v43  ;;  %8013 = vmatprep.mubr.f32.mxu1 %v10874_v49  ;;  %v11055_v43 = vsub.f32 %v4904_v10, %v4937_v7 }
 0x4db   :  { %8650 = vmatprep.subr.bf16.mxu1 %v8649_v25 }
 0x4de   :  { %8652 = vmatpush3.bf16.msra.mxu1 %v8649_v25  ;;  %v11059_v25 = vsub.f32 %v4907_v14, %v4939_v2 }
 0x4df   :  { %8654 = vmatprep.subr.bf16.mxu1 %v8653_v17 }
 0x4e2   :  { %8656 = vmatpush3.bf16.msra.mxu1 %v8653_v17  ;;  %v11061_v17 = vpack.c.bf16 %v4941_v18, %v4937_v7 }
 0x4e3   :  { %8658 = vmatprep.subr.bf16.mxu1 %v8657_v56 }
 0x4e6   :  { %8660 = vmatpush3.bf16.msra.mxu1 %v8657_v56  ;;  %v11063_v56 = vsub.f32 %v4906_v32, %v4941_v18 }
 0x4e7   :  { %8662 = vmatprep.subr.bf16.mxu1 %v10907_v42 }
 0x4e9   :  { %8014 = vmatmul.mubr.f32.vlgmr.msra.gmra.mrb[0].mxu1 %v10918_v50 }
 0x4ea   :  { %8664 = vmatpush3.bf16.msra.mxu1 %v10907_v42  ;;  %8032 = vmatprep.mubr.f32.mxu1 %v10874_v49  ;;  %v7198_v49 = vld [vmem:[%s12100_s4] ss:$0 sm:$0xff] }
 0x4eb   :  { %8666 = vmatprep.subr.bf16.mxu1 %v10934_v35 }
 0x4ee   :  { %8668 = vmatpush3.bf16.msra.mxu1 %v10934_v35 }
 0x4ef   :  { %8670 = vmatprep.subr.bf16.mxu1 %v10950_v37 }
 0x4f2   :  { %8672 = vmatpush3.bf16.msra.mxu1 %v10950_v37 }
 0x4f3   :  { %8674 = vmatprep.subr.bf16.mxu1 %v10956_v20 }
 0x4f6   :  { %8676 = vmatpush3.bf16.msra.mxu1 %v10956_v20 }
 0x4f7   :  { %8678 = vmatprep.subr.bf16.mxu1 %v11053_v45 }
 0x4f9   :  { %8033 = vmatmul.mubr.f32.vlgmr.msra.gmra.mrb[0].mxu1 %v10918_v50 }
 0x4fa   :  { %5015 = vmatprep.mubr.f32.mxu1 %v12116_v0  ;;  %8680 = vmatpush1.bf16.msra.mxu1 %v11061_v17 }
 0x5cc   :  { %v8034_v51 = vpop.f32.mrb[0].mxu1 }
 0x5cd   :  { %v9109_v42 = vadd.f32 %v8034_v51, %v7711_v58  ;;  %v4784_v5 = vpop.f32.mrb[1].mxu1 }
 0x5ce   :  { %v9110_v24 = vadd.f32 %v4784_v5, %v3109_v63  ;;  %v11057_v63 = vsub.f32 %v4905_v16, %v4935_v62 }
 0x5cf   :  { %v4804_v3 = vadd.f32 %v9109_v42, %v7198_v49 }
 0x5d0   :  { %v4803_v28 = vadd.f32 %v9110_v24, %v7198_v49 }
 0x5d1   :  { %v4806_v35 = vmax.f32 %v4804_v3, 0.0 }
 0x5d2   :  { %v4805_v57 = vmax.f32 %v4803_v28, 0.0  ;;  %v4909_v28 = vld [vmem:[#allocation2 + $0x28] sm:$0xff] }
 0x5d3   :  { %v4855_v50 = vsel %vm4854_vm6, %v4806_v35, -inf  ;;  %v4873_v1 = vsel %vm4872_vm10, %v4806_v35, -inf  ;;  %v4911_v35 = vld [vmem:[#allocation2 + $0x38] sm:$0xff] }
 0x5d4   :  { %v4874_v23 = vrot.slane %v4873_v1, 4  ;;  %v4808_v33 = vsel %vm4807_vm11, %v4805_v57, -inf  ;;  %v4825_v9 = vsel %vm4824_vm12, %v4805_v57, -inf  ;;  %v4853_v38 = vsel %vm4852_vm13, %v4805_v57, -inf  ;;  %v4908_v57 = vld [vmem:[#allocation2 + $0x20] sm:$0xff] }
 0x5d5   :  { %v4809_v22 = vrot.slane %v4808_v33, 4  ;;  %v4826_v6 = vrot.slane %v4825_v9, 4  ;;  %v4856_v47 = vmax.f32 %v4853_v38, %v4855_v50  ;;  %v5029_v50 = vand.u32 4294901760, %v11057_v63 }
 0x5d6   :  { %v4875_v4 = vmax.f32 %v4873_v1, %v4874_v23  ;;  %v12119_v1 = vand.u32 4294901760, %v11059_v25  ;;  %v4947_v38 = vand.u32 4294901760, %v4911_v35 }
 0x5d7   :  { %v4810_v37 = vmax.f32 %v4808_v33, %v4809_v22  ;;  %v4827_v41 = vmax.f32 %v4825_v9, %v4826_v6  ;;  %v4857_v44 = vrot.slane %v4856_v47, 4  ;;  %v4943_v9 = vand.u32 4294901760, %v4909_v28  ;;  %v4910_v22 = vld [vmem:[#allocation2 + $0x30] sm:$0xff] }
 0x5d8   :  { %v4876_v20 = vrot.slane %v4875_v4, 2  ;;  %v4945_v6 = vand.u32 4294901760, %v4908_v57  ;;  %v5030_v14 = vsub.f32 %v11057_v63, %v5029_v50 }
 0x5d9   :  { %v4811_v61 = vrot.slane %v4810_v37, 2  ;;  %v4828_v27 = vrot.slane %v4827_v41, 2  ;;  %v4858_v39 = vmax.f32 %v4856_v47, %v4857_v44  ;;  %v4913_v47 = vld [vmem:[#allocation2 + $0x48] sm:$0xff] }
 0x5da   :  { %v4877_v60 = vmax.f32 %v4875_v4, %v4876_v20  ;;  %v4915_v4 = vld [vmem:[#allocation2 + $0x58] sm:$0xff]  ;;  %v4951_v44 = vand.u32 4294901760, %v4913_v47 }
 0x5db   :  { %v4812_v15 = vmax.f32 %v4810_v37, %v4811_v61  ;;  %v4829_v19 = vmax.f32 %v4827_v41, %v4828_v27  ;;  %v4859_v34 = vrot.slane %v4858_v39, 2  ;;  %v4949_v41 = vand.u32 4294901760, %v4910_v22  ;;  %v4912_v61 = vld [vmem:[#allocation2 + $0x40] sm:$0xff]  ;;  %v4914_v27 = vld [vmem:[#allocation2 + $0x50] sm:$0xff] }
 0x5dc   :  { %v4878_v26 = vrot.slane %v4877_v60, 1  ;;  %v4955_v20 = vand.u32 4294901760, %v4915_v4 }
 0x5dd   :  { %v4813_v48 = vrot.slane %v4812_v15, 1  ;;  %v4860_v13 = vmax.f32 %v4858_v39, %v4859_v34  ;;  %v4830_v59 = vrot.slane %v4829_v19, 1  ;;  %v4917_v39 = vld [vmem:[#allocation2 + $0x68] sm:$0xff]  ;;  %v11085_v34 = vsub.f32 %v4908_v57, %v4945_v6 }
 0x5de   :  { %v4879_v30 = vmax.f32 %v4877_v60, %v4878_v26  ;;  %v11079_v60 = vpack.c.bf16 %v4947_v38, %v4943_v9  ;;  %v4919_v26 = vld [vmem:[#allocation2 + $0x78] sm:$0xff] }
 0x5df   :  { %v4814_v29 = vmax.f32 %v4812_v15, %v4813_v48  ;;  %v4861_v12 = vrot.slane %v4860_v13, 1  ;;  %v4831_v8 = vmax.f32 %v4829_v19, %v4830_v59  ;;  %v11081_v15 = vsub.f32 %v4909_v28, %v4943_v9  ;;  %v4916_v48 = vld [vmem:[#allocation2 + $0x60] sm:$0xff] }
 0x5e0   :  { %4881 = vrot.lane.b32.xlu1 %v4879_v30, %s9441_s2  ;;  %v11083_v19 = vsub.f32 %v4911_v35, %v4947_v38  ;;  %v11091_v59 = vpack.c.bf16 %v4955_v20, %v4951_v44  ;;  %8682 = vmatprep.subr.bf16.mxu1 %v11079_v60  ;;  %v5059_v57 = vand.u32 4294901760, %v11085_v34 }
 0x5e1   :  { %4816 = vrot.lane.b32.xlu0 %v4814_v29, %s9441_s2  ;;  %v4862_v53 = vmax.f32 %v4860_v13, %v4861_v12  ;;  %v11087_v13 = vpack.c.bf16 %v4949_v41, %v4945_v6  ;;  %v11093_v12 = vsub.f32 %v4913_v47, %v4951_v44  ;;  %v5053_v28 = vand.u32 4294901760, %v11081_v15 }
 0x5e2   :  { %v5065_v35 = vand.u32 4294901760, %v11083_v19 }
 0x5e3   :  { %8684 = vmatpush1.bf16.msra.mxu1 %v11087_v13  ;;  %v5054_v6 = vsub.f32 %v11081_v15, %v5053_v28 }
 0x5e4   :  { %4885 = vrot.lane.b32.xlu1 %v4879_v30, %s9443_s12  ;;  %8686 = vmatprep.subr.bf16.mxu1 %v11091_v59  ;;  %v5066_v47 = vsub.f32 %v11083_v19, %v5065_v35 }
 0x5e5   :  { %4833 = vrot.lane.b32.xlu0 %v4831_v8, %s9441_s2 }
 0x5e8   :  { %4868 = vrot.lane.b32.xlu1 %v4862_v53, %s9443_s12 }
 0x5e9   :  { %4864 = vrot.lane.b32.xlu0 %v4862_v53, %s9441_s2 }
 0x5ec   :  { %4837 = vrot.lane.b32.xlu1 %v4831_v8, %s9443_s12 }
 0x5ed   :  { %4820 = vrot.lane.b32.xlu0 %v4814_v29, %s9443_s12 }
 0x652   :  { %v4882_v46 = vpop.permute.xlu1 %4881 }
 0x653   :  { %v4817_v36 = vpop.permute.xlu0 %4816  ;;  %v4884_v54 = vmax.f32 %v4879_v30, %v4882_v46  ;;  %v4918_v30 = vld [vmem:[#allocation2 + $0x70] sm:$0xff]  ;;  %v4957_v46 = vand.u32 4294901760, %v4914_v27 }
 0x654   :  { %v4819_v5 = vmax.f32 %v4814_v29, %v4817_v36  ;;  %v11089_v29 = vsub.f32 %v4910_v22, %v4949_v41  ;;  %v4959_v36 = vand.u32 4294901760, %v4917_v39  ;;  %v4965_v16 = vand.u32 4294901760, %v4918_v30 }
 0x655   :  { %v11109_v62 = vsub.f32 %v4914_v27, %v4957_v46 }
 0x656   :  { %v4886_v31 = vpop.permute.xlu1 %4885  ;;  %v11111_v2 = vsub.f32 %v4917_v39, %v4959_v36  ;;  %v5071_v38 = vand.u32 4294901760, %v11089_v29  ;;  %v5055_v39 = vand.u32 4294901760, %v5054_v6 }
 0x657   :  { %v11049_v40 = vmax.f32 %v4884_v54, %v4886_v31  ;;  %v4834_v21 = vpop.permute.xlu0 %4833  ;;  %v4963_v54 = vand.u32 4294901760, %v4919_v26  ;;  %v4961_v31 = vand.u32 4294901760, %v4916_v48 }
 0x658   :  { %v4836_v42 = vmax.f32 %v4831_v8, %v4834_v21  ;;  %v11096_v8 = vsub.f32 %v4915_v4, %v4955_v20  ;;  %v5060_v4 = vsub.f32 %v11085_v34, %v5059_v57  ;;  %v5072_v20 = vsub.f32 %v11089_v29, %v5071_v38 }
 0x659   :  { %4894 = vrot.lane.b32.xlu1 %v11049_v40, %s9447_s25  ;;  %v11113_v32 = vpack.c.bf16 %v4963_v54, %v4959_v36  ;;  %v11115_v7 = vsub.f32 %v4919_v26, %v4963_v54  ;;  %v11117_v18 = vpack.c.bf16 %v4965_v16, %v4961_v31  ;;  %v5067_v26 = vand.u32 4294901760, %v5066_v47 }
 0x65a   :  { %v4869_v58 = vpop.permute.xlu1 %4868 }
 0x65b   :  { %v4865_v51 = vpop.permute.xlu0 %4864  ;;  %v5113_v6 = vand.u32 4294901760, %v11115_v7 }
 0x65c   :  { %v4867_v49 = vmax.f32 %v4862_v53, %v4865_v51  ;;  %v4953_v53 = vand.u32 4294901760, %v4912_v61  ;;  %v11121_v51 = vsub.f32 %v4918_v30, %v4965_v16  ;;  %v5073_v30 = vand.u32 4294901760, %v5072_v20 }
 0x65d   :  { %v5095_v16 = vand.u32 4294901760, %v11109_v62 }
 0x65e   :  { %v11067_v24 = vmax.f32 %v4867_v49, %v4869_v58  ;;  %v4838_v3 = vpop.permute.xlu1 %4837  ;;  %v11105_v10 = vpack.c.bf16 %v4957_v46, %v4953_v53  ;;  %v11107_v21 = vsub.f32 %v4912_v61, %v4953_v53  ;;  %v11119_v58 = vsub.f32 %v4916_v48, %v4961_v31 }
 0x65f   :  { %v11071_v23 = vmax.f32 %v4836_v42, %v4838_v3  ;;  %v4821_v33 = vpop.permute.xlu0 %4820  ;;  %v5031_v49 = vand.u32 4294901760, %v5030_v14  ;;  %v5042_v42 = vsub.f32 %v11059_v25, %v12119_v1  ;;  %v5047_v3 = vand.u32 4294901760, %v11063_v56 }
 0x660   :  { %v11073_v37 = vmax.f32 %v4819_v5, %v4821_v33  ;;  %4890 = vrot.lane.b32.xlu0 %v11067_v24, %s9443_s12  ;;  %v12118_v5 = vand.u32 4294901760, %v11055_v43  ;;  %8688 = vmatpush1.bf16.msra.mxu1 %v11105_v10  ;;  %v5077_v61 = vand.u32 4294901760, %v11093_v12  ;;  %v5061_v48 = vand.u32 4294901760, %v5060_v4 }
 0x661   :  { %4846 = vrot.lane.b32.xlu1 %v11071_v23, %s9447_s25  ;;  %8690 = vmatprep.subr.bf16.mxu1 %v11113_v32  ;;  %v5043_v33 = vand.u32 4294901760, %v5042_v42  ;;  %v5048_v22 = vsub.f32 %v11063_v56, %v5047_v3  ;;  %v5089_v46 = vand.u32 4294901760, %v11096_v8  ;;  %v5083_v36 = vand.u32 4294901760, %v11107_v21 }
 0x662   :  { %v5036_v9 = vsub.f32 %v11055_v43, %v12118_v5  ;;  %v5078_v53 = vsub.f32 %v11093_v12, %v5077_v61  ;;  %v11149_v31 = vpack.c.bf16 %v5067_v26, %v5055_v39  ;;  %v11152_v14 = vpack.c.bf16 %v5073_v30, %v5061_v48 }
 0x663   :  { %v8693_v41 = vpack.c.bf16 %v5043_v33, %v5031_v49  ;;  %v5049_v27 = vand.u32 4294901760, %v5048_v22  ;;  %v5090_v42 = vsub.f32 %v11096_v8, %v5089_v46  ;;  %v5084_v33 = vsub.f32 %v11107_v21, %v5083_v36 }
 0x664   :  { %4842 = vrot.lane.b32.xlu0 %v11073_v37, %s9443_s12  ;;  %v5037_v44 = vand.u32 4294901760, %v5036_v9  ;;  %8692 = vmatpush1.bf16.msra.mxu1 %v11117_v18  ;;  %v5079_v49 = vand.u32 4294901760, %v5078_v53  ;;  %v5096_v9 = vsub.f32 %v11109_v62, %v5095_v16  ;;  %v5101_v22 = vand.u32 4294901760, %v11111_v2 }
 0x665   :  { %8694 = vmatprep.subr.bf16.mxu1 %v8693_v41  ;;  %v5107_v47 = vand.u32 4294901760, %v11119_v58  ;;  %v5091_v4 = vand.u32 4294901760, %v5090_v42  ;;  %v5085_v41 = vand.u32 4294901760, %v5084_v33  ;;  %v5114_v39 = vsub.f32 %v11115_v7, %v5113_v6 }
 0x666   :  { %v11147_v54 = vpack.c.bf16 %v5049_v27, %v5037_v44  ;;  %v5119_v44 = vand.u32 4294901760, %v11121_v51  ;;  %v5097_v20 = vand.u32 4294901760, %v5096_v9  ;;  %v5102_v27 = vsub.f32 %v11111_v2, %v5101_v22 }
 0x667   :  { %v5108_v26 = vsub.f32 %v11119_v58, %v5107_v47  ;;  %v11164_v48 = vpack.c.bf16 %v5091_v4, %v5079_v49  ;;  %v5115_v55 = vand.u32 4294901760, %v5114_v39  ;;  %v12214_v39 = vand.u32 4294901760, %v11055_v43 }
 0x668   :  { %v5120_v30 = vsub.f32 %v11121_v51, %v5119_v44  ;;  %v11167_v53 = vpack.c.bf16 %v5097_v20, %v5085_v41  ;;  %v5103_v11 = vand.u32 4294901760, %v5102_v27  ;;  %v11207_v41 = vpack.c.bf16 %v5113_v6, %v5101_v22 }
 0x669   :  { %v5109_v0 = vand.u32 4294901760, %v5108_v26  ;;  %v11197_v26 = vpack.c.bf16 %v5047_v3, %v12214_v39  ;;  %v11209_v20 = vpack.c.bf16 %v5119_v44, %v5107_v47  ;;  %v5601_v3 = vld [vmem:[%s12103_s7 + $0x88] sm:$0xff]  ;;  %v5586_v47 = vld [vmem:[%s12103_s7 + $0x10] sm:$0xff]  ;;  %v5587_v44 = vld [vmem:[%s12103_s7 + $0x18] sm:$0xff] }
 0x66a   :  { %v5121_v42 = vand.u32 4294901760, %v5120_v30  ;;  %v11169_v33 = vpack.c.bf16 %v5115_v55, %v5103_v11  ;;  %v11199_v30 = vpack.c.bf16 %v5065_v35, %v5053_v28  ;;  %v11203_v55 = vpack.c.bf16 %v5089_v46, %v5077_v61  ;;  %12216 = vst [vmem:[#allocation10_spill] sm:$0xff] %v11207_v41  ;;  %v5584_v28 = vld [vmem:[%s12103_s7] sm:$0xff]  ;;  %v5602_v46 = vld [vmem:[%s12103_s7 + $0x90] sm:$0xff] }
 0x66b   :  { %v11205_v11 = vpack.c.bf16 %v5095_v16, %v5083_v36  ;;  %12217 = vst [vmem:[#allocation11_spill] sm:$0xff] %v11209_v20  ;;  %v5624_v61 = vand.u32 4294901760, %v5584_v28  ;;  %v5603_v36 = vld [vmem:[%s12103_s7 + $0x98] sm:$0xff]  ;;  %v5678_v22 = vand.u32 4294901760, %v5602_v46  ;;  %v5630_v49 = vand.u32 4294901760, %v5586_v47 }
 0x66c   :  { %v11175_v1 = vpack.c.bf16 %v5121_v42, %v5109_v0  ;;  %v12213_v0 = vand.u32 4294901760, %v11059_v25  ;;  %v11201_v42 = vpack.c.bf16 %v5071_v38, %v5059_v57  ;;  %v5675_v57 = vand.u32 4294901760, %v5601_v3  ;;  %v5585_v38 = vld [vmem:[%s12103_s7 + $0x8] sm:$0xff] }
 0x66d   :  { %12215 = vst [vmem:[#allocation9_spill] sm:$0xff] %v11205_v11  ;;  %v5627_v16 = vand.u32 4294901760, %v5585_v38  ;;  %v5681_v6 = vand.u32 4294901760, %v5603_v36  ;;  %v11239_v4 = vsub.f32 %v5584_v28, %v5624_v61  ;;  %v11243_v9 = vsub.f32 %v5602_v46, %v5678_v22  ;;  %v5604_v11 = vld [vmem:[%s12103_s7 + $0xa0] sm:$0xff] }
 0x66e   :  { %v11193_v27 = vpack.c.bf16 %v12213_v0, %v5029_v50  ;;  %v5600_v50 = vld [vmem:[%s12103_s7 + $0x80] sm:$0xff]  ;;  %v11237_v39 = vsub.f32 %v5601_v3, %v5675_v57  ;;  %v5633_v20 = vand.u32 4294901760, %v5587_v44  ;;  %v11247_v41 = vsub.f32 %v5586_v47, %v5630_v49  ;;  %v5605_v3 = vld [vmem:[%s12103_s7 + $0xa8] sm:$0xff] }
 0x66f   :  { %v5672_v35 = vand.u32 4294901760, %v5600_v50  ;;  %12220 = vst [vmem:[#allocation14_spill] sm:$0xff] %v11239_v4  ;;  %v11241_v5 = vsub.f32 %v5585_v38, %v5627_v16  ;;  %12222 = vst [vmem:[#allocation16_spill] sm:$0xff] %v11243_v9  ;;  %v11245_v52 = vsub.f32 %v5603_v36, %v5681_v6  ;;  %v5588_v28 = vld [vmem:[%s12103_s7 + $0x20] sm:$0xff]  ;;  %v5589_v38 = vld [vmem:[%s12103_s7 + $0x28] sm:$0xff]  ;;  %v11265_v36 = vpack.c.bf16 %v5627_v16, %v5624_v61 }
 0x670   :  { %12219 = vst [vmem:[#allocation13_spill] sm:$0xff] %v11237_v39  ;;  %12224 = vst [vmem:[#allocation18_spill] sm:$0xff] %v11247_v41  ;;  %v5684_v47 = vand.u32 4294901760, %v5604_v11  ;;  %v5639_v41 = vand.u32 4294901760, %v5589_v38  ;;  %v5606_v9 = vld [vmem:[%s12103_s7 + $0xb0] sm:$0xff] }
 0x671   :  { %v11235_v0 = vsub.f32 %v5600_v50, %v5672_v35  ;;  %12221 = vst [vmem:[#allocation15_spill] sm:$0xff] %v11241_v5  ;;  %12223 = vst [vmem:[#allocation17_spill] sm:$0xff] %v11245_v52  ;;  %v11252_v50 = vsub.f32 %v5587_v44, %v5633_v20  ;;  %v11263_v46 = vpack.c.bf16 %v5675_v57, %v5672_v35  ;;  %v5687_v44 = vand.u32 4294901760, %v5605_v3  ;;  %v5607_v5 = vld [vmem:[%s12103_s7 + $0xb8] sm:$0xff]  ;;  %v5590_v16 = vld [vmem:[%s12103_s7 + $0x30] sm:$0xff] }
 0x672   :  { %12227 = vst [vmem:[#allocation21_spill] sm:$0xff] %v11265_v36  ;;  %v11268_v52 = vpack.c.bf16 %v5681_v6, %v5678_v22  ;;  %v11277_v35 = vsub.f32 %v5604_v11, %v5684_v47  ;;  %v11279_v57 = vpack.c.bf16 %v5633_v20, %v5630_v49  ;;  %v5690_v61 = vand.u32 4294901760, %v5606_v9  ;;  %v5591_v22 = vld [vmem:[%s12103_s7 + $0x38] sm:$0xff] }
 0x673   :  { %12218 = vst [vmem:[#allocation12_spill] sm:$0xff] %v11235_v0  ;;  %12225 = vst [vmem:[#allocation19_spill] sm:$0xff] %v11252_v50  ;;  %8774 = vmatprep.subr.bf16.mxu0 %v11263_v46  ;;  %v5636_v50 = vand.u32 4294901760, %v5588_v28  ;;  %v11287_v6 = vsub.f32 %v5605_v3, %v5687_v44  ;;  %v11291_v4 = vsub.f32 %v5589_v38, %v5639_v41  ;;  %v5693_v11 = vand.u32 4294901760, %v5607_v5 }
 0x674   :  { %12226 = vst [vmem:[#allocation20_spill] sm:$0xff] %v11263_v46  ;;  %12228 = vst [vmem:[#allocation22_spill] sm:$0xff] %v11268_v52  ;;  %8776 = vmatpush3.bf16.msra.mxu0 %v11265_v36  ;;  %v11294_v49 = vsub.f32 %v5606_v9, %v5690_v61  ;;  %v5642_v20 = vand.u32 4294901760, %v5590_v16  ;;  %v5645_v36 = vand.u32 4294901760, %v5591_v22  ;;  %v11303_v3 = vpack.c.bf16 %v5687_v44, %v5684_v47 }
 0x675   :  { %12229 = vst [vmem:[#allocation23_spill] sm:$0xff] %v11277_v35  ;;  %12230 = vst [vmem:[#allocation24_spill] sm:$0xff] %v11279_v57  ;;  %v11289_v46 = vsub.f32 %v5588_v28, %v5636_v50  ;;  %8778 = vmatprep.subr.bf16.mxu0 %v11268_v52  ;;  %v11296_v35 = vsub.f32 %v5607_v5, %v5693_v11  ;;  %v11305_v28 = vpack.c.bf16 %v5639_v41, %v5636_v50 }
 0x676   :  { %v11299_v39 = vsub.f32 %v5590_v16, %v5642_v20  ;;  %v11301_v0 = vsub.f32 %v5591_v22, %v5645_v36  ;;  %12231 = vst [vmem:[#allocation25_spill] sm:$0xff] %v11303_v3  ;;  %v11308_v38 = vpack.c.bf16 %v5693_v11, %v5690_v61  ;;  %v11311_v9 = vpack.c.bf16 %v5645_v36, %v5642_v20 }
 0x677   :  { %12232 = vst [vmem:[#allocation26_spill] sm:$0xff] %v11305_v28 }
 0x678   :  { %8780 = vmatpush3.bf16.msra.mxu0 %v11279_v57  ;;  %12233 = vst [vmem:[#allocation27_spill] sm:$0xff] %v11308_v38  ;;  %12234 = vst [vmem:[#allocation28_spill] sm:$0xff] %v11311_v9 }
 0x679   :  { %8782 = vmatprep.subr.bf16.mxu0 %v11303_v3  ;;  %v12279_v3 = vand.u32 4294901760, %v11296_v35 }
 0x67c   :  { %8784 = vmatpush3.bf16.msra.mxu0 %v11305_v28  ;;  %v12278_v28 = vand.u32 4294901760, %v11294_v49 }
 0x67d   :  { %8786 = vmatprep.subr.bf16.mxu0 %v11308_v38  ;;  %v12277_v38 = vand.u32 4294901760, %v11291_v4 }
 0x680   :  { %8788 = vmatpush3.bf16.msra.mxu0 %v11311_v9 }
 0x6cb   :  { %v4895_v16 = vpop.permute.xlu1 %4894 }
 0x6d2   :  { %v4891_v5 = vpop.permute.xlu0 %4890 }
 0x6d3   :  { %v4897_v47 = vsel %vm2979_vm3, %v11067_v24, %v4891_v5  ;;  %v4847_v61 = vpop.permute.xlu1 %4846 }
 0x6d4   :  { %v4898_v41 = vsel %vm2985_vm2, %v4897_v47, %v4895_v16 }
 0x6d5   :  { %v4899_v50 = vsel %vm2991_vm0, %v4898_v41, %v11049_v40 }
 0x6d6   :  { %v4843_v44 = vpop.permute.xlu0 %4842  ;;  %v4901_v22 = vrot.slane %v4899_v50, 7  ;;  %v11434_v50 = vld [vmem:[%s12103_s7 + $0x48] sm:$0xff] }
 0x6d7   :  { %v4849_v36 = vsel %vm2979_vm3, %v11073_v37, %v4843_v44  ;;  %v12235_v37 = vmov 0.0   ;;  %v11439_v44 = vld [vmem:[%s12103_s7 + $0xd0] sm:$0xff] }
 0x6d8   :  { %v4850_v11 = vsel %vm2985_vm2, %v4849_v36, %v4847_v61  ;;  %v11444_v61 = vld [vmem:[%s12103_s7 + $0xd8] sm:$0xff]  ;;  %v12150_v36 = vand.u32 4294901760, %v11289_v46 }
 0x6d9   :  { %v4851_v20 = vsel %vm2991_vm0, %v4850_v11, %v11071_v23  ;;  %v12236_v23 = vpack.c.bf16 %v11059_v25, %v11057_v63  ;;  %v12240_v63 = vpack.c.bf16 %v11096_v8, %v11093_v12  ;;  %v12241_v25 = vpack.c.bf16 %v11109_v62, %v11107_v21  ;;  %v12248_v12 = vld [vmem:[#allocation13_spill] sm:$0xff]  ;;  %v12249_v21 = vld [vmem:[#allocation14_spill] sm:$0xff]  ;;  %v12250_v62 = vld [vmem:[#allocation15_spill] sm:$0xff] }
 0x6da   :  { %v4903_v9 = vsel %vm2631_vm8, %v4851_v20, %v4901_v22  ;;  %v12159_v8 = vand.u32 4294901760, %v12248_v12  ;;  %v12139_v22 = vand.u32 4294901760, %v11291_v4  ;;  %v12138_v11 = vand.u32 4294901760, %v11294_v49 }
 0x6db   :  { %v4933_v24 = vsel %vm3024_vm9, %v4903_v9, 0  ;;  %v11429_v9 = vld [vmem:[%s12103_s7 + $0x40] sm:$0xff]  ;;  %v12137_v20 = vand.u32 4294901760, %v11296_v35  ;;  %vm9449_vm8 = vmmov 0  }
 0x6dc   :  { %v11327_v5 = vand.u32 4294901760, %v4933_v24 }
 0x6de   :  { %v5017_v16 = vsub.f32 %v4933_v24, %v11327_v5 }
 0x6e0   :  { %v5018_v40 = vand.u32 4294901760, %v5017_v16 }
 0x6e2   :  { %v5019_v47 = vsub.f32 %v5017_v16, %v5018_v40 }
 0x6e4   :  { %v5020_v41 = vand.u32 4294901760, %v5019_v47 }
 0x6e6   :  { %5021 = vmatmul.mubr.f32.vlgmr.msra.gmra.mrb[2].mxu1 %v5020_v41 }
 0x6e7   :  { %8696 = vmatpush1.bf16.msra.mxu1 %v11147_v54  ;;  %5171 = vmatprep.mubr.f32.mxu1 %v12235_v37  ;;  %v12237_v54 = vpack.c.bf16 %v11063_v56, %v11055_v43  ;;  %v12242_v43 = vpack.c.bf16 %v11115_v7, %v11111_v2  ;;  %v12243_v56 = vpack.c.bf16 %v11121_v51, %v11119_v58  ;;  %v12157_v2 = vand.u32 4294901760, %v12250_v62  ;;  %v11404_v58 = vld [vmem:[%s12103_s7 + $0xc0] sm:$0xff] }
 0x6e8   :  { %8698 = vmatprep.subr.bf16.mxu1 %v11149_v31  ;;  %v12238_v31 = vpack.c.bf16 %v11083_v19, %v11081_v15  ;;  %v12245_v15 = vld [vmem:[#allocation10_spill] sm:$0xff]  ;;  %v12246_v19 = vld [vmem:[#allocation11_spill] sm:$0xff] }
 0x6eb   :  { %8700 = vmatpush1.bf16.msra.mxu1 %v11152_v14  ;;  %v12239_v14 = vpack.c.bf16 %v11089_v29, %v11085_v34  ;;  %v12247_v34 = vld [vmem:[#allocation12_spill] sm:$0xff] }
 0x6ec   :  { %8702 = vmatprep.subr.bf16.mxu1 %v11164_v48  ;;  %v5850_v29 = vand.u32 4294901760, %v12247_v34 }
 0x6ef   :  { %8704 = vmatpush1.bf16.msra.mxu1 %v11167_v53  ;;  %v12254_v53 = vld [vmem:[#allocation19_spill] sm:$0xff] }
 0x6f0   :  { %8706 = vmatprep.subr.bf16.mxu1 %v11169_v33  ;;  %v12153_v33 = vand.u32 4294901760, %v12254_v53 }
 0x6f3   :  { %8708 = vmatpush1.bf16.msra.mxu1 %v11175_v1  ;;  %v12244_v1 = vld [vmem:[#allocation9_spill] sm:$0xff] }
 0x6f4   :  { %8710 = vmatprep.subr.bf16.mxu1 %v12236_v23  ;;  %v5702_v23 = vand.u32 4294901760, %v11439_v44 }
 0x6f6   :  { %5173 = vmatmul.mubr.f32.vlgmr.msra.gmra.mrb[2].mxu1 %v11327_v5 }
 0x6f7   :  { %8712 = vmatpush1.bf16.msra.mxu1 %v12237_v54  ;;  %5275 = vmatprep.mubr.f32.mxu1 %v12235_v37  ;;  %v5705_v54 = vand.u32 4294901760, %v11444_v61 }
 0x6f8   :  { %8714 = vmatprep.subr.bf16.mxu1 %v12238_v31  ;;  %v11476_v31 = vld [vmem:[%s12103_s7 + $0x50] sm:$0xff] }
 0x6fb   :  { %8716 = vmatpush1.bf16.msra.mxu1 %v12239_v14  ;;  %v11481_v14 = vld [vmem:[%s12103_s7 + $0x58] sm:$0xff] }
 0x6fc   :  { %8718 = vmatprep.subr.bf16.mxu1 %v12240_v63  ;;  %v8911_v63 = vpack.c.bf16 %v12139_v22, %v12150_v36  ;;  %v5615_v36 = vld [vmem:[%s12103_s7 + $0xf8] sm:$0xff] }
 0x6ff   :  { %8720 = vmatpush1.bf16.msra.mxu1 %v12241_v25  ;;  %v8913_v25 = vpack.c.bf16 %v12137_v20, %v12138_v11  ;;  %v11504_v20 = vsub.f32 %v11439_v44, %v5702_v23 }
 0x700   :  { %8722 = vmatprep.subr.bf16.mxu1 %v12242_v43  ;;  %v12149_v43 = vand.u32 4294901760, %v11299_v39 }
 0x703   :  { %8724 = vmatpush1.bf16.msra.mxu1 %v12243_v56  ;;  %v12140_v56 = vand.u32 4294901760, %v11301_v0 }
 0x704   :  { %8726 = vmatprep.subr.bf16.mxu1 %v11053_v45 }
 0x706   :  { %5278 = vmatmul.mubr.f32.vlgmr.msra.gmra.mrb[2].mxu1 %v5017_v16 }
 0x707   :  { %8728 = vmatpush1.bf16.msra.mxu1 %v11061_v17  ;;  %5364 = vmatprep.mubr.f32.mxu1 %v12235_v37 }
 0x708   :  { %8730 = vmatprep.subr.bf16.mxu1 %v11079_v60 }
 0x70b   :  { %8732 = vmatpush1.bf16.msra.mxu1 %v11087_v13 }
 0x70c   :  { %8734 = vmatprep.subr.bf16.mxu1 %v11091_v59 }
 0x70f   :  { %8736 = vmatpush1.bf16.msra.mxu1 %v11105_v10 }
 0x710   :  { %8738 = vmatprep.subr.bf16.mxu1 %v11113_v32 }
 0x713   :  { %8740 = vmatpush1.bf16.msra.mxu1 %v11117_v18 }
 0x714   :  { %8742 = vmatprep.subr.bf16.mxu1 %v11193_v27 }
 0x716   :  { %5368 = vmatmul.mubr.f32.vlgmr.msra.gmra.mrb[2].mxu1 %v5018_v40  ;;  %v5651_v40 = vand.u32 4294901760, %v11434_v50 }
 0x717   :  { %8744 = vmatpush1.bf16.msra.mxu1 %v11197_v26  ;;  %5486 = vmatprep.mubr.f32.mxu1 %v12235_v37  ;;  %v12151_v26 = vand.u32 4294901760, %v11287_v6 }
 0x718   :  { %8746 = vmatprep.subr.bf16.mxu1 %v11199_v30 }
 0x71b   :  { %8748 = vmatpush1.bf16.msra.mxu1 %v11201_v42  ;;  %v5696_v42 = vand.u32 4294901760, %v11404_v58 }
 0x71c   :  { %8750 = vmatprep.subr.bf16.mxu1 %v11203_v55  ;;  %v12255_v55 = vld [vmem:[#allocation23_spill] sm:$0xff] }
 0x71d   :  { %v12152_v27 = vand.u32 4294901760, %v12255_v55  ;;  %v11464_v47 = vsub.f32 %v11404_v58, %v5696_v42 }
 0x71f   :  { %8752 = vmatpush1.bf16.msra.mxu1 %v12244_v1  ;;  %v8909_v16 = vpack.c.bf16 %v12151_v26, %v12152_v27  ;;  %v5599_v26 = vld [vmem:[%s12103_s7 + $0x78] sm:$0xff] }
 0x720   :  { %8754 = vmatprep.subr.bf16.mxu1 %v12245_v15  ;;  %v11497_v15 = vsub.f32 %v11434_v50, %v5651_v40 }
 0x723   :  { %8756 = vmatpush1.bf16.msra.mxu1 %v12246_v19  ;;  %v5654_v19 = vand.u32 4294901760, %v11476_v31 }
 0x724   :  { %8758 = vmatprep.subr.bf16.mxu1 %v11053_v45  ;;  %v12158_v45 = vand.u32 4294901760, %v12249_v21 }
 0x725   :  { %v11516_v11 = vsub.f32 %v11476_v31, %v5654_v19 }
 0x726   :  { %5488 = vmatmul.mubr.f32.vlgmr.msra.gmra.mrb[2].mxu1 %v11327_v5  ;;  %v8903_v48 = vpack.c.bf16 %v12157_v2, %v12158_v45 }
 0x727   :  { %8760 = vmatpush1.bf16.msra.mxu1 %v11061_v17  ;;  %5574 = vmatprep.mubr.f32.mxu1 %v12235_v37  ;;  %v8901_v17 = vpack.c.bf16 %v12159_v8, %v5850_v29  ;;  %v5851_v37 = vsub.f32 %v12247_v34, %v5850_v29 }
 0x728   :  { %8762 = vmatprep.subr.bf16.mxu1 %v11079_v60  ;;  %v12251_v60 = vld [vmem:[#allocation16_spill] sm:$0xff] }
 0x72b   :  { %8764 = vmatpush1.bf16.msra.mxu1 %v11087_v13  ;;  %v12156_v13 = vand.u32 4294901760, %v12251_v60 }
 0x72c   :  { %8766 = vmatprep.subr.bf16.mxu1 %v11091_v59  ;;  %v12252_v59 = vld [vmem:[#allocation17_spill] sm:$0xff] }
 0x72d   :  { %v12155_v7 = vand.u32 4294901760, %v12252_v59 }
 0x72f   :  { %8768 = vmatpush1.bf16.msra.mxu1 %v11105_v10  ;;  %v11409_v10 = vld [vmem:[%s12103_s7 + $0xc8] sm:$0xff]  ;;  %v8905_v30 = vpack.c.bf16 %v12155_v7, %v12156_v13  ;;  %v5669_v13 = vand.u32 4294901760, %v5599_v26 }
 0x730   :  { %8770 = vmatprep.subr.bf16.mxu1 %v11113_v32  ;;  %v12253_v32 = vld [vmem:[#allocation18_spill] sm:$0xff] }
 0x731   :  { %v12154_v51 = vand.u32 4294901760, %v12253_v32  ;;  %v11600_v8 = vsub.f32 %v5599_v26, %v5669_v13 }
 0x733   :  { %8772 = vmatpush1.bf16.msra.mxu1 %v11117_v18  ;;  %v5699_v18 = vand.u32 4294901760, %v11409_v10  ;;  %v8907_v24 = vpack.c.bf16 %v12153_v33, %v12154_v51 }
 0x734   :  { %8902 = vmatprep.subr.bf16.mxu1 %v8901_v17  ;;  %v5657_v17 = vand.u32 4294901760, %v11481_v14 }
 0x735   :  { %v11469_v41 = vsub.f32 %v11409_v10, %v5699_v18 }
 0x736   :  { %5576 = vmatmul.mubr.f32.vlgmr.msra.gmra.mrb[2].mxu1 %v11327_v5  ;;  %v5648_v5 = vand.u32 4294901760, %v11429_v9  ;;  %v11519_v22 = vsub.f32 %v11481_v14, %v5657_v17  ;;  %v11589_v7 = vpack.c.bf16 %v5657_v17, %v5654_v19 }
 0x737   :  { %8904 = vmatpush3.bf16.msra.mxu1 %v8903_v48  ;;  %v12148_v48 = vand.u32 4294901760, %v11464_v47 }
 0x738   :  { %8906 = vmatprep.subr.bf16.mxu1 %v8905_v30  ;;  %v11494_v1 = vsub.f32 %v11429_v9, %v5648_v5  ;;  %v12143_v30 = vand.u32 4294901760, %v11469_v41  ;;  %v8915_v9 = vpack.c.bf16 %v12140_v56, %v12149_v43  ;;  %v12145_v56 = vand.u32 4294901760, %v11516_v11  ;;  %v5614_v43 = vld [vmem:[%s12103_s7 + $0xf0] sm:$0xff]  ;;  %12259 = vst [vmem:[#allocation12_spill] sm:$0xff] %v11589_v7 }
 0x739   :  { %v12144_v14 = vand.u32 4294901760, %v11519_v22 }
 0x73a   :  { %v12142_v50 = vand.u32 4294901760, %v11494_v1  ;;  %v8917_v44 = vpack.c.bf16 %v12143_v30, %v12148_v48 }
 0x73b   :  { %8908 = vmatpush3.bf16.msra.mxu1 %v8907_v24  ;;  %v11507_v24 = vsub.f32 %v11444_v61, %v5705_v54  ;;  %v12147_v61 = vand.u32 4294901760, %v11504_v20 }
 0x73c   :  { %8910 = vmatprep.subr.bf16.mxu1 %v8909_v16  ;;  %v12141_v16 = vand.u32 4294901760, %v11497_v15 }
 0x73e   :  { %v8919_v31 = vpack.c.bf16 %v12141_v16, %v12142_v50  ;;  %v5612_v16 = vld [vmem:[%s12103_s7 + $0xe0] sm:$0xff] }
 0x73f   :  { %8912 = vmatpush3.bf16.msra.mxu1 %v8911_v63  ;;  %v12146_v63 = vand.u32 4294901760, %v11507_v24  ;;  %v5708_v50 = vand.u32 4294901760, %v5612_v16 }
 0x740   :  { %8914 = vmatprep.subr.bf16.mxu1 %v8913_v25 }
 0x741   :  { %v8921_v25 = vpack.c.bf16 %v12146_v63, %v12147_v61 }
 0x743   :  { %8916 = vmatpush3.bf16.msra.mxu1 %v8915_v9  ;;  %v8923_v9 = vpack.c.bf16 %v12144_v14, %v12145_v56  ;;  %v5597_v14 = vld [vmem:[%s12103_s7 + $0x68] sm:$0xff]  ;;  %v11553_v56 = vsub.f32 %v5612_v16, %v5708_v50  ;;  %v11571_v16 = vpack.c.bf16 %v5699_v18, %v5696_v42  ;;  %v11585_v42 = vpack.c.bf16 %v5705_v54, %v5702_v23 }
 0x744   :  { %8918 = vmatprep.subr.bf16.mxu1 %v8917_v44  ;;  %v5613_v44 = vld [vmem:[%s12103_s7 + $0xe8] sm:$0xff]  ;;  %v5714_v18 = vand.u32 4294901760, %v5614_v43 }
 0x745   :  { %v5711_v30 = vand.u32 4294901760, %v5613_v44  ;;  %12256 = vst [vmem:[#allocation9_spill] sm:$0xff] %v11571_v16  ;;  %12258 = vst [vmem:[#allocation11_spill] sm:$0xff] %v11585_v42  ;;  %8790 = vmatprep.subr.bf16.mxu0 %v11571_v16  ;;  %v12276_v16 = vand.u32 4294901760, %v11289_v46 }
 0x746   :  { %v11592_v2 = vsub.f32 %v5614_v43, %v5714_v18 }
 0x747   :  { %8920 = vmatpush3.bf16.msra.mxu1 %v8919_v31  ;;  %v5596_v31 = vld [vmem:[%s12103_s7 + $0x60] sm:$0xff]  ;;  %v11555_v63 = vsub.f32 %v5613_v44, %v5711_v30  ;;  %v11573_v44 = vpack.c.bf16 %v5651_v40, %v5648_v5  ;;  %v5717_v5 = vand.u32 4294901760, %v5615_v36  ;;  %v11598_v54 = vpack.c.bf16 %v5711_v30, %v5708_v50 }
 0x748   :  { %8922 = vmatprep.subr.bf16.mxu1 %v8921_v25  ;;  %v5660_v25 = vand.u32 4294901760, %v5596_v31  ;;  %v5948_v19 = vand.u32 4294901760, %v11592_v2 }
 0x749   :  { %12257 = vst [vmem:[#allocation10_spill] sm:$0xff] %v11573_v44  ;;  %v5941_v27 = vand.u32 4294901760, %v11555_v63  ;;  %8792 = vmatpush3.bf16.msra.mxu0 %v11573_v44  ;;  %v11594_v45 = vsub.f32 %v5615_v36, %v5717_v5  ;;  %12260 = vst [vmem:[#allocation13_spill] sm:$0xff] %v11598_v54  ;;  %v12261_v36 = vand.u32 4294901760, %v12248_v12  ;;  %v11616_v29 = vpack.c.bf16 %v5717_v5, %v5714_v18 }
 0x74a   :  { %v11557_v61 = vsub.f32 %v5596_v31, %v5660_v25  ;;  %v5934_v31 = vand.u32 4294901760, %v11553_v56  ;;  %8794 = vmatprep.subr.bf16.mxu0 %v11585_v42 }
 0x74b   :  { %8924 = vmatpush3.bf16.msra.mxu1 %v8923_v9  ;;  %v5663_v9 = vand.u32 4294901760, %v5597_v14  ;;  %v5955_v17 = vand.u32 4294901760, %v11594_v45  ;;  %12263 = vst [vmem:[#allocation15_spill] sm:$0xff] %v11616_v29 }
 0x74c   :  { %v5822_v58 = vand.u32 4294901760, %v11557_v61  ;;  %v8925_v33 = vpack.c.bf16 %v5941_v27, %v5934_v31 }
 0x74d   :  { %v11559_v48 = vsub.f32 %v5597_v14, %v5663_v9  ;;  %v5598_v14 = vld [vmem:[%s12103_s7 + $0x70] sm:$0xff]  ;;  %8796 = vmatpush3.bf16.msra.mxu0 %v11589_v7  ;;  %v11613_v26 = vpack.c.bf16 %v5663_v9, %v5660_v25  ;;  %v8929_v30 = vpack.c.bf16 %v5955_v17, %v5948_v19  ;;  %v5935_v25 = vsub.f32 %v11553_v56, %v5934_v31 }
 0x74e   :  { %v5666_v40 = vand.u32 4294901760, %v5598_v14  ;;  %8926 = vmatprep.subr.bf16.mxu1 %v8925_v33  ;;  %v5843_v33 = vand.u32 4294901760, %v11600_v8  ;;  %8798 = vmatprep.subr.bf16.mxu0 %v11598_v54  ;;  %v5942_v9 = vsub.f32 %v11555_v63, %v5941_v27 }
 0x74f   :  { %v5829_v10 = vand.u32 4294901760, %v11559_v48  ;;  %12262 = vst [vmem:[#allocation14_spill] sm:$0xff] %v11613_v26  ;;  %v5936_v5 = vand.u32 4294901760, %v5935_v25 }
 0x750   :  { %v11596_v23 = vsub.f32 %v5598_v14, %v5666_v40  ;;  %v5858_v14 = vsub.f32 %v12248_v12, %v12261_v36  ;;  %v11619_v44 = vpack.c.bf16 %v5669_v13, %v5666_v40  ;;  %v5949_v40 = vsub.f32 %v11592_v2, %v5948_v19 }
 0x751   :  { %v8927_v51 = vpack.c.bf16 %v5829_v10, %v5822_v58  ;;  %8800 = vmatpush3.bf16.msra.mxu0 %v11613_v26  ;;  %v5830_v18 = vsub.f32 %v11559_v48, %v5829_v10  ;;  %v5844_v27 = vsub.f32 %v11600_v8, %v5843_v33  ;;  %v12275_v26 = vand.u32 4294901760, %v11287_v6 }
 0x752   :  { %v5836_v43 = vand.u32 4294901760, %v11596_v23  ;;  %v5859_v50 = vand.u32 4294901760, %v5858_v14  ;;  %12264 = vst [vmem:[#allocation16_spill] sm:$0xff] %v11619_v44  ;;  %8802 = vmatprep.subr.bf16.mxu0 %v11616_v29  ;;  %v12274_v29 = vand.u32 4294901760, %v12255_v55 }
 0x753   :  { %8928 = vmatpush3.bf16.msra.mxu1 %v8927_v51  ;;  %v5852_v51 = vand.u32 4294901760, %v5851_v37  ;;  %v5823_v37 = vsub.f32 %v11557_v61, %v5822_v58  ;;  %v5845_v10 = vand.u32 4294901760, %v5844_v27 }
 0x754   :  { %v8931_v42 = vpack.c.bf16 %v5843_v33, %v5836_v43  ;;  %8930 = vmatprep.subr.bf16.mxu1 %v8929_v30  ;;  %v5831_v30 = vand.u32 4294901760, %v5830_v18  ;;  %v5837_v31 = vsub.f32 %v11596_v23, %v5836_v43  ;;  %v4920_v33 = vld [vmem:[%s12102_s6] sm:$0x3] }
 0x755   :  { %v8805_v36 = vpack.c.bf16 %v5859_v50, %v5852_v51  ;;  %8804 = vmatpush3.bf16.msra.mxu0 %v11619_v44  ;;  %v5824_v14 = vand.u32 4294901760, %v5823_v37  ;;  %v5956_v51 = vsub.f32 %v11594_v45, %v5955_v17  ;;  %v12265_v18 = vld [vmem:[#allocation8_spill] sm:$0xff]  ;;  %v12269_v17 = vand.u32 4294901760, %v12250_v62 }
 0x756   :  { %v5838_v44 = vand.u32 4294901760, %v5837_v31 }
 0x757   :  { %8932 = vmatpush3.bf16.msra.mxu1 %v8931_v42  ;;  %8806 = vmatprep.subr.bf16.mxu0 %v8805_v36  ;;  %v5943_v42 = vand.u32 4294901760, %v5942_v9  ;;  %v11631_v50 = vpack.c.bf16 %v5831_v30, %v5824_v14  ;;  %v5950_v36 = vand.u32 4294901760, %v5949_v40  ;;  %v5957_v58 = vand.u32 4294901760, %v5956_v51 }
 0x758   :  { %v11637_v9 = vpack.c.bf16 %v5845_v10, %v5838_v44  ;;  %v5746_v19 = vsub.f32 %v12250_v62, %v12269_v17 }
 0x759   :  { %v11627_v13 = vpack.c.bf16 %v5943_v42, %v5936_v5  ;;  %v11635_v25 = vpack.c.bf16 %v5957_v58, %v5950_v36  ;;  %v12266_v5 = vsub.s32 0, %v12265_v18  ;;  %v12267_v42 = vsub.s32 1, %v12265_v18 }
 0x75a   :  { %v12268_v58 = vand.u32 4294901760, %v12249_v21 }
 0x75b   :  { %v4925_v44 = vrot.slane %v4920_v33, %v12266_v5  ;;  %v4929_v14 = vrot.slane %v4920_v33, %v12267_v42  ;;  %v12270_v33 = vand.u32 4294901760, %v12251_v60  ;;  %v12271_v42 = vand.u32 4294901760, %v12252_v59 }
 0x75c   :  { %v5739_v10 = vsub.f32 %v12249_v21, %v12268_v58  ;;  %v12273_v58 = vand.u32 4294901760, %v12254_v53 }
 0x75d   :  { %v5865_v18 = vsub.f32 %v12251_v60, %v12270_v33 }
 0x75e   :  { %v5760_v33 = vsub.f32 %v12254_v53, %v12273_v58 }
 0x809   :  { %v5577_v30 = vpop.f32.mrb[2].mxu1 }
 0x80a   :  { %v9111_v40 = vadd.f32 %v5577_v30, %v4925_v44  ;;  %v5579_v51 = vpop.f32.mrb[3].mxu1 }
 0x80b   :  { %v9112_v31 = vadd.f32 %v5579_v51, %v4929_v14  ;;  %v5872_v14 = vsub.f32 %v12252_v59, %v12271_v42  ;;  %v5747_v51 = vand.u32 4294901760, %v5746_v19  ;;  %v5879_v19 = vsub.f32 %v12255_v55, %v12274_v29 }
 0x80c   :  { %v5582_v27 = vmax.f32 %v9111_v40, 0.0  ;;  %v5740_v40 = vand.u32 4294901760, %v5739_v10  ;;  %v5774_v29 = vsub.f32 %v11291_v4, %v12277_v38  ;;  %v12281_v38 = vand.u32 4294901760, %v11301_v0 }
 0x80d   :  { %v5583_v36 = vmax.f32 %v9112_v31, 0.0  ;;  %v12272_v31 = vand.u32 4294901760, %v12253_v32  ;;  %v5873_v37 = vand.u32 4294901760, %v5872_v14 }
 0x80e   :  { %v11657_v43 = vand.u32 4294901760, %v5582_v27  ;;  %v8807_v54 = vpack.c.bf16 %v5747_v51, %v5740_v40  ;;  %v5788_v52 = vsub.f32 %v11301_v0, %v12281_v38 }
 0x80f   :  { %v11662_v5 = vand.u32 4294901760, %v5583_v36 }
 0x810   :  { %v11668_v44 = vsub.f32 %v5582_v27, %v11657_v43  ;;  %v5753_v27 = vsub.f32 %v12253_v32, %v12272_v31  ;;  %v5886_v31 = vsub.f32 %v11287_v6, %v12275_v26  ;;  %v5893_v26 = vsub.f32 %v11294_v49, %v12278_v28 }
 0x811   :  { %v11674_v30 = vsub.f32 %v5583_v36, %v11662_v5  ;;  %6374 = vmatprep.mubr.f32.mxu1 %v11662_v5  ;;  %v5866_v36 = vand.u32 4294901760, %v5865_v18  ;;  %v5761_v18 = vand.u32 4294901760, %v5760_v33 }
 0x812   :  { %v12177_v17 = vand.u32 4294901760, %v11668_v44  ;;  %6376 = vmatmul.mubr.f32.vlgmr.msra.gmra.mrb[4].mxu1 %v11657_v43  ;;  %v5754_v7 = vand.u32 4294901760, %v5753_v27  ;;  %v5880_v27 = vand.u32 4294901760, %v5879_v19  ;;  %v5887_v33 = vand.u32 4294901760, %v5886_v31 }
 0x813   :  { %v12184_v42 = vand.u32 4294901760, %v11674_v30  ;;  %v8809_v51 = vpack.c.bf16 %v5873_v37, %v5866_v36  ;;  %v12282_v19 = vand.u32 4294901760, %v11464_v47  ;;  %v12283_v31 = vand.u32 4294901760, %v11469_v41 }
 0x814   :  { %v5728_v10 = vsub.f32 %v11668_v44, %v12177_v17  ;;  %v5767_v17 = vsub.f32 %v11289_v46, %v12276_v16  ;;  %v8811_v16 = vpack.c.bf16 %v5761_v18, %v5754_v7  ;;  %v8813_v36 = vpack.c.bf16 %v5887_v33, %v5880_v27 }
 0x815   :  { %v5722_v58 = vsub.f32 %v11674_v30, %v12184_v42  ;;  %v5900_v42 = vsub.f32 %v11296_v35, %v12279_v3  ;;  %v5775_v3 = vand.u32 4294901760, %v5774_v29  ;;  %v5907_v7 = vsub.f32 %v11464_v47, %v12282_v19 }
 0x816   :  { %v5729_v40 = vand.u32 4294901760, %v5728_v10  ;;  %v5768_v28 = vand.u32 4294901760, %v5767_v17  ;;  %v5894_v10 = vand.u32 4294901760, %v5893_v26  ;;  %v5914_v18 = vsub.f32 %v11469_v41, %v12283_v31 }
 0x817   :  { %v5723_v14 = vand.u32 4294901760, %v5722_v58  ;;  %v12280_v58 = vand.u32 4294901760, %v11299_v39  ;;  %v5901_v37 = vand.u32 4294901760, %v5900_v42  ;;  %v12284_v17 = vand.u32 4294901760, %v11494_v1 }
 0x818   :  { %v12285_v42 = vand.u32 4294901760, %v11497_v15  ;;  %v5915_v27 = vand.u32 4294901760, %v5914_v18  ;;  %v12286_v33 = vand.u32 4294901760, %v11504_v20 }
 0x819   :  { %5724 = vmatprep.mubr.f32.mxu0 %v5723_v14  ;;  %v5781_v57 = vsub.f32 %v11299_v39, %v12280_v58  ;;  %v8817_v58 = vpack.c.bf16 %v5901_v37, %v5894_v10  ;;  %v5795_v29 = vsub.f32 %v11494_v1, %v12284_v17  ;;  %v12288_v10 = vand.u32 4294901760, %v11516_v11 }
 0x81a   :  { %5730 = vmatmul.mubr.f32.vlgmr.msra.gmra.mrb[14].mxu0 %v5729_v40  ;;  %v5789_v40 = vand.u32 4294901760, %v5788_v52  ;;  %v5802_v26 = vsub.f32 %v11497_v15, %v12285_v42  ;;  %v5921_v38 = vsub.f32 %v11504_v20, %v12286_v33  ;;  %v12287_v52 = vand.u32 4294901760, %v11507_v24 }
 0x81b   :  { %8808 = vmatpush3.bf16.msra.mxu0 %v8807_v54  ;;  %5960 = vmatprep.mubr.f32.mxu0 %v11662_v5  ;;  %v5782_v14 = vand.u32 4294901760, %v5781_v57  ;;  %v8815_v54 = vpack.c.bf16 %v5775_v3, %v5768_v28  ;;  %v5796_v28 = vand.u32 4294901760, %v5795_v29  ;;  %v5809_v37 = vsub.f32 %v11516_v11, %v12288_v10 }
 0x81c   :  { %8810 = vmatprep.subr.bf16.mxu0 %v8809_v51  ;;  %v5908_v51 = vand.u32 4294901760, %v5907_v7  ;;  %v5928_v57 = vsub.f32 %v11507_v24, %v12287_v52  ;;  %v5803_v3 = vand.u32 4294901760, %v5802_v26  ;;  %v5922_v31 = vand.u32 4294901760, %v5921_v38  ;;  %v6490_v26 = vld [vmem:[#allocation4 + $0x20] sm:$0xff] }
 0x81d   :  { %v5810_v42 = vand.u32 4294901760, %v5809_v37  ;;  %v8841_v29 = vpack.c.bf16 %v12252_v59, %v12251_v60  ;;  %v8853_v60 = vpack.c.bf16 %v11469_v41, %v11464_v47  ;;  %v12294_v59 = vld [vmem:[#allocation20_spill] sm:$0xff]  ;;  %v12304_v47 = vld [vmem:[#allocation10_spill] sm:$0xff]  ;;  %v12305_v41 = vld [vmem:[#allocation11_spill] sm:$0xff]  ;;  %v6522_v38 = vand.u32 4294901760, %v6490_v26 }
 0x81e   :  { %v8821_v7 = vpack.c.bf16 %v5915_v27, %v5908_v51  ;;  %v5929_v18 = vand.u32 4294901760, %v5928_v57  ;;  %v8823_v17 = vpack.c.bf16 %v5803_v3, %v5796_v28  ;;  %v6491_v51 = vld [vmem:[#allocation4 + $0x28] sm:$0xff]  ;;  %v6492_v57 = vld [vmem:[#allocation4 + $0x30] sm:$0xff] }
 0x81f   :  { %8812 = vmatpush3.bf16.msra.mxu0 %v8811_v16  ;;  %v8819_v16 = vpack.c.bf16 %v5789_v40, %v5782_v14  ;;  %v6525_v52 = vand.u32 4294901760, %v6491_v51 }
 0x820   :  { %8814 = vmatprep.subr.bf16.mxu0 %v8813_v36  ;;  %v12289_v36 = vand.u32 4294901760, %v11519_v22  ;;  %v8825_v14 = vpack.c.bf16 %v5929_v18, %v5922_v31  ;;  %v6528_v31 = vand.u32 4294901760, %v6492_v57 }
 0x822   :  { %v5816_v19 = vsub.f32 %v11519_v22, %v12289_v36  ;;  %v11833_v36 = vsub.f32 %v6490_v26, %v6522_v38 }
 0x823   :  { %8816 = vmatpush3.bf16.msra.mxu0 %v8815_v54  ;;  %v8837_v54 = vpack.c.bf16 %v12248_v12, %v12247_v34  ;;  %v8845_v34 = vpack.c.bf16 %v11287_v6, %v12255_v55  ;;  %v8847_v12 = vpack.c.bf16 %v11291_v4, %v11289_v46  ;;  %v8855_v6 = vpack.c.bf16 %v11497_v15, %v11494_v1  ;;  %v12297_v55 = vld [vmem:[#allocation22_spill] sm:$0xff]  ;;  %v12307_v1 = vld [vmem:[#allocation13_spill] sm:$0xff] }
 0x824   :  { %8818 = vmatprep.subr.bf16.mxu0 %v8817_v58  ;;  %v5817_v33 = vand.u32 4294901760, %v5816_v19  ;;  %v8839_v58 = vpack.c.bf16 %v12250_v62, %v12249_v21  ;;  %v8849_v21 = vpack.c.bf16 %v11296_v35, %v11294_v49  ;;  %v8851_v62 = vpack.c.bf16 %v11301_v0, %v11299_v39  ;;  %v12308_v15 = vld [vmem:[#allocation14_spill] sm:$0xff] }
 0x825   :  { %v8857_v4 = vpack.c.bf16 %v11507_v24, %v11504_v20  ;;  %v8859_v46 = vpack.c.bf16 %v11519_v22, %v11516_v11  ;;  %v12290_v0 = vpack.c.bf16 %v11555_v63, %v11553_v56  ;;  %v12291_v39 = vpack.c.bf16 %v11559_v48, %v11557_v61  ;;  %v12298_v22 = vld [vmem:[#allocation24_spill] sm:$0xff]  ;;  %v12299_v11 = vld [vmem:[#allocation25_spill] sm:$0xff]  ;;  %v12309_v48 = vld [vmem:[#allocation15_spill] sm:$0xff] }
 0x826   :  { %v8827_v40 = vpack.c.bf16 %v5817_v33, %v5810_v42  ;;  %v12292_v35 = vpack.c.bf16 %v11594_v45, %v11592_v2  ;;  %v12293_v49 = vpack.c.bf16 %v11600_v8, %v11596_v23  ;;  %v12300_v45 = vld [vmem:[#allocation26_spill] sm:$0xff]  ;;  %v12301_v2 = vld [vmem:[#allocation27_spill] sm:$0xff]  ;;  %v12302_v8 = vld [vmem:[#allocation28_spill] sm:$0xff]  ;;  %v12311_v61 = vand.u32 4294901760, %v11668_v44 }
 0x827   :  { %8820 = vmatpush3.bf16.msra.mxu0 %v8819_v16  ;;  %v12303_v20 = vld [vmem:[#allocation9_spill] sm:$0xff]  ;;  %v12306_v56 = vld [vmem:[#allocation12_spill] sm:$0xff]  ;;  %v6493_v16 = vld [vmem:[#allocation4 + $0x38] sm:$0xff]  ;;  %v11846_v33 = vpack.c.bf16 %v6525_v52, %v6522_v38 }
 0x828   :  { %8822 = vmatprep.subr.bf16.mxu0 %v8821_v7  ;;  %v12310_v24 = vld [vmem:[#allocation16_spill] sm:$0xff]  ;;  %v6487_v23 = vld [vmem:[#allocation4 + $0x8] sm:$0xff]  ;;  %v11838_v7 = vsub.f32 %v6491_v51, %v6525_v52  ;;  %v6531_v18 = vand.u32 4294901760, %v6493_v16 }
 0x829   :  { %v6486_v63 = vld [vmem:[#allocation4] sm:$0xff] }
 0x82a   :  { %v11843_v42 = vsub.f32 %v6493_v16, %v6531_v18  ;;  %v6631_v16 = vand.u32 4294901760, %v11833_v36 }
 0x82b   :  { %8824 = vmatpush3.bf16.msra.mxu0 %v8823_v17  ;;  %v11841_v17 = vsub.f32 %v6492_v57, %v6528_v31 }
 0x82c   :  { %8826 = vmatprep.subr.bf16.mxu0 %v8825_v14  ;;  %v11850_v14 = vpack.c.bf16 %v6531_v18, %v6528_v31  ;;  %v12199_v31 = vand.u32 4294901760, %v11838_v7 }
 0x82f   :  { %8828 = vmatpush3.bf16.msra.mxu0 %v8827_v40 }
 0x830   :  { %8830 = vmatprep.subr.bf16.mxu0 %v11627_v13  ;;  %v8843_v13 = vpack.c.bf16 %v12254_v53, %v12253_v32  ;;  %v12295_v32 = vld [vmem:[#allocation21_spill] sm:$0xff]  ;;  %v12296_v53 = vand.u32 4294901760, %v11674_v30 }
 0x833   :  { %8832 = vmatpush3.bf16.msra.mxu0 %v11631_v50  ;;  %v6488_v50 = vld [vmem:[#allocation4 + $0x10] sm:$0xff] }
 0x834   :  { %8834 = vmatprep.subr.bf16.mxu0 %v11635_v25  ;;  %v9448_v25 = vmov 0.0|0.0  }
 0x835   :  { %8965 = vmatprep.subr.bf16.mxu1 %v9448_v25 }
 0x837   :  { %8836 = vmatpush3.bf16.msra.mxu0 %v11637_v9  ;;  %v6510_v9 = vand.u32 4294901760, %v6486_v63 }
 0x838   :  { %8838 = vmatprep.subr.bf16.mxu0 %v8837_v54 }
 0x83a   :  { %5962 = vmatmul.mubr.f32.vlgmr.msra.gmra.mrb[16].mxu0 %v11657_v43 }
 0x83b   :  { %8840 = vmatpush3.bf16.msra.mxu0 %v8839_v58  ;;  %6097 = vmatprep.mubr.f32.mxu0 %v11674_v30  ;;  %v6516_v30 = vand.u32 4294901760, %v6488_v50 }
 0x83c   :  { %8842 = vmatprep.subr.bf16.mxu0 %v8841_v29 }
 0x83d   :  { %v11829_v10 = vsub.f32 %v6488_v50, %v6516_v30 }
 0x83f   :  { %8844 = vmatpush3.bf16.msra.mxu0 %v8843_v13 }
 0x840   :  { %8846 = vmatprep.subr.bf16.mxu0 %v8845_v34 }
 0x843   :  { %8848 = vmatpush3.bf16.msra.mxu0 %v8847_v12  ;;  %v6494_v12 = vld [vmem:[#allocation4 + $0x40] sm:$0xff] }
 0x844   :  { %8850 = vmatprep.subr.bf16.mxu0 %v8849_v21  ;;  %v6495_v21 = vld [vmem:[#allocation4 + $0x48] sm:$0xff] }
 0x847   :  { %8852 = vmatpush3.bf16.msra.mxu0 %v8851_v62  ;;  %v6534_v62 = vand.u32 4294901760, %v6494_v12 }
 0x848   :  { %8854 = vmatprep.subr.bf16.mxu0 %v8853_v60  ;;  %v6537_v60 = vand.u32 4294901760, %v6495_v21 }
 0x84b   :  { %8856 = vmatpush3.bf16.msra.mxu0 %v8855_v6  ;;  %v6496_v6 = vld [vmem:[#allocation4 + $0x50] sm:$0xff] }
 0x84c   :  { %8858 = vmatprep.subr.bf16.mxu0 %v8857_v4  ;;  %v6497_v4 = vld [vmem:[#allocation4 + $0x58] sm:$0xff] }
 0x84f   :  { %8860 = vmatpush3.bf16.msra.mxu0 %v8859_v46  ;;  %v6498_v46 = vld [vmem:[#allocation4 + $0x60] sm:$0xff] }
 0x850   :  { %8862 = vmatprep.subr.bf16.mxu0 %v12290_v0  ;;  %v11859_v0 = vpack.c.bf16 %v6537_v60, %v6534_v62 }
 0x853   :  { %8864 = vmatpush3.bf16.msra.mxu0 %v12291_v39  ;;  %v11861_v39 = vsub.f32 %v6494_v12, %v6534_v62  ;;  %v12197_v12 = vand.u32 4294901760, %v11843_v42  ;;  %v7199_v62 = vld [vmem:[%s12104_s8] ss:$0 sm:$0xff] }
 0x854   :  { %8866 = vmatprep.subr.bf16.mxu0 %v12292_v35  ;;  %v11863_v35 = vsub.f32 %v6495_v21, %v6537_v60 }
 0x857   :  { %8868 = vmatpush3.bf16.msra.mxu0 %v12293_v49  ;;  %v6540_v49 = vand.u32 4294901760, %v6496_v6 }
 0x858   :  { %8870 = vmatprep.subr.bf16.mxu0 %v12294_v59 }
 0x85a   :  { %6100 = vmatmul.mubr.f32.vlgmr.msra.gmra.mrb[18].mxu0 %v11668_v44  ;;  %v6489_v44 = vld [vmem:[#allocation4 + $0x18] sm:$0xff] }
 0x85b   :  { %8872 = vmatpush3.bf16.msra.mxu0 %v12295_v32  ;;  %6204 = vmatprep.mubr.f32.mxu0 %v12296_v53  ;;  %v6519_v27 = vand.u32 4294901760, %v6489_v44  ;;  %v6501_v53 = vld [vmem:[#allocation4 + $0x78] sm:$0xff] }
 0x85c   :  { %8874 = vmatprep.subr.bf16.mxu0 %v12297_v55 }
 0x85d   :  { %v11831_v37 = vsub.f32 %v6489_v44, %v6519_v27  ;;  %v11836_v19 = vpack.c.bf16 %v6519_v27, %v6516_v30 }
 0x85f   :  { %8876 = vmatpush3.bf16.msra.mxu0 %v12298_v22 }
 0x860   :  { %8878 = vmatprep.subr.bf16.mxu0 %v12299_v11 }
 0x863   :  { %8880 = vmatpush3.bf16.msra.mxu0 %v12300_v45 }
 0x864   :  { %8882 = vmatprep.subr.bf16.mxu0 %v12301_v2 }
 0x867   :  { %8884 = vmatpush3.bf16.msra.mxu0 %v12302_v8 }
 0x868   :  { %8886 = vmatprep.subr.bf16.mxu0 %v12303_v20 }
 0x86b   :  { %8888 = vmatpush3.bf16.msra.mxu0 %v12304_v47 }
 0x86c   :  { %8890 = vmatprep.subr.bf16.mxu0 %v12305_v41 }
 0x86f   :  { %8892 = vmatpush3.bf16.msra.mxu0 %v12306_v56 }
 0x870   :  { %8894 = vmatprep.subr.bf16.mxu0 %v12307_v1 }
 0x873   :  { %8896 = vmatpush3.bf16.msra.mxu0 %v12308_v15 }
 0x874   :  { %8898 = vmatprep.subr.bf16.mxu0 %v12309_v48 }
 0x877   :  { %8900 = vmatpush3.bf16.msra.mxu0 %v12310_v24 }
 0x878   :  { %8934 = vmatprep.subr.bf16.mxu0 %v12294_v59  ;;  %v6499_v59 = vld [vmem:[#allocation4 + $0x68] sm:$0xff] }
 0x87a   :  { %6208 = vmatmul.mubr.f32.vlgmr.msra.gmra.mrb[20].mxu0 %v12311_v61 }
 0x87b   :  { %8936 = vmatpush3.bf16.msra.mxu0 %v12295_v32  ;;  %6478 = vmatprep.mubr.f32.mxu0 %v11662_v5  ;;  %v6513_v5 = vand.u32 4294901760, %v6487_v23  ;;  %v6500_v32 = vld [vmem:[#allocation4 + $0x70] sm:$0xff] }
 0x87c   :  { %8938 = vmatprep.subr.bf16.mxu0 %v12297_v55  ;;  %v12312_v55 = vmov 0.0  }
 0x87d   :  { %v11823_v28 = vpack.c.bf16 %v6513_v5, %v6510_v9  ;;  %v11827_v3 = vsub.f32 %v6487_v23, %v6513_v5  ;;  %8067 = vmatprep.mubr.msk.f32.mxu1 %vm9449_vm8, %v12312_v55  ;;  %v6624_v5 = vand.u32 4294901760, %v11831_v37 }
 0x87f   :  { %8940 = vmatpush3.bf16.msra.mxu0 %v12298_v22  ;;  %8967 = vmatpush3.bf16.msra.mxu1 %v11823_v28  ;;  %v6543_v22 = vand.u32 4294901760, %v6497_v4  ;;  %v6610_v61 = vand.u32 4294901760, %v11827_v3  ;;  %v6625_v51 = vsub.f32 %v11831_v37, %v6624_v5 }
 0x880   :  { %8942 = vmatprep.subr.bf16.mxu0 %v12299_v11  ;;  %8968 = vmatprep.subr.bf16.mxu1 %v9448_v25  ;;  %v6546_v11 = vand.u32 4294901760, %v6498_v46 }
 0x881   :  { %v6611_v50 = vsub.f32 %v11827_v3, %v6610_v61  ;;  %v6626_v57 = vand.u32 4294901760, %v6625_v51 }
 0x883   :  { %8944 = vmatpush3.bf16.msra.mxu0 %v12300_v45  ;;  %8970 = vmatpush3.bf16.msra.mxu1 %v11836_v19  ;;  %v11868_v45 = vsub.f32 %v6496_v6, %v6540_v49  ;;  %v6612_v30 = vand.u32 4294901760, %v6611_v50  ;;  %v6653_v6 = vsub.f32 %v11843_v42, %v12197_v12 }
 0x884   :  { %8946 = vmatprep.subr.bf16.mxu0 %v12301_v2  ;;  %8971 = vmatprep.subr.bf16.mxu1 %v9448_v25  ;;  %v6549_v2 = vand.u32 4294901760, %v6499_v59 }
 0x887   :  { %8948 = vmatpush3.bf16.msra.mxu0 %v12302_v8  ;;  %8973 = vmatpush3.bf16.msra.mxu1 %v11846_v33  ;;  %v6552_v8 = vand.u32 4294901760, %v6500_v32 }
 0x888   :  { %8950 = vmatprep.subr.bf16.mxu0 %v12303_v20  ;;  %8974 = vmatprep.subr.bf16.mxu1 %v9448_v25  ;;  %v6555_v20 = vand.u32 4294901760, %v6501_v53 }
 0x88a   :  { %v11904_v27 = vpack.c.bf16 %v6555_v20, %v6552_v8 }
 0x88b   :  { %8952 = vmatpush3.bf16.msra.mxu0 %v12304_v47  ;;  %8976 = vmatpush3.bf16.msra.mxu1 %v11850_v14  ;;  %v11871_v47 = vpack.c.bf16 %v6543_v22, %v6540_v49 }
 0x88c   :  { %8954 = vmatprep.subr.bf16.mxu0 %v12305_v41  ;;  %8977 = vmatprep.subr.bf16.mxu1 %v9448_v25  ;;  %v11873_v41 = vsub.f32 %v6497_v4, %v6543_v22 }
 0x88e   :  { %v12193_v51 = vand.u32 4294901760, %v11873_v41 }
 0x88f   :  { %8956 = vmatpush3.bf16.msra.mxu0 %v12306_v56  ;;  %8979 = vmatpush3.bf16.msra.mxu1 %v11859_v0  ;;  %v11875_v56 = vsub.f32 %v6498_v46, %v6546_v11 }
 0x890   :  { %8958 = vmatprep.subr.bf16.mxu0 %v12307_v1  ;;  %8980 = vmatprep.subr.bf16.mxu1 %v9448_v25  ;;  %v11877_v1 = vsub.f32 %v6499_v59, %v6549_v2  ;;  %v6654_v59 = vand.u32 4294901760, %v6653_v6 }
 0x893   :  { %8960 = vmatpush3.bf16.msra.mxu0 %v12308_v15  ;;  %v11879_v15 = vsub.f32 %v6500_v32, %v6552_v8  ;;  %8982 = vmatpush3.bf16.msra.mxu1 %v11871_v47  ;;  %v12196_v32 = vand.u32 4294901760, %v11861_v39 }
 0x894   :  { %8962 = vmatprep.subr.bf16.mxu0 %v12309_v48  ;;  %v11881_v48 = vsub.f32 %v6501_v53, %v6555_v20  ;;  %8983 = vmatprep.subr.bf16.mxu1 %v9448_v25  ;;  %v12195_v53 = vand.u32 4294901760, %v11863_v35 }
 0x895   :  { %v6660_v20 = vsub.f32 %v11861_v39, %v12196_v32 }
 0x897   :  { %8964 = vmatpush3.bf16.msra.mxu0 %v12310_v24 }
 0x89a   :  { %6480 = vmatmul.mubr.f32.vlgmr.msra.gmra.mrb[22].mxu0 %v11657_v43  ;;  %v11825_v43 = vsub.f32 %v6486_v63, %v6510_v9  ;;  %v11886_v63 = vpack.c.bf16 %v6549_v2, %v6546_v11  ;;  %v6617_v9 = vand.u32 4294901760, %v11829_v10 }
 0x89c   :  { %v6603_v24 = vand.u32 4294901760, %v11825_v43  ;;  %v6618_v26 = vsub.f32 %v11829_v10, %v6617_v9  ;;  %8985 = vmatpush3.bf16.msra.mxu1 %v11886_v63 }
 0x89d   :  { %8986 = vmatprep.subr.bf16.mxu1 %v9448_v25 }
 0x89e   :  { %v6604_v23 = vsub.f32 %v11825_v43, %v6603_v24  ;;  %v6619_v52 = vand.u32 4294901760, %v6618_v26  ;;  %v12194_v26 = vand.u32 4294901760, %v11868_v45 }
 0x8a0   :  { %v6605_v44 = vand.u32 4294901760, %v6604_v23  ;;  %v11911_v18 = vpack.c.bf16 %v6626_v57, %v6619_v52  ;;  %8988 = vmatpush3.bf16.msra.mxu1 %v11904_v27  ;;  %v6667_v23 = vsub.f32 %v11863_v35, %v12195_v53  ;;  %v6681_v57 = vsub.f32 %v11873_v41, %v12193_v51 }
 0x8a1   :  { %8989 = vmatprep.subr.bf16.mxu1 %v9448_v25 }
 0x8a2   :  { %v11907_v38 = vpack.c.bf16 %v6612_v30, %v6605_v44  ;;  %v6661_v44 = vand.u32 4294901760, %v6660_v20  ;;  %v6668_v30 = vand.u32 4294901760, %v6667_v23 }
 0x8a4   :  { %v9002_v52 = vpack.c.bf16 %v6668_v30, %v6661_v44 }
 0x8e5   :  { %v7553_v40 = vpop.f32.mrb[4].mxu1 }
 0x8e6   :  { %v7554_v54 = vpop.f32.mrb[5].mxu1 }
 0x8e7   :  { %v11855_v58 = vadd.f32 %v7554_v54, %v7553_v40  ;;  %v6632_v40 = vsub.f32 %v11833_v36, %v6631_v16  ;;  %v6639_v54 = vsub.f32 %v11838_v7, %v12199_v31 }
 0x8e9   :  { %v6640_v21 = vand.u32 4294901760, %v6639_v54  ;;  %v12192_v54 = vand.u32 4294901760, %v11875_v56 }
 0x8ed   :  { %v7413_v29 = vpop.f32.mrb[14].mxu0 }
 0x8ee   :  { %v7414_v13 = vpop.f32.mrb[15].mxu0 }
 0x8ef   :  { %v11857_v34 = vadd.f32 %v7414_v13, %v7413_v29  ;;  %v6633_v29 = vand.u32 4294901760, %v6632_v40  ;;  %v12198_v13 = vand.u32 4294901760, %v11841_v17 }
 0x8f1   :  { %v6646_v60 = vsub.f32 %v11841_v17, %v12198_v13  ;;  %v11932_v4 = vpack.c.bf16 %v6640_v21, %v6633_v29  ;;  %v5732_v22 = vadd.f32 %v11857_v34, %v7199_v62  ;;  %v6674_v34 = vsub.f32 %v11868_v45, %v12194_v26 }
 0x8f2   :  { %v12191_v29 = vand.u32 4294901760, %v11877_v1  ;;  %v6682_v21 = vand.u32 4294901760, %v6681_v57  ;;  %v6688_v62 = vsub.f32 %v11875_v56, %v12192_v54  ;;  %v9017_v57 = vpack.c.bf16 %v11831_v37, %v11829_v10 }
 0x8f3   :  { %v6647_v49 = vand.u32 4294901760, %v6646_v60  ;;  %v6675_v40 = vand.u32 4294901760, %v6674_v34  ;;  %v9014_v34 = vpack.c.bf16 %v11827_v3, %v11825_v43  ;;  %v12313_v43 = vand.u32 4294901760, %v11838_v7 }
 0x8f4   :  { %v6695_v60 = vsub.f32 %v11877_v1, %v12191_v29  ;;  %v12315_v10 = vand.u32 4294901760, %v11843_v42 }
 0x8f5   :  { %v8999_v8 = vpack.c.bf16 %v6654_v59, %v6647_v49  ;;  %v9005_v6 = vpack.c.bf16 %v6682_v21, %v6675_v40  ;;  %v12190_v59 = vand.u32 4294901760, %v11879_v15  ;;  %v9020_v40 = vpack.c.bf16 %v11838_v7, %v11833_v36 }
 0x8f6   :  { %v6696_v49 = vand.u32 4294901760, %v6695_v60  ;;  %v9023_v21 = vpack.c.bf16 %v11843_v42, %v11841_v17  ;;  %v9026_v60 = vpack.c.bf16 %v11863_v35, %v11861_v39  ;;  %v9068_v3 = vpack.c.bf16 %v12313_v43, %v6631_v16 }
 0x8f7   :  { %v12318_v36 = vand.u32 4294901760, %v11868_v45  ;;  %v12319_v7 = vand.u32 4294901760, %v11873_v41  ;;  %v12321_v42 = vand.u32 4294901760, %v11877_v1 }
 0x8f9   :  { %v9077_v16 = vpack.c.bf16 %v12319_v7, %v12318_v36 }
 0x90d   :  { %v7448_v46 = vpop.f32.mrb[16].mxu0 }
 0x90e   :  { %v7449_v11 = vpop.f32.mrb[17].mxu0 }
 0x90f   :  { %v7450_v2 = vadd.f32 %v7449_v11, %v7448_v46  ;;  %v6689_v46 = vand.u32 4294901760, %v6688_v62 }
 0x911   :  { %v5964_v50 = vadd.f32 %v7450_v2, %v5732_v22  ;;  %v12189_v22 = vand.u32 4294901760, %v11881_v48  ;;  %v9008_v11 = vpack.c.bf16 %v6696_v49, %v6689_v46  ;;  %v6702_v2 = vsub.f32 %v11879_v15, %v12190_v59 }
 0x913   :  { %v6709_v20 = vsub.f32 %v11881_v48, %v12189_v22  ;;  %v6703_v23 = vand.u32 4294901760, %v6702_v2 }
 0x915   :  { %v6710_v44 = vand.u32 4294901760, %v6709_v20  ;;  %v9029_v20 = vpack.c.bf16 %v11873_v41, %v11868_v45 }
 0x917   :  { %v9011_v30 = vpack.c.bf16 %v6710_v44, %v6703_v23  ;;  %v9032_v23 = vpack.c.bf16 %v11877_v1, %v11875_v56  ;;  %v9035_v44 = vpack.c.bf16 %v11881_v48, %v11879_v15 }
 0x92d   :  { %v7483_v62 = vpop.f32.mrb[18].mxu0 }
 0x92e   :  { %v7484_v46 = vpop.f32.mrb[19].mxu0 }
 0x92f   :  { %v7485_v49 = vadd.f32 %v7484_v46, %v7483_v62 }
 0x931   :  { %v6102_v2 = vadd.f32 %v7485_v49, %v5964_v50 }
 0x94d   :  { %v7518_v22 = vpop.f32.mrb[20].mxu0 }
 0x94e   :  { %v7519_v59 = vpop.f32.mrb[21].mxu0 }
 0x94f   :  { %v7520_v29 = vadd.f32 %v7519_v59, %v7518_v22 }
 0x951   :  { %v6210_v54 = vadd.f32 %v7520_v29, %v6102_v2 }
 0x953   :  { %v6378_v51 = vadd.f32 %v11855_v58, %v6210_v54  ;;  %v9062_v58 = vpack.c.bf16 %v6610_v61, %v6603_v24  ;;  %v12314_v24 = vand.u32 4294901760, %v11841_v17  ;;  %v12316_v61 = vand.u32 4294901760, %v11861_v39 }
 0x954   :  { %v12320_v17 = vand.u32 4294901760, %v11875_v56  ;;  %v12322_v39 = vand.u32 4294901760, %v11879_v15 }
 0x955   :  { %v9071_v37 = vpack.c.bf16 %v12315_v10, %v12314_v24 }
 0x96d   :  { %v7588_v26 = vpop.f32.mrb[22].mxu0 }
 0x96e   :  { %v7589_v53 = vpop.f32.mrb[23].mxu0 }
 0x96f   :  { %v7590_v32 = vadd.f32 %v7589_v53, %v7588_v26 }
 0x971   :  { %v6482_v62 = vadd.f32 %v7590_v32, %v6378_v51 }
 0x973   :  { %v6485_v50 = vmax.f32 %v6482_v62, 0.0 }
 0x975   :  { %v11984_v46 = vand.u32 4294901760, %v6485_v50 }
 0x977   :  { %v6591_v49 = vsub.f32 %v6485_v50, %v11984_v46 }
 0x979   :  { %v6592_v12 = vand.u32 4294901760, %v6591_v49 }
 0x97b   :  { %v6593_v13 = vsub.f32 %v6591_v49, %v6592_v12 }
 0x97d   :  { %v6594_v31 = vand.u32 4294901760, %v6593_v13 }
 0x97f   :  { %8068 = vmatmul.mubr.f32.vlgmr.msra.gmra.mrb[6].mxu1 %v6594_v31  ;;  %v9080_v31 = vpack.c.bf16 %v12321_v42, %v12320_v17 }
 0x980   :  { %8991 = vmatpush3.bf16.msra.mxu1 %v11907_v38  ;;  %8102 = vmatprep.mubr.msk.f32.mxu1 %vm9449_vm8, %v12312_v55  ;;  %v9065_v38 = vpack.c.bf16 %v6624_v5, %v6617_v9  ;;  %v12317_v9 = vand.u32 4294901760, %v11863_v35  ;;  %v12323_v35 = vand.u32 4294901760, %v11881_v48 }
 0x981   :  { %8992 = vmatprep.subr.bf16.mxu1 %v9448_v25 }
 0x982   :  { %v9074_v5 = vpack.c.bf16 %v12317_v9, %v12316_v61 }
 0x984   :  { %8994 = vmatpush3.bf16.msra.mxu1 %v11911_v18  ;;  %v9083_v18 = vpack.c.bf16 %v12323_v35, %v12322_v39 }
 0x985   :  { %8995 = vmatprep.subr.bf16.mxu1 %v9448_v25 }
 0x988   :  { %8997 = vmatpush3.bf16.msra.mxu1 %v11932_v4 }
 0x989   :  { %8998 = vmatprep.subr.bf16.mxu1 %v9448_v25 }
 0x98c   :  { %9000 = vmatpush3.bf16.msra.mxu1 %v8999_v8 }
 0x98d   :  { %9001 = vmatprep.subr.bf16.mxu1 %v9448_v25 }
 0x990   :  { %9003 = vmatpush3.bf16.msra.mxu1 %v9002_v52 }
 0x991   :  { %9004 = vmatprep.subr.bf16.mxu1 %v9448_v25 }
 0x994   :  { %9006 = vmatpush3.bf16.msra.mxu1 %v9005_v6 }
 0x995   :  { %9007 = vmatprep.subr.bf16.mxu1 %v9448_v25 }
 0x998   :  { %9009 = vmatpush3.bf16.msra.mxu1 %v9008_v11 }
 0x999   :  { %9010 = vmatprep.subr.bf16.mxu1 %v9448_v25 }
 0x99c   :  { %9012 = vmatpush3.bf16.msra.mxu1 %v9011_v30 }
 0x99d   :  { %9013 = vmatprep.subr.bf16.mxu1 %v9448_v25 }
 0x99f   :  { %8103 = vmatmul.mubr.f32.vlgmr.msra.gmra.mrb[6].mxu1 %v11984_v46 }
 0x9a0   :  { %9015 = vmatpush3.bf16.msra.mxu1 %v9014_v34  ;;  %8137 = vmatprep.mubr.msk.f32.mxu1 %vm9449_vm8, %v12312_v55 }
 0x9a1   :  { %9016 = vmatprep.subr.bf16.mxu1 %v9448_v25 }
 0x9a4   :  { %9018 = vmatpush3.bf16.msra.mxu1 %v9017_v57 }
 0x9a5   :  { %9019 = vmatprep.subr.bf16.mxu1 %v9448_v25 }
 0x9a8   :  { %9021 = vmatpush3.bf16.msra.mxu1 %v9020_v40 }
 0x9a9   :  { %9022 = vmatprep.subr.bf16.mxu1 %v9448_v25 }
 0x9ac   :  { %9024 = vmatpush3.bf16.msra.mxu1 %v9023_v21 }
 0x9ad   :  { %9025 = vmatprep.subr.bf16.mxu1 %v9448_v25 }
 0x9b0   :  { %9027 = vmatpush3.bf16.msra.mxu1 %v9026_v60 }
 0x9b1   :  { %9028 = vmatprep.subr.bf16.mxu1 %v9448_v25 }
 0x9b4   :  { %9030 = vmatpush3.bf16.msra.mxu1 %v9029_v20 }
 0x9b5   :  { %9031 = vmatprep.subr.bf16.mxu1 %v9448_v25 }
 0x9b8   :  { %9033 = vmatpush3.bf16.msra.mxu1 %v9032_v23 }
 0x9b9   :  { %9034 = vmatprep.subr.bf16.mxu1 %v9448_v25 }
 0x9bc   :  { %9036 = vmatpush3.bf16.msra.mxu1 %v9035_v44 }
 0x9bd   :  { %9037 = vmatprep.subr.bf16.mxu1 %v9448_v25 }
 0x9bf   :  { %8138 = vmatmul.mubr.f32.vlgmr.msra.gmra.mrb[6].mxu1 %v6591_v49 }
 0x9c0   :  { %9039 = vmatpush3.bf16.msra.mxu1 %v11823_v28  ;;  %8172 = vmatprep.mubr.msk.f32.mxu1 %vm9449_vm8, %v12312_v55 }
 0x9c1   :  { %9040 = vmatprep.subr.bf16.mxu1 %v9448_v25 }
 0x9c4   :  { %9042 = vmatpush3.bf16.msra.mxu1 %v11836_v19 }
 0x9c5   :  { %9043 = vmatprep.subr.bf16.mxu1 %v9448_v25 }
 0x9c8   :  { %9045 = vmatpush3.bf16.msra.mxu1 %v11846_v33 }
 0x9c9   :  { %9046 = vmatprep.subr.bf16.mxu1 %v9448_v25 }
 0x9cc   :  { %9048 = vmatpush3.bf16.msra.mxu1 %v11850_v14 }
 0x9cd   :  { %9049 = vmatprep.subr.bf16.mxu1 %v9448_v25 }
 0x9d0   :  { %9051 = vmatpush3.bf16.msra.mxu1 %v11859_v0 }
 0x9d1   :  { %9052 = vmatprep.subr.bf16.mxu1 %v9448_v25 }
 0x9d4   :  { %9054 = vmatpush3.bf16.msra.mxu1 %v11871_v47 }
 0x9d5   :  { %9055 = vmatprep.subr.bf16.mxu1 %v9448_v25 }
 0x9d8   :  { %9057 = vmatpush3.bf16.msra.mxu1 %v11886_v63 }
 0x9d9   :  { %9058 = vmatprep.subr.bf16.mxu1 %v9448_v25 }
 0x9dc   :  { %9060 = vmatpush3.bf16.msra.mxu1 %v11904_v27 }
 0x9dd   :  { %9061 = vmatprep.subr.bf16.mxu1 %v9448_v25 }
 0x9df   :  { %8173 = vmatmul.mubr.f32.vlgmr.msra.gmra.mrb[6].mxu1 %v6592_v12 }
 0x9e0   :  { %9063 = vmatpush3.bf16.msra.mxu1 %v9062_v58  ;;  %8207 = vmatprep.mubr.msk.f32.mxu1 %vm9449_vm8, %v12312_v55 }
 0x9e1   :  { %9064 = vmatprep.subr.bf16.mxu1 %v9448_v25 }
 0x9e4   :  { %9066 = vmatpush3.bf16.msra.mxu1 %v9065_v38 }
 0x9e5   :  { %9067 = vmatprep.subr.bf16.mxu1 %v9448_v25 }
 0x9e8   :  { %9069 = vmatpush3.bf16.msra.mxu1 %v9068_v3 }
 0x9e9   :  { %9070 = vmatprep.subr.bf16.mxu1 %v9448_v25 }
 0x9ec   :  { %9072 = vmatpush3.bf16.msra.mxu1 %v9071_v37 }
 0x9ed   :  { %9073 = vmatprep.subr.bf16.mxu1 %v9448_v25 }
 0x9f0   :  { %9075 = vmatpush3.bf16.msra.mxu1 %v9074_v5 }
 0x9f1   :  { %9076 = vmatprep.subr.bf16.mxu1 %v9448_v25 }
 0x9f4   :  { %9078 = vmatpush3.bf16.msra.mxu1 %v9077_v16 }
 0x9f5   :  { %9079 = vmatprep.subr.bf16.mxu1 %v9448_v25 }
 0x9f8   :  { %9081 = vmatpush3.bf16.msra.mxu1 %v9080_v31 }
 0x9f9   :  { %9082 = vmatprep.subr.bf16.mxu1 %v9448_v25 }
 0x9fc   :  { %9084 = vmatpush3.bf16.msra.mxu1 %v9083_v18 }
 0x9fd   :  { %9085 = vmatprep.subr.bf16.mxu1 %v9448_v25 }
 0x9ff   :  { %8208 = vmatmul.mubr.f32.vlgmr.msra.gmra.mrb[6].mxu1 %v11984_v46 }
 0xa00   :  { %9087 = vmatpush3.bf16.msra.mxu1 %v11823_v28  ;;  %8242 = vmatprep.mubr.msk.f32.mxu1 %vm9449_vm8, %v12312_v55  ;;  %v7200_v28 = vld [vmem:[%s12106_s10] ss:$0 sm:$0xff] }
 0xa01   :  { %9088 = vmatprep.subr.bf16.mxu1 %v9448_v25 }
 0xa04   :  { %9090 = vmatpush3.bf16.msra.mxu1 %v11836_v19 }
 0xa05   :  { %9091 = vmatprep.subr.bf16.mxu1 %v9448_v25 }
 0xa08   :  { %9093 = vmatpush3.bf16.msra.mxu1 %v11846_v33 }
 0xa09   :  { %9094 = vmatprep.subr.bf16.mxu1 %v9448_v25 }
 0xa0c   :  { %9096 = vmatpush3.bf16.msra.mxu1 %v11850_v14 }
 0xa0d   :  { %9097 = vmatprep.subr.bf16.mxu1 %v9448_v25 }
 0xa10   :  { %9099 = vmatpush3.bf16.msra.mxu1 %v11859_v0 }
 0xa11   :  { %9100 = vmatprep.subr.bf16.mxu1 %v9448_v25 }
 0xa14   :  { %9102 = vmatpush3.bf16.msra.mxu1 %v11871_v47 }
 0xa15   :  { %9103 = vmatprep.subr.bf16.mxu1 %v9448_v25 }
 0xa18   :  { %9105 = vmatpush3.bf16.msra.mxu1 %v11886_v63 }
 0xa19   :  { %9106 = vmatprep.subr.bf16.mxu1 %v9448_v25 }
 0xa1c   :  { %9108 = vmatpush3.bf16.msra.mxu1 %v11904_v27 }
 0xa1f   :  { %8243 = vmatmul.mubr.f32.vlgmr.msra.gmra.mrb[6].mxu1 %v11984_v46 }
 0xaf2   :  { %v7146_v19 = vpop.f32.mrb[6].mxu1 }
 0xaf3   :  { %v9113_v33 = vadd.f32 %v7200_v28, %v7146_v19  ;;  %v8244_v14 = vpop.f32.mrb[7].mxu1 }
 0xaf5   :  { %7150 = vst [vmem:[%s12107_s11] sm:$0x3] %v9113_v33 }
 0xaf6   :  { %7155 = vsyncpa [#allocation3], 1 }
 0xaf7   :  { %7156 = vsyncpa [#allocation5], 1 }

</bundles_post_ra>
